<compile_context>
chip_gen: v7x
topology: tpu7x:2x2x1
jax: 0.10.0
libtpu: 0.0.40
codegen_flags: <defaults>
</compile_context>

<pallas_src>
import functools

import jax
import jax.numpy as jnp
from jax import lax
from jax.experimental import pallas as pl
from jax.experimental.pallas import tpu as pltpu


def _round_up(x, m):
    return ((x + m - 1) // m) * m


def _flat_geometry(H, W):
    """Geometry of the flattened zero-padded activation buffer.

    The (H+2, W+2) zero-padded image is flattened row-major: padded pixel
    (r, c) lives at lane SHIFT + r*(W+2) + c, so
      * tap (dy, dx) of the 3x3 conv is the contiguous lane window
        [SHIFT + dy*(W+2) + dx, + LPAD),
      * the conv-output grid (H*(W+2) real columns + tail pad to a 128
        multiple) lives at lane offset BASE, which is 128-lane aligned.
    """
    Wp = W + 2
    L = H * Wp                               # flat conv-output grid length
    LPAD = _round_up(L, 128)                 # lane-dense (unmasked-store) width
    BASE = _round_up(Wp + 1, 128)            # aligned interior / write-back offset
    SHIFT = BASE - (Wp + 1)                  # lane of padded pixel (0, 0)
    PADF = SHIFT + 2 * Wp + 2 + LPAD         # last tap offset + window width
    return Wp, L, LPAD, BASE, SHIFT, PADF


def _reg_head_kernel(x_ref, wh_ref, bh_ref, wl_ref, bl_ref, o_ref, pad_ref,
                     *, H, W, C, n_hidden, c_out):
    Wp, L, LPAD, BASE, SHIFT, PADF = _flat_geometry(H, W)
    cdt = pad_ref.dtype

    # --- (Re)initialize the resident padded-activation buffer for this image.
    # Re-done every grid step so the kernel is correct under megacore
    # "parallel" batch sharding (per-core scratch, never assumed zero).
    pad_ref[:, :BASE] = jnp.zeros((C, BASE), cdt)                # top halo strip
    if PADF > BASE + LPAD:                                       # bottom overrun strip
        pad_ref[:, BASE + LPAD:] = jnp.zeros((C, PADF - BASE - LPAD), cdt)
    # Interior (incl. the 2 zero gap columns per row and the zero tail) comes
    # straight from the wrapper-padded input: ONE aligned dense store.
    pad_ref[:, BASE:BASE + LPAD] = x_ref[0]

    # Valid-column mask, built ONCE (hoisted out of the layer loop): within
    # each Wp-wide row only the first W columns are real outputs; columns
    # >= L belong to the bottom halo / 128-pad tail.
    q = lax.broadcasted_iota(jnp.int32, (1, LPAD), 1)
    valid = ((q % Wp) < W) & (q < L)

    def conv3x3(w_at):
        # 9 accumulating MXU matmuls straight out of pad_ref.  Tap (dy, dx)
        # is the contiguous lane window starting at SHIFT + dy*Wp + dx; the
        # matmul is per-column independent so the extra LPAD-L columns only
        # produce masked-out garbage.
        acc = None
        for dy in range(3):
            for dx in range(3):
                k = dy * 3 + dx
                off = SHIFT + dy * Wp + dx
                part = jnp.dot(w_at(k), pad_ref[:, off:off + LPAD],
                               preferred_element_type=jnp.float32)
                acc = part if acc is None else acc + part
        return acc

    for i in range(n_hidden):
        y = conv3x3(lambda k, base=i * 9: wh_ref[base + k])      # (C, LPAD) f32
        y = jnp.maximum(y + bh_ref[i], 0.0)                      # bias + ReLU
        # Lane-aligned, unmasked-dense write-back; the mask keeps the halo
        # (gap columns + bottom rows) exactly zero for the next layer.
        pad_ref[:, BASE:BASE + LPAD] = jnp.where(valid, y, 0.0).astype(cdt)

    out = conv3x3(lambda k: wl_ref[k]) + bl_ref[...]             # (A*4, LPAD) f32
    o_ref[0] = out.astype(o_ref.dtype)


def _pack_weight_taps(w_oihw, dtype):
    """(Cout, Cin, 3, 3) OIHW -> (9, Cout, Cin), tap index k = dy*3 + dx."""
    co, ci, kh, kw = w_oihw.shape
    return jnp.transpose(w_oihw, (2, 3, 0, 1)).reshape(kh * kw, co, ci).astype(dtype)


def reg_head_forward(x_nchw, params, *, compute_dtype=jnp.bfloat16):
    """Forward pass matching RegHead.forward.  Input / output are NCHW (f32)."""
    N, C, H, W = x_nchw.shape
    n_hidden = len(params) - 1
    c_out = params[-1][0].shape[0]
    Wp, L, LPAD, BASE, SHIFT, PADF = _flat_geometry(H, W)

    # Pack weights once: per-tap (Cout, Cin) slabs; bf16 operands, f32 bias.
    wh = jnp.concatenate([_pack_weight_taps(w, compute_dtype)
                          for w, _ in params[:-1]], axis=0)       # (nh*9, C, C)
    bh = jnp.stack([b.reshape(C, 1) for _, b in params[:-1]]
                   ).astype(jnp.float32)                          # (nh, C, 1)
    wl = _pack_weight_taps(params[-1][0], compute_dtype)          # (9, A4, C)
    bl = params[-1][1].reshape(c_out, 1).astype(jnp.float32)      # (A4, 1)

    # Row-pad by 2 (the per-row halo gap) + tail-pad to a 128-lane multiple,
    # then cast to the compute dtype.  One fused pad+cast in XLA, ~0.6x the
    # f32 input bytes (vs. the old double full-image f32 pad).
    xp = jnp.pad(x_nchw, ((0, 0), (0, 0), (0, 0), (0, 2))).reshape(N, C, L)
    xp = jnp.pad(xp, ((0, 0), (0, 0), (0, LPAD - L))).astype(compute_dtype)

    kernel = functools.partial(_reg_head_kernel, H=H, W=W, C=C,
                               n_hidden=n_hidden, c_out=c_out)
    out_flat = pl.pallas_call(
        kernel,
        out_shape=jax.ShapeDtypeStruct((N, c_out, LPAD), x_nchw.dtype),
        grid_spec=pltpu.PrefetchScalarGridSpec(
            num_scalar_prefetch=0,
            grid=(N,),
            in_specs=[
                pl.BlockSpec((1, C, LPAD), lambda n: (n, 0, 0)),
                pl.BlockSpec((n_hidden * 9, C, C), lambda n: (0, 0, 0)),
                pl.BlockSpec((n_hidden, C, 1), lambda n: (0, 0, 0)),
                pl.BlockSpec((9, c_out, C), lambda n: (0, 0, 0)),
                pl.BlockSpec((c_out, 1), lambda n: (0, 0)),
            ],
            out_specs=pl.BlockSpec((1, c_out, LPAD), lambda n: (n, 0, 0)),
            scratch_shapes=[
                pltpu.VMEM((C, PADF), compute_dtype),   # resident padded activations
            ],
        ),
        compiler_params=pltpu.CompilerParams(
            dimension_semantics=("parallel",),
        ),
    )(xp, wh, bh, wl, bl)

    # Drop the 128-pad tail and the 2 gap columns per row (pure XLA view ops).
    return out_flat[:, :, :L].reshape(N, c_out, H, Wp)[:, :, :, :W]


def init_reg_head_params(key, inplanes, num_anchors, num_layers=4):
    """Synthetic init matching the PyTorch module: Conv2d weights ~ N(0, 0.01),
    biases = 0.  Weights stored OIHW (Cout, Cin, 3, 3) like torch."""
    params = []
    keys = jax.random.split(key, num_layers + 1)
    for i in range(num_layers):
        w = 0.01 * jax.random.normal(
            keys[i], (inplanes, inplanes, 3, 3), dtype=jnp.float32)
        params.append((w, jnp.zeros((inplanes,), jnp.float32)))
    w_last = 0.01 * jax.random.normal(
        keys[num_layers], (num_anchors * 4, inplanes, 3, 3), dtype=jnp.float32)
    params.append((w_last, jnp.zeros((num_anchors * 4,), jnp.float32)))
    return params


def _reference_forward(x_nchw, params, compute_dtype=None):
    """Pure-JAX reference (lax conv).  With compute_dtype=bf16 it mirrors the
    kernel's numerics (bf16 operands, f32 accumulation, bf16 inter-layer
    activations) so the geometry can be checked tightly."""
    x = x_nchw
    n_layers = len(params)
    for i, (w, b) in enumerate(params):
        if compute_dtype is not None:
            x = x.astype(compute_dtype)
            w = w.astype(compute_dtype)
        y = lax.conv_general_dilated(
            x, w,
            window_strides=(1, 1),
            padding=((1, 1), (1, 1)),
            dimension_numbers=("NCHW", "OIHW", "NCHW"),
            preferred_element_type=jnp.float32,
            precision=lax.Precision.HIGHEST,
        )
        y = y + b[None, :, None, None].astype(jnp.float32)
        if i != n_layers - 1:
            y = jnp.maximum(y, 0.0)
        x = y
    return x


if __name__ == "__main__":
    # Small shapes consistent with the module.
    batch, inplanes, H, W = 2, 8, 16, 16
    num_anchors = 4  # -> 16 output channels (num_anchors * 4)

    key = jax.random.PRNGKey(0)
    kx, kp = jax.random.split(key)
    x = jax.random.normal(kx, (batch, inplanes, H, W), dtype=jnp.float32)  # NCHW
    params = init_reg_head_params(kp, inplanes, num_anchors, num_layers=4)

    out = jax.block_until_ready(reg_head_forward(x, params))
    assert out.shape == (batch, num_anchors * 4, H, W), out.shape

    # Tight check against a reference with MATCHING numerics (bf16 operands,
    # f32 accumulation) -- catches any tap-offset / halo / geometry bug.
    ref_bf16 = _reference_forward(x, params, compute_dtype=jnp.bfloat16)
    scale_m = float(jnp.max(jnp.abs(ref_bf16)))
    err_m = float(jnp.max(jnp.abs(out - ref_bf16)))
    assert err_m <= 5e-3 * scale_m + 1e-7, ("mismatch vs matched-precision ref",
                                            err_m, scale_m)

    # Sanity check against the full-f32 reference (bf16 rounding budget over
    # 5 conv layers).
    ref_f32 = _reference_forward(x, params)
    scale_f = float(jnp.max(jnp.abs(ref_f32)))
    err_f = float(jnp.max(jnp.abs(out - ref_f32)))
    assert err_f <= 5e-2 * scale_f + 1e-7, ("mismatch vs f32 reference",
                                            err_f, scale_f)

    print("KERNEL_OK")
</pallas_src>

<mosaic_0001>
module attributes {stable_mosaic.version = 11 : i64} {
  func.func @_reg_head_kernel(%arg0: i32, %arg1: memref<1x8x384xbf16, #tpu.memory_space<vmem>>, %arg2: memref<36x8x8xbf16, #tpu.memory_space<vmem>>, %arg3: memref<4x8x1xf32, #tpu.memory_space<vmem>>, %arg4: memref<9x16x8xbf16, #tpu.memory_space<vmem>>, %arg5: memref<16x1xf32, #tpu.memory_space<vmem>>, %arg6: memref<1x16x384xf32, #tpu.memory_space<vmem>>, %arg7: memref<8x531xbf16, #tpu.memory_space<vmem>>) attributes {dimension_semantics = [#tpu.dimension_semantics<parallel>], iteration_bounds = array<i64: 2>, scalar_prefetch = 0 : i64, scratch_operands = 1 : i64, tpu.core_type = #tpu.core_type<tc>, window_params = [{transform_indices = @transform_0, window_bounds = array<i64: 1, 8, 384>}, {pipeline_mode = #tpu.pipeline_mode<synchronous>, transform_indices = @transform_1, window_bounds = array<i64: 36, 8, 8>}, {pipeline_mode = #tpu.pipeline_mode<synchronous>, transform_indices = @transform_2, window_bounds = array<i64: 4, 8, 1>}, {pipeline_mode = #tpu.pipeline_mode<synchronous>, transform_indices = @transform_3, window_bounds = array<i64: 9, 16, 8>}, {pipeline_mode = #tpu.pipeline_mode<synchronous>, transform_indices = @transform_4, window_bounds = array<i64: 16, 1>}, {transform_indices = @transform_5, window_bounds = array<i64: 1, 16, 384>}]} {
    %cst = arith.constant 0.000000e+00 : bf16
    %0 = vector.broadcast %cst : bf16 to vector<8x128xbf16>
    %c0 = arith.constant 0 : index
    %c0_0 = arith.constant 0 : index
    %1 = vector.load %arg7[%c0, %c0_0] : memref<8x531xbf16, #tpu.memory_space<vmem>>, vector<8x128xbf16>
    tpu.vector_store %arg7[%c0, %c0_0], %0 {strides = array<i32>} : memref<8x531xbf16, #tpu.memory_space<vmem>>, vector<8x128xbf16>,
    %cst_1 = arith.constant 0.000000e+00 : bf16
    %2 = vector.broadcast %cst_1 : bf16 to vector<8x19xbf16>
    %c0_2 = arith.constant 0 : index
    %c512 = arith.constant 512 : index
    %3 = vector.load %arg7[%c0_2, %c512] : memref<8x531xbf16, #tpu.memory_space<vmem>>, vector<8x19xbf16>
    tpu.vector_store %arg7[%c0_2, %c512], %2 {strides = array<i32>} : memref<8x531xbf16, #tpu.memory_space<vmem>>, vector<8x19xbf16>,
    %c0_3 = arith.constant 0 : index
    %c0_4 = arith.constant 0 : index
    %c0_5 = arith.constant 0 : index
    %4 = vector.load %arg1[%c0_3, %c0_4, %c0_5] : memref<1x8x384xbf16, #tpu.memory_space<vmem>>, vector<1x8x384xbf16>
    %5 = vector.shape_cast %4 : vector<1x8x384xbf16> to vector<8x384xbf16>
    %c0_6 = arith.constant 0 : index
    %c128 = arith.constant 128 : index
    %6 = vector.load %arg7[%c0_6, %c128] : memref<8x531xbf16, #tpu.memory_space<vmem>>, vector<8x384xbf16>
    tpu.vector_store %arg7[%c0_6, %c128], %5 {strides = array<i32>} : memref<8x531xbf16, #tpu.memory_space<vmem>>, vector<8x384xbf16>,
    %7 = tpu.iota {dimensions = array<i32: 1>} : vector<1x384xi32>
    %c18_i32 = arith.constant 18 : i32
    %c0_i32 = arith.constant 0 : i32
    %8 = arith.cmpi eq, %c18_i32, %c0_i32 : i32
    %c1_i32 = arith.constant 1 : i32
    %9 = arith.select %8, %c1_i32, %c18_i32 : i32
    %10 = vector.broadcast %9 : i32 to vector<1x384xi32>
    %11 = arith.remsi %7, %10 : vector<1x384xi32>
    %c0_i32_7 = arith.constant 0 : i32
    %12 = vector.broadcast %c0_i32_7 : i32 to vector<1x384xi32>
    %13 = arith.cmpi ne, %11, %12 : vector<1x384xi32>
    %c0_i32_8 = arith.constant 0 : i32
    %14 = vector.broadcast %c0_i32_8 : i32 to vector<1x384xi32>
    %15 = arith.cmpi slt, %11, %14 : vector<1x384xi32>
    %c0_i32_9 = arith.constant 0 : i32
    %16 = arith.cmpi slt, %9, %c0_i32_9 : i32
    %17 = vector.broadcast %16 : i1 to vector<1x384xi1>
    %18 = vector.broadcast %17 : vector<1x384xi1> to vector<1x384xi1>
    %19 = arith.xori %15, %18 : vector<1x384xi1>
    %20 = arith.andi %19, %13 : vector<1x384xi1>
    %21 = vector.broadcast %9 : i32 to vector<1x384xi32>
    %22 = arith.addi %11, %21 : vector<1x384xi32>
    %23 = arith.select %20, %22, %11 : vector<1x384xi1>, vector<1x384xi32>
    %c16_i32 = arith.constant 16 : i32
    %24 = vector.broadcast %c16_i32 : i32 to vector<1x384xi32>
    %25 = arith.cmpi slt, %23, %24 : vector<1x384xi32>
    %c288_i32 = arith.constant 288 : i32
    %26 = vector.broadcast %c288_i32 : i32 to vector<1x384xi32>
    %27 = arith.cmpi slt, %7, %26 : vector<1x384xi32>
    %28 = arith.andi %25, %27 : vector<1x384xi1>
    %c0_10 = arith.constant 0 : index
    %c0_11 = arith.constant 0 : index
    %c0_12 = arith.constant 0 : index
    %29 = vector.load %arg2[%c0_10, %c0_11, %c0_12] : memref<36x8x8xbf16, #tpu.memory_space<vmem>>, vector<1x8x8xbf16>
    %30 = vector.shape_cast %29 : vector<1x8x8xbf16> to vector<8x8xbf16>
    %c0_13 = arith.constant 0 : index
    %c109 = arith.constant 109 : index
    %31 = vector.load %arg7[%c0_13, %c109] : memref<8x531xbf16, #tpu.memory_space<vmem>>, vector<8x384xbf16>
    %cst_14 = arith.constant dense<0.000000e+00> : vector<8x384xf32>
    %32 = tpu.matmul %30, %31, %cst_14 {dimension_numbers = #tpu.dot_dimension_numbers<[1], [0], [0], [1], [0, 0, 1, 1], [], []>} : vector<8x8xbf16>, vector<8x384xbf16>, vector<8x384xf32> -> vector<8x384xf32>
    %c1 = arith.constant 1 : index
    %c0_15 = arith.constant 0 : index
    %c0_16 = arith.constant 0 : index
    %33 = vector.load %arg2[%c1, %c0_15, %c0_16] : memref<36x8x8xbf16, #tpu.memory_space<vmem>>, vector<1x8x8xbf16>
    %34 = vector.shape_cast %33 : vector<1x8x8xbf16> to vector<8x8xbf16>
    %c0_17 = arith.constant 0 : index
    %c110 = arith.constant 110 : index
    %35 = vector.load %arg7[%c0_17, %c110] : memref<8x531xbf16, #tpu.memory_space<vmem>>, vector<8x384xbf16>
    %cst_18 = arith.constant dense<0.000000e+00> : vector<8x384xf32>
    %36 = tpu.matmul %34, %35, %cst_18 {dimension_numbers = #tpu.dot_dimension_numbers<[1], [0], [0], [1], [0, 0, 1, 1], [], []>} : vector<8x8xbf16>, vector<8x384xbf16>, vector<8x384xf32> -> vector<8x384xf32>
    %37 = arith.addf %32, %36 : vector<8x384xf32>
    %c2 = arith.constant 2 : index
    %c0_19 = arith.constant 0 : index
    %c0_20 = arith.constant 0 : index
    %38 = vector.load %arg2[%c2, %c0_19, %c0_20] : memref<36x8x8xbf16, #tpu.memory_space<vmem>>, vector<1x8x8xbf16>
    %39 = vector.shape_cast %38 : vector<1x8x8xbf16> to vector<8x8xbf16>
    %c0_21 = arith.constant 0 : index
    %c111 = arith.constant 111 : index
    %40 = vector.load %arg7[%c0_21, %c111] : memref<8x531xbf16, #tpu.memory_space<vmem>>, vector<8x384xbf16>
    %cst_22 = arith.constant dense<0.000000e+00> : vector<8x384xf32>
    %41 = tpu.matmul %39, %40, %cst_22 {dimension_numbers = #tpu.dot_dimension_numbers<[1], [0], [0], [1], [0, 0, 1, 1], [], []>} : vector<8x8xbf16>, vector<8x384xbf16>, vector<8x384xf32> -> vector<8x384xf32>
    %42 = arith.addf %37, %41 : vector<8x384xf32>
    %c3 = arith.constant 3 : index
    %c0_23 = arith.constant 0 : index
    %c0_24 = arith.constant 0 : index
    %43 = vector.load %arg2[%c3, %c0_23, %c0_24] : memref<36x8x8xbf16, #tpu.memory_space<vmem>>, vector<1x8x8xbf16>
    %44 = vector.shape_cast %43 : vector<1x8x8xbf16> to vector<8x8xbf16>
    %c0_25 = arith.constant 0 : index
    %c127 = arith.constant 127 : index
    %45 = vector.load %arg7[%c0_25, %c127] : memref<8x531xbf16, #tpu.memory_space<vmem>>, vector<8x384xbf16>
    %cst_26 = arith.constant dense<0.000000e+00> : vector<8x384xf32>
    %46 = tpu.matmul %44, %45, %cst_26 {dimension_numbers = #tpu.dot_dimension_numbers<[1], [0], [0], [1], [0, 0, 1, 1], [], []>} : vector<8x8xbf16>, vector<8x384xbf16>, vector<8x384xf32> -> vector<8x384xf32>
    %47 = arith.addf %42, %46 : vector<8x384xf32>
    %c4 = arith.constant 4 : index
    %c0_27 = arith.constant 0 : index
    %c0_28 = arith.constant 0 : index
    %48 = vector.load %arg2[%c4, %c0_27, %c0_28] : memref<36x8x8xbf16, #tpu.memory_space<vmem>>, vector<1x8x8xbf16>
    %49 = vector.shape_cast %48 : vector<1x8x8xbf16> to vector<8x8xbf16>
    %c0_29 = arith.constant 0 : index
    %c128_30 = arith.constant 128 : index
    %50 = vector.load %arg7[%c0_29, %c128_30] : memref<8x531xbf16, #tpu.memory_space<vmem>>, vector<8x384xbf16>
    %cst_31 = arith.constant dense<0.000000e+00> : vector<8x384xf32>
    %51 = tpu.matmul %49, %50, %cst_31 {dimension_numbers = #tpu.dot_dimension_numbers<[1], [0], [0], [1], [0, 0, 1, 1], [], []>} : vector<8x8xbf16>, vector<8x384xbf16>, vector<8x384xf32> -> vector<8x384xf32>
    %52 = arith.addf %47, %51 : vector<8x384xf32>
    %c5 = arith.constant 5 : index
    %c0_32 = arith.constant 0 : index
    %c0_33 = arith.constant 0 : index
    %53 = vector.load %arg2[%c5, %c0_32, %c0_33] : memref<36x8x8xbf16, #tpu.memory_space<vmem>>, vector<1x8x8xbf16>
    %54 = vector.shape_cast %53 : vector<1x8x8xbf16> to vector<8x8xbf16>
    %c0_34 = arith.constant 0 : index
    %c129 = arith.constant 129 : index
    %55 = vector.load %arg7[%c0_34, %c129] : memref<8x531xbf16, #tpu.memory_space<vmem>>, vector<8x384xbf16>
    %cst_35 = arith.constant dense<0.000000e+00> : vector<8x384xf32>
    %56 = tpu.matmul %54, %55, %cst_35 {dimension_numbers = #tpu.dot_dimension_numbers<[1], [0], [0], [1], [0, 0, 1, 1], [], []>} : vector<8x8xbf16>, vector<8x384xbf16>, vector<8x384xf32> -> vector<8x384xf32>
    %57 = arith.addf %52, %56 : vector<8x384xf32>
    %c6 = arith.constant 6 : index
    %c0_36 = arith.constant 0 : index
    %c0_37 = arith.constant 0 : index
    %58 = vector.load %arg2[%c6, %c0_36, %c0_37] : memref<36x8x8xbf16, #tpu.memory_space<vmem>>, vector<1x8x8xbf16>
    %59 = vector.shape_cast %58 : vector<1x8x8xbf16> to vector<8x8xbf16>
    %c0_38 = arith.constant 0 : index
    %c145 = arith.constant 145 : index
    %60 = vector.load %arg7[%c0_38, %c145] : memref<8x531xbf16, #tpu.memory_space<vmem>>, vector<8x384xbf16>
    %cst_39 = arith.constant dense<0.000000e+00> : vector<8x384xf32>
    %61 = tpu.matmul %59, %60, %cst_39 {dimension_numbers = #tpu.dot_dimension_numbers<[1], [0], [0], [1], [0, 0, 1, 1], [], []>} : vector<8x8xbf16>, vector<8x384xbf16>, vector<8x384xf32> -> vector<8x384xf32>
    %62 = arith.addf %57, %61 : vector<8x384xf32>
    %c7 = arith.constant 7 : index
    %c0_40 = arith.constant 0 : index
    %c0_41 = arith.constant 0 : index
    %63 = vector.load %arg2[%c7, %c0_40, %c0_41] : memref<36x8x8xbf16, #tpu.memory_space<vmem>>, vector<1x8x8xbf16>
    %64 = vector.shape_cast %63 : vector<1x8x8xbf16> to vector<8x8xbf16>
    %c0_42 = arith.constant 0 : index
    %c146 = arith.constant 146 : index
    %65 = vector.load %arg7[%c0_42, %c146] : memref<8x531xbf16, #tpu.memory_space<vmem>>, vector<8x384xbf16>
    %cst_43 = arith.constant dense<0.000000e+00> : vector<8x384xf32>
    %66 = tpu.matmul %64, %65, %cst_43 {dimension_numbers = #tpu.dot_dimension_numbers<[1], [0], [0], [1], [0, 0, 1, 1], [], []>} : vector<8x8xbf16>, vector<8x384xbf16>, vector<8x384xf32> -> vector<8x384xf32>
    %67 = arith.addf %62, %66 : vector<8x384xf32>
    %c8 = arith.constant 8 : index
    %c0_44 = arith.constant 0 : index
    %c0_45 = arith.constant 0 : index
    %68 = vector.load %arg2[%c8, %c0_44, %c0_45] : memref<36x8x8xbf16, #tpu.memory_space<vmem>>, vector<1x8x8xbf16>
    %69 = vector.shape_cast %68 : vector<1x8x8xbf16> to vector<8x8xbf16>
    %c0_46 = arith.constant 0 : index
    %c147 = arith.constant 147 : index
    %70 = vector.load %arg7[%c0_46, %c147] : memref<8x531xbf16, #tpu.memory_space<vmem>>, vector<8x384xbf16>
    %cst_47 = arith.constant dense<0.000000e+00> : vector<8x384xf32>
    %71 = tpu.matmul %69, %70, %cst_47 {dimension_numbers = #tpu.dot_dimension_numbers<[1], [0], [0], [1], [0, 0, 1, 1], [], []>} : vector<8x8xbf16>, vector<8x384xbf16>, vector<8x384xf32> -> vector<8x384xf32>
    %72 = arith.addf %67, %71 : vector<8x384xf32>
    %c0_48 = arith.constant 0 : index
    %c0_49 = arith.constant 0 : index
    %c0_50 = arith.constant 0 : index
    %73 = vector.load %arg3[%c0_48, %c0_49, %c0_50] : memref<4x8x1xf32, #tpu.memory_space<vmem>>, vector<1x8x1xf32>
    %74 = vector.shape_cast %73 : vector<1x8x1xf32> to vector<8x1xf32>
    %75 = vector.broadcast %74 : vector<8x1xf32> to vector<8x384xf32>
    %76 = arith.addf %72, %75 : vector<8x384xf32>
    %cst_51 = arith.constant 0.000000e+00 : f32
    %77 = vector.broadcast %cst_51 : f32 to vector<8x384xf32>
    %78 = arith.maximumf %76, %77 : vector<8x384xf32>
    %cst_52 = arith.constant 0.000000e+00 : f32
    %79 = vector.shape_cast %28 : vector<1x384xi1> to vector<1x384xi1>
    %80 = vector.broadcast %79 : vector<1x384xi1> to vector<8x384xi1>
    %81 = vector.broadcast %cst_52 : f32 to vector<8x384xf32>
    %82 = arith.select %80, %78, %81 : vector<8x384xi1>, vector<8x384xf32>
    %83 = arith.truncf %82 : vector<8x384xf32> to vector<8x384xbf16>
    %c0_53 = arith.constant 0 : index
    %c128_54 = arith.constant 128 : index
    %84 = vector.load %arg7[%c0_53, %c128_54] : memref<8x531xbf16, #tpu.memory_space<vmem>>, vector<8x384xbf16>
    tpu.vector_store %arg7[%c0_53, %c128_54], %83 {strides = array<i32>} : memref<8x531xbf16, #tpu.memory_space<vmem>>, vector<8x384xbf16>,
    %c9 = arith.constant 9 : index
    %c0_55 = arith.constant 0 : index
    %c0_56 = arith.constant 0 : index
    %85 = vector.load %arg2[%c9, %c0_55, %c0_56] : memref<36x8x8xbf16, #tpu.memory_space<vmem>>, vector<1x8x8xbf16>
    %86 = vector.shape_cast %85 : vector<1x8x8xbf16> to vector<8x8xbf16>
    %c0_57 = arith.constant 0 : index
    %c109_58 = arith.constant 109 : index
    %87 = vector.load %arg7[%c0_57, %c109_58] : memref<8x531xbf16, #tpu.memory_space<vmem>>, vector<8x384xbf16>
    %cst_59 = arith.constant dense<0.000000e+00> : vector<8x384xf32>
    %88 = tpu.matmul %86, %87, %cst_59 {dimension_numbers = #tpu.dot_dimension_numbers<[1], [0], [0], [1], [0, 0, 1, 1], [], []>} : vector<8x8xbf16>, vector<8x384xbf16>, vector<8x384xf32> -> vector<8x384xf32>
    %c10 = arith.constant 10 : index
    %c0_60 = arith.constant 0 : index
    %c0_61 = arith.constant 0 : index
    %89 = vector.load %arg2[%c10, %c0_60, %c0_61] : memref<36x8x8xbf16, #tpu.memory_space<vmem>>, vector<1x8x8xbf16>
    %90 = vector.shape_cast %89 : vector<1x8x8xbf16> to vector<8x8xbf16>
    %c0_62 = arith.constant 0 : index
    %c110_63 = arith.constant 110 : index
    %91 = vector.load %arg7[%c0_62, %c110_63] : memref<8x531xbf16, #tpu.memory_space<vmem>>, vector<8x384xbf16>
    %cst_64 = arith.constant dense<0.000000e+00> : vector<8x384xf32>
    %92 = tpu.matmul %90, %91, %cst_64 {dimension_numbers = #tpu.dot_dimension_numbers<[1], [0], [0], [1], [0, 0, 1, 1], [], []>} : vector<8x8xbf16>, vector<8x384xbf16>, vector<8x384xf32> -> vector<8x384xf32>
    %93 = arith.addf %88, %92 : vector<8x384xf32>
    %c11 = arith.constant 11 : index
    %c0_65 = arith.constant 0 : index
    %c0_66 = arith.constant 0 : index
    %94 = vector.load %arg2[%c11, %c0_65, %c0_66] : memref<36x8x8xbf16, #tpu.memory_space<vmem>>, vector<1x8x8xbf16>
    %95 = vector.shape_cast %94 : vector<1x8x8xbf16> to vector<8x8xbf16>
    %c0_67 = arith.constant 0 : index
    %c111_68 = arith.constant 111 : index
    %96 = vector.load %arg7[%c0_67, %c111_68] : memref<8x531xbf16, #tpu.memory_space<vmem>>, vector<8x384xbf16>
    %cst_69 = arith.constant dense<0.000000e+00> : vector<8x384xf32>
    %97 = tpu.matmul %95, %96, %cst_69 {dimension_numbers = #tpu.dot_dimension_numbers<[1], [0], [0], [1], [0, 0, 1, 1], [], []>} : vector<8x8xbf16>, vector<8x384xbf16>, vector<8x384xf32> -> vector<8x384xf32>
    %98 = arith.addf %93, %97 : vector<8x384xf32>
    %c12 = arith.constant 12 : index
    %c0_70 = arith.constant 0 : index
    %c0_71 = arith.constant 0 : index
    %99 = vector.load %arg2[%c12, %c0_70, %c0_71] : memref<36x8x8xbf16, #tpu.memory_space<vmem>>, vector<1x8x8xbf16>
    %100 = vector.shape_cast %99 : vector<1x8x8xbf16> to vector<8x8xbf16>
    %c0_72 = arith.constant 0 : index
    %c127_73 = arith.constant 127 : index
    %101 = vector.load %arg7[%c0_72, %c127_73] : memref<8x531xbf16, #tpu.memory_space<vmem>>, vector<8x384xbf16>
    %cst_74 = arith.constant dense<0.000000e+00> : vector<8x384xf32>
    %102 = tpu.matmul %100, %101, %cst_74 {dimension_numbers = #tpu.dot_dimension_numbers<[1], [0], [0], [1], [0, 0, 1, 1], [], []>} : vector<8x8xbf16>, vector<8x384xbf16>, vector<8x384xf32> -> vector<8x384xf32>
    %103 = arith.addf %98, %102 : vector<8x384xf32>
    %c13 = arith.constant 13 : index
    %c0_75 = arith.constant 0 : index
    %c0_76 = arith.constant 0 : index
    %104 = vector.load %arg2[%c13, %c0_75, %c0_76] : memref<36x8x8xbf16, #tpu.memory_space<vmem>>, vector<1x8x8xbf16>
    %105 = vector.shape_cast %104 : vector<1x8x8xbf16> to vector<8x8xbf16>
    %c0_77 = arith.constant 0 : index
    %c128_78 = arith.constant 128 : index
    %106 = vector.load %arg7[%c0_77, %c128_78] : memref<8x531xbf16, #tpu.memory_space<vmem>>, vector<8x384xbf16>
    %cst_79 = arith.constant dense<0.000000e+00> : vector<8x384xf32>
    %107 = tpu.matmul %105, %106, %cst_79 {dimension_numbers = #tpu.dot_dimension_numbers<[1], [0], [0], [1], [0, 0, 1, 1], [], []>} : vector<8x8xbf16>, vector<8x384xbf16>, vector<8x384xf32> -> vector<8x384xf32>
    %108 = arith.addf %103, %107 : vector<8x384xf32>
    %c14 = arith.constant 14 : index
    %c0_80 = arith.constant 0 : index
    %c0_81 = arith.constant 0 : index
    %109 = vector.load %arg2[%c14, %c0_80, %c0_81] : memref<36x8x8xbf16, #tpu.memory_space<vmem>>, vector<1x8x8xbf16>
    %110 = vector.shape_cast %109 : vector<1x8x8xbf16> to vector<8x8xbf16>
    %c0_82 = arith.constant 0 : index
    %c129_83 = arith.constant 129 : index
    %111 = vector.load %arg7[%c0_82, %c129_83] : memref<8x531xbf16, #tpu.memory_space<vmem>>, vector<8x384xbf16>
    %cst_84 = arith.constant dense<0.000000e+00> : vector<8x384xf32>
    %112 = tpu.matmul %110, %111, %cst_84 {dimension_numbers = #tpu.dot_dimension_numbers<[1], [0], [0], [1], [0, 0, 1, 1], [], []>} : vector<8x8xbf16>, vector<8x384xbf16>, vector<8x384xf32> -> vector<8x384xf32>
    %113 = arith.addf %108, %112 : vector<8x384xf32>
    %c15 = arith.constant 15 : index
    %c0_85 = arith.constant 0 : index
    %c0_86 = arith.constant 0 : index
    %114 = vector.load %arg2[%c15, %c0_85, %c0_86] : memref<36x8x8xbf16, #tpu.memory_space<vmem>>, vector<1x8x8xbf16>
    %115 = vector.shape_cast %114 : vector<1x8x8xbf16> to vector<8x8xbf16>
    %c0_87 = arith.constant 0 : index
    %c145_88 = arith.constant 145 : index
    %116 = vector.load %arg7[%c0_87, %c145_88] : memref<8x531xbf16, #tpu.memory_space<vmem>>, vector<8x384xbf16>
    %cst_89 = arith.constant dense<0.000000e+00> : vector<8x384xf32>
    %117 = tpu.matmul %115, %116, %cst_89 {dimension_numbers = #tpu.dot_dimension_numbers<[1], [0], [0], [1], [0, 0, 1, 1], [], []>} : vector<8x8xbf16>, vector<8x384xbf16>, vector<8x384xf32> -> vector<8x384xf32>
    %118 = arith.addf %113, %117 : vector<8x384xf32>
    %c16 = arith.constant 16 : index
    %c0_90 = arith.constant 0 : index
    %c0_91 = arith.constant 0 : index
    %119 = vector.load %arg2[%c16, %c0_90, %c0_91] : memref<36x8x8xbf16, #tpu.memory_space<vmem>>, vector<1x8x8xbf16>
    %120 = vector.shape_cast %119 : vector<1x8x8xbf16> to vector<8x8xbf16>
    %c0_92 = arith.constant 0 : index
    %c146_93 = arith.constant 146 : index
    %121 = vector.load %arg7[%c0_92, %c146_93] : memref<8x531xbf16, #tpu.memory_space<vmem>>, vector<8x384xbf16>
    %cst_94 = arith.constant dense<0.000000e+00> : vector<8x384xf32>
    %122 = tpu.matmul %120, %121, %cst_94 {dimension_numbers = #tpu.dot_dimension_numbers<[1], [0], [0], [1], [0, 0, 1, 1], [], []>} : vector<8x8xbf16>, vector<8x384xbf16>, vector<8x384xf32> -> vector<8x384xf32>
    %123 = arith.addf %118, %122 : vector<8x384xf32>
    %c17 = arith.constant 17 : index
    %c0_95 = arith.constant 0 : index
    %c0_96 = arith.constant 0 : index
    %124 = vector.load %arg2[%c17, %c0_95, %c0_96] : memref<36x8x8xbf16, #tpu.memory_space<vmem>>, vector<1x8x8xbf16>
    %125 = vector.shape_cast %124 : vector<1x8x8xbf16> to vector<8x8xbf16>
    %c0_97 = arith.constant 0 : index
    %c147_98 = arith.constant 147 : index
    %126 = vector.load %arg7[%c0_97, %c147_98] : memref<8x531xbf16, #tpu.memory_space<vmem>>, vector<8x384xbf16>
    %cst_99 = arith.constant dense<0.000000e+00> : vector<8x384xf32>
    %127 = tpu.matmul %125, %126, %cst_99 {dimension_numbers = #tpu.dot_dimension_numbers<[1], [0], [0], [1], [0, 0, 1, 1], [], []>} : vector<8x8xbf16>, vector<8x384xbf16>, vector<8x384xf32> -> vector<8x384xf32>
    %128 = arith.addf %123, %127 : vector<8x384xf32>
    %c1_100 = arith.constant 1 : index
    %c0_101 = arith.constant 0 : index
    %c0_102 = arith.constant 0 : index
    %129 = vector.load %arg3[%c1_100, %c0_101, %c0_102] : memref<4x8x1xf32, #tpu.memory_space<vmem>>, vector<1x8x1xf32>
    %130 = vector.shape_cast %129 : vector<1x8x1xf32> to vector<8x1xf32>
    %131 = vector.broadcast %130 : vector<8x1xf32> to vector<8x384xf32>
    %132 = arith.addf %128, %131 : vector<8x384xf32>
    %cst_103 = arith.constant 0.000000e+00 : f32
    %133 = vector.broadcast %cst_103 : f32 to vector<8x384xf32>
    %134 = arith.maximumf %132, %133 : vector<8x384xf32>
    %cst_104 = arith.constant 0.000000e+00 : f32
    %135 = vector.shape_cast %28 : vector<1x384xi1> to vector<1x384xi1>
    %136 = vector.broadcast %135 : vector<1x384xi1> to vector<8x384xi1>
    %137 = vector.broadcast %cst_104 : f32 to vector<8x384xf32>
    %138 = arith.select %136, %134, %137 : vector<8x384xi1>, vector<8x384xf32>
    %139 = arith.truncf %138 : vector<8x384xf32> to vector<8x384xbf16>
    %c0_105 = arith.constant 0 : index
    %c128_106 = arith.constant 128 : index
    %140 = vector.load %arg7[%c0_105, %c128_106] : memref<8x531xbf16, #tpu.memory_space<vmem>>, vector<8x384xbf16>
    tpu.vector_store %arg7[%c0_105, %c128_106], %139 {strides = array<i32>} : memref<8x531xbf16, #tpu.memory_space<vmem>>, vector<8x384xbf16>,
    %c18 = arith.constant 18 : index
    %c0_107 = arith.constant 0 : index
    %c0_108 = arith.constant 0 : index
    %141 = vector.load %arg2[%c18, %c0_107, %c0_108] : memref<36x8x8xbf16, #tpu.memory_space<vmem>>, vector<1x8x8xbf16>
    %142 = vector.shape_cast %141 : vector<1x8x8xbf16> to vector<8x8xbf16>
    %c0_109 = arith.constant 0 : index
    %c109_110 = arith.constant 109 : index
    %143 = vector.load %arg7[%c0_109, %c109_110] : memref<8x531xbf16, #tpu.memory_space<vmem>>, vector<8x384xbf16>
    %cst_111 = arith.constant dense<0.000000e+00> : vector<8x384xf32>
    %144 = tpu.matmul %142, %143, %cst_111 {dimension_numbers = #tpu.dot_dimension_numbers<[1], [0], [0], [1], [0, 0, 1, 1], [], []>} : vector<8x8xbf16>, vector<8x384xbf16>, vector<8x384xf32> -> vector<8x384xf32>
    %c19 = arith.constant 19 : index
    %c0_112 = arith.constant 0 : index
    %c0_113 = arith.constant 0 : index
    %145 = vector.load %arg2[%c19, %c0_112, %c0_113] : memref<36x8x8xbf16, #tpu.memory_space<vmem>>, vector<1x8x8xbf16>
    %146 = vector.shape_cast %145 : vector<1x8x8xbf16> to vector<8x8xbf16>
    %c0_114 = arith.constant 0 : index
    %c110_115 = arith.constant 110 : index
    %147 = vector.load %arg7[%c0_114, %c110_115] : memref<8x531xbf16, #tpu.memory_space<vmem>>, vector<8x384xbf16>
    %cst_116 = arith.constant dense<0.000000e+00> : vector<8x384xf32>
    %148 = tpu.matmul %146, %147, %cst_116 {dimension_numbers = #tpu.dot_dimension_numbers<[1], [0], [0], [1], [0, 0, 1, 1], [], []>} : vector<8x8xbf16>, vector<8x384xbf16>, vector<8x384xf32> -> vector<8x384xf32>
    %149 = arith.addf %144, %148 : vector<8x384xf32>
    %c20 = arith.constant 20 : index
    %c0_117 = arith.constant 0 : index
    %c0_118 = arith.constant 0 : index
    %150 = vector.load %arg2[%c20, %c0_117, %c0_118] : memref<36x8x8xbf16, #tpu.memory_space<vmem>>, vector<1x8x8xbf16>
    %151 = vector.shape_cast %150 : vector<1x8x8xbf16> to vector<8x8xbf16>
    %c0_119 = arith.constant 0 : index
    %c111_120 = arith.constant 111 : index
    %152 = vector.load %arg7[%c0_119, %c111_120] : memref<8x531xbf16, #tpu.memory_space<vmem>>, vector<8x384xbf16>
    %cst_121 = arith.constant dense<0.000000e+00> : vector<8x384xf32>
    %153 = tpu.matmul %151, %152, %cst_121 {dimension_numbers = #tpu.dot_dimension_numbers<[1], [0], [0], [1], [0, 0, 1, 1], [], []>} : vector<8x8xbf16>, vector<8x384xbf16>, vector<8x384xf32> -> vector<8x384xf32>
    %154 = arith.addf %149, %153 : vector<8x384xf32>
    %c21 = arith.constant 21 : index
    %c0_122 = arith.constant 0 : index
    %c0_123 = arith.constant 0 : index
    %155 = vector.load %arg2[%c21, %c0_122, %c0_123] : memref<36x8x8xbf16, #tpu.memory_space<vmem>>, vector<1x8x8xbf16>
    %156 = vector.shape_cast %155 : vector<1x8x8xbf16> to vector<8x8xbf16>
    %c0_124 = arith.constant 0 : index
    %c127_125 = arith.constant 127 : index
    %157 = vector.load %arg7[%c0_124, %c127_125] : memref<8x531xbf16, #tpu.memory_space<vmem>>, vector<8x384xbf16>
    %cst_126 = arith.constant dense<0.000000e+00> : vector<8x384xf32>
    %158 = tpu.matmul %156, %157, %cst_126 {dimension_numbers = #tpu.dot_dimension_numbers<[1], [0], [0], [1], [0, 0, 1, 1], [], []>} : vector<8x8xbf16>, vector<8x384xbf16>, vector<8x384xf32> -> vector<8x384xf32>
    %159 = arith.addf %154, %158 : vector<8x384xf32>
    %c22 = arith.constant 22 : index
    %c0_127 = arith.constant 0 : index
    %c0_128 = arith.constant 0 : index
    %160 = vector.load %arg2[%c22, %c0_127, %c0_128] : memref<36x8x8xbf16, #tpu.memory_space<vmem>>, vector<1x8x8xbf16>
    %161 = vector.shape_cast %160 : vector<1x8x8xbf16> to vector<8x8xbf16>
    %c0_129 = arith.constant 0 : index
    %c128_130 = arith.constant 128 : index
    %162 = vector.load %arg7[%c0_129, %c128_130] : memref<8x531xbf16, #tpu.memory_space<vmem>>, vector<8x384xbf16>
    %cst_131 = arith.constant dense<0.000000e+00> : vector<8x384xf32>
    %163 = tpu.matmul %161, %162, %cst_131 {dimension_numbers = #tpu.dot_dimension_numbers<[1], [0], [0], [1], [0, 0, 1, 1], [], []>} : vector<8x8xbf16>, vector<8x384xbf16>, vector<8x384xf32> -> vector<8x384xf32>
    %164 = arith.addf %159, %163 : vector<8x384xf32>
    %c23 = arith.constant 23 : index
    %c0_132 = arith.constant 0 : index
    %c0_133 = arith.constant 0 : index
    %165 = vector.load %arg2[%c23, %c0_132, %c0_133] : memref<36x8x8xbf16, #tpu.memory_space<vmem>>, vector<1x8x8xbf16>
    %166 = vector.shape_cast %165 : vector<1x8x8xbf16> to vector<8x8xbf16>
    %c0_134 = arith.constant 0 : index
    %c129_135 = arith.constant 129 : index
    %167 = vector.load %arg7[%c0_134, %c129_135] : memref<8x531xbf16, #tpu.memory_space<vmem>>, vector<8x384xbf16>
    %cst_136 = arith.constant dense<0.000000e+00> : vector<8x384xf32>
    %168 = tpu.matmul %166, %167, %cst_136 {dimension_numbers = #tpu.dot_dimension_numbers<[1], [0], [0], [1], [0, 0, 1, 1], [], []>} : vector<8x8xbf16>, vector<8x384xbf16>, vector<8x384xf32> -> vector<8x384xf32>
    %169 = arith.addf %164, %168 : vector<8x384xf32>
    %c24 = arith.constant 24 : index
    %c0_137 = arith.constant 0 : index
    %c0_138 = arith.constant 0 : index
    %170 = vector.load %arg2[%c24, %c0_137, %c0_138] : memref<36x8x8xbf16, #tpu.memory_space<vmem>>, vector<1x8x8xbf16>
    %171 = vector.shape_cast %170 : vector<1x8x8xbf16> to vector<8x8xbf16>
    %c0_139 = arith.constant 0 : index
    %c145_140 = arith.constant 145 : index
    %172 = vector.load %arg7[%c0_139, %c145_140] : memref<8x531xbf16, #tpu.memory_space<vmem>>, vector<8x384xbf16>
    %cst_141 = arith.constant dense<0.000000e+00> : vector<8x384xf32>
    %173 = tpu.matmul %171, %172, %cst_141 {dimension_numbers = #tpu.dot_dimension_numbers<[1], [0], [0], [1], [0, 0, 1, 1], [], []>} : vector<8x8xbf16>, vector<8x384xbf16>, vector<8x384xf32> -> vector<8x384xf32>
    %174 = arith.addf %169, %173 : vector<8x384xf32>
    %c25 = arith.constant 25 : index
    %c0_142 = arith.constant 0 : index
    %c0_143 = arith.constant 0 : index
    %175 = vector.load %arg2[%c25, %c0_142, %c0_143] : memref<36x8x8xbf16, #tpu.memory_space<vmem>>, vector<1x8x8xbf16>
    %176 = vector.shape_cast %175 : vector<1x8x8xbf16> to vector<8x8xbf16>
    %c0_144 = arith.constant 0 : index
    %c146_145 = arith.constant 146 : index
    %177 = vector.load %arg7[%c0_144, %c146_145] : memref<8x531xbf16, #tpu.memory_space<vmem>>, vector<8x384xbf16>
    %cst_146 = arith.constant dense<0.000000e+00> : vector<8x384xf32>
    %178 = tpu.matmul %176, %177, %cst_146 {dimension_numbers = #tpu.dot_dimension_numbers<[1], [0], [0], [1], [0, 0, 1, 1], [], []>} : vector<8x8xbf16>, vector<8x384xbf16>, vector<8x384xf32> -> vector<8x384xf32>
    %179 = arith.addf %174, %178 : vector<8x384xf32>
    %c26 = arith.constant 26 : index
    %c0_147 = arith.constant 0 : index
    %c0_148 = arith.constant 0 : index
    %180 = vector.load %arg2[%c26, %c0_147, %c0_148] : memref<36x8x8xbf16, #tpu.memory_space<vmem>>, vector<1x8x8xbf16>
    %181 = vector.shape_cast %180 : vector<1x8x8xbf16> to vector<8x8xbf16>
    %c0_149 = arith.constant 0 : index
    %c147_150 = arith.constant 147 : index
    %182 = vector.load %arg7[%c0_149, %c147_150] : memref<8x531xbf16, #tpu.memory_space<vmem>>, vector<8x384xbf16>
    %cst_151 = arith.constant dense<0.000000e+00> : vector<8x384xf32>
    %183 = tpu.matmul %181, %182, %cst_151 {dimension_numbers = #tpu.dot_dimension_numbers<[1], [0], [0], [1], [0, 0, 1, 1], [], []>} : vector<8x8xbf16>, vector<8x384xbf16>, vector<8x384xf32> -> vector<8x384xf32>
    %184 = arith.addf %179, %183 : vector<8x384xf32>
    %c2_152 = arith.constant 2 : index
    %c0_153 = arith.constant 0 : index
    %c0_154 = arith.constant 0 : index
    %185 = vector.load %arg3[%c2_152, %c0_153, %c0_154] : memref<4x8x1xf32, #tpu.memory_space<vmem>>, vector<1x8x1xf32>
    %186 = vector.shape_cast %185 : vector<1x8x1xf32> to vector<8x1xf32>
    %187 = vector.broadcast %186 : vector<8x1xf32> to vector<8x384xf32>
    %188 = arith.addf %184, %187 : vector<8x384xf32>
    %cst_155 = arith.constant 0.000000e+00 : f32
    %189 = vector.broadcast %cst_155 : f32 to vector<8x384xf32>
    %190 = arith.maximumf %188, %189 : vector<8x384xf32>
    %cst_156 = arith.constant 0.000000e+00 : f32
    %191 = vector.shape_cast %28 : vector<1x384xi1> to vector<1x384xi1>
    %192 = vector.broadcast %191 : vector<1x384xi1> to vector<8x384xi1>
    %193 = vector.broadcast %cst_156 : f32 to vector<8x384xf32>
    %194 = arith.select %192, %190, %193 : vector<8x384xi1>, vector<8x384xf32>
    %195 = arith.truncf %194 : vector<8x384xf32> to vector<8x384xbf16>
    %c0_157 = arith.constant 0 : index
    %c128_158 = arith.constant 128 : index
    %196 = vector.load %arg7[%c0_157, %c128_158] : memref<8x531xbf16, #tpu.memory_space<vmem>>, vector<8x384xbf16>
    tpu.vector_store %arg7[%c0_157, %c128_158], %195 {strides = array<i32>} : memref<8x531xbf16, #tpu.memory_space<vmem>>, vector<8x384xbf16>,
    %c27 = arith.constant 27 : index
    %c0_159 = arith.constant 0 : index
    %c0_160 = arith.constant 0 : index
    %197 = vector.load %arg2[%c27, %c0_159, %c0_160] : memref<36x8x8xbf16, #tpu.memory_space<vmem>>, vector<1x8x8xbf16>
    %198 = vector.shape_cast %197 : vector<1x8x8xbf16> to vector<8x8xbf16>
    %c0_161 = arith.constant 0 : index
    %c109_162 = arith.constant 109 : index
    %199 = vector.load %arg7[%c0_161, %c109_162] : memref<8x531xbf16, #tpu.memory_space<vmem>>, vector<8x384xbf16>
    %cst_163 = arith.constant dense<0.000000e+00> : vector<8x384xf32>
    %200 = tpu.matmul %198, %199, %cst_163 {dimension_numbers = #tpu.dot_dimension_numbers<[1], [0], [0], [1], [0, 0, 1, 1], [], []>} : vector<8x8xbf16>, vector<8x384xbf16>, vector<8x384xf32> -> vector<8x384xf32>
    %c28 = arith.constant 28 : index
    %c0_164 = arith.constant 0 : index
    %c0_165 = arith.constant 0 : index
    %201 = vector.load %arg2[%c28, %c0_164, %c0_165] : memref<36x8x8xbf16, #tpu.memory_space<vmem>>, vector<1x8x8xbf16>
    %202 = vector.shape_cast %201 : vector<1x8x8xbf16> to vector<8x8xbf16>
    %c0_166 = arith.constant 0 : index
    %c110_167 = arith.constant 110 : index
    %203 = vector.load %arg7[%c0_166, %c110_167] : memref<8x531xbf16, #tpu.memory_space<vmem>>, vector<8x384xbf16>
    %cst_168 = arith.constant dense<0.000000e+00> : vector<8x384xf32>
    %204 = tpu.matmul %202, %203, %cst_168 {dimension_numbers = #tpu.dot_dimension_numbers<[1], [0], [0], [1], [0, 0, 1, 1], [], []>} : vector<8x8xbf16>, vector<8x384xbf16>, vector<8x384xf32> -> vector<8x384xf32>
    %205 = arith.addf %200, %204 : vector<8x384xf32>
    %c29 = arith.constant 29 : index
    %c0_169 = arith.constant 0 : index
    %c0_170 = arith.constant 0 : index
    %206 = vector.load %arg2[%c29, %c0_169, %c0_170] : memref<36x8x8xbf16, #tpu.memory_space<vmem>>, vector<1x8x8xbf16>
    %207 = vector.shape_cast %206 : vector<1x8x8xbf16> to vector<8x8xbf16>
    %c0_171 = arith.constant 0 : index
    %c111_172 = arith.constant 111 : index
    %208 = vector.load %arg7[%c0_171, %c111_172] : memref<8x531xbf16, #tpu.memory_space<vmem>>, vector<8x384xbf16>
    %cst_173 = arith.constant dense<0.000000e+00> : vector<8x384xf32>
    %209 = tpu.matmul %207, %208, %cst_173 {dimension_numbers = #tpu.dot_dimension_numbers<[1], [0], [0], [1], [0, 0, 1, 1], [], []>} : vector<8x8xbf16>, vector<8x384xbf16>, vector<8x384xf32> -> vector<8x384xf32>
    %210 = arith.addf %205, %209 : vector<8x384xf32>
    %c30 = arith.constant 30 : index
    %c0_174 = arith.constant 0 : index
    %c0_175 = arith.constant 0 : index
    %211 = vector.load %arg2[%c30, %c0_174, %c0_175] : memref<36x8x8xbf16, #tpu.memory_space<vmem>>, vector<1x8x8xbf16>
    %212 = vector.shape_cast %211 : vector<1x8x8xbf16> to vector<8x8xbf16>
    %c0_176 = arith.constant 0 : index
    %c127_177 = arith.constant 127 : index
    %213 = vector.load %arg7[%c0_176, %c127_177] : memref<8x531xbf16, #tpu.memory_space<vmem>>, vector<8x384xbf16>
    %cst_178 = arith.constant dense<0.000000e+00> : vector<8x384xf32>
    %214 = tpu.matmul %212, %213, %cst_178 {dimension_numbers = #tpu.dot_dimension_numbers<[1], [0], [0], [1], [0, 0, 1, 1], [], []>} : vector<8x8xbf16>, vector<8x384xbf16>, vector<8x384xf32> -> vector<8x384xf32>
    %215 = arith.addf %210, %214 : vector<8x384xf32>
    %c31 = arith.constant 31 : index
    %c0_179 = arith.constant 0 : index
    %c0_180 = arith.constant 0 : index
    %216 = vector.load %arg2[%c31, %c0_179, %c0_180] : memref<36x8x8xbf16, #tpu.memory_space<vmem>>, vector<1x8x8xbf16>
    %217 = vector.shape_cast %216 : vector<1x8x8xbf16> to vector<8x8xbf16>
    %c0_181 = arith.constant 0 : index
    %c128_182 = arith.constant 128 : index
    %218 = vector.load %arg7[%c0_181, %c128_182] : memref<8x531xbf16, #tpu.memory_space<vmem>>, vector<8x384xbf16>
    %cst_183 = arith.constant dense<0.000000e+00> : vector<8x384xf32>
    %219 = tpu.matmul %217, %218, %cst_183 {dimension_numbers = #tpu.dot_dimension_numbers<[1], [0], [0], [1], [0, 0, 1, 1], [], []>} : vector<8x8xbf16>, vector<8x384xbf16>, vector<8x384xf32> -> vector<8x384xf32>
    %220 = arith.addf %215, %219 : vector<8x384xf32>
    %c32 = arith.constant 32 : index
    %c0_184 = arith.constant 0 : index
    %c0_185 = arith.constant 0 : index
    %221 = vector.load %arg2[%c32, %c0_184, %c0_185] : memref<36x8x8xbf16, #tpu.memory_space<vmem>>, vector<1x8x8xbf16>
    %222 = vector.shape_cast %221 : vector<1x8x8xbf16> to vector<8x8xbf16>
    %c0_186 = arith.constant 0 : index
    %c129_187 = arith.constant 129 : index
    %223 = vector.load %arg7[%c0_186, %c129_187] : memref<8x531xbf16, #tpu.memory_space<vmem>>, vector<8x384xbf16>
    %cst_188 = arith.constant dense<0.000000e+00> : vector<8x384xf32>
    %224 = tpu.matmul %222, %223, %cst_188 {dimension_numbers = #tpu.dot_dimension_numbers<[1], [0], [0], [1], [0, 0, 1, 1], [], []>} : vector<8x8xbf16>, vector<8x384xbf16>, vector<8x384xf32> -> vector<8x384xf32>
    %225 = arith.addf %220, %224 : vector<8x384xf32>
    %c33 = arith.constant 33 : index
    %c0_189 = arith.constant 0 : index
    %c0_190 = arith.constant 0 : index
    %226 = vector.load %arg2[%c33, %c0_189, %c0_190] : memref<36x8x8xbf16, #tpu.memory_space<vmem>>, vector<1x8x8xbf16>
    %227 = vector.shape_cast %226 : vector<1x8x8xbf16> to vector<8x8xbf16>
    %c0_191 = arith.constant 0 : index
    %c145_192 = arith.constant 145 : index
    %228 = vector.load %arg7[%c0_191, %c145_192] : memref<8x531xbf16, #tpu.memory_space<vmem>>, vector<8x384xbf16>
    %cst_193 = arith.constant dense<0.000000e+00> : vector<8x384xf32>
    %229 = tpu.matmul %227, %228, %cst_193 {dimension_numbers = #tpu.dot_dimension_numbers<[1], [0], [0], [1], [0, 0, 1, 1], [], []>} : vector<8x8xbf16>, vector<8x384xbf16>, vector<8x384xf32> -> vector<8x384xf32>
    %230 = arith.addf %225, %229 : vector<8x384xf32>
    %c34 = arith.constant 34 : index
    %c0_194 = arith.constant 0 : index
    %c0_195 = arith.constant 0 : index
    %231 = vector.load %arg2[%c34, %c0_194, %c0_195] : memref<36x8x8xbf16, #tpu.memory_space<vmem>>, vector<1x8x8xbf16>
    %232 = vector.shape_cast %231 : vector<1x8x8xbf16> to vector<8x8xbf16>
    %c0_196 = arith.constant 0 : index
    %c146_197 = arith.constant 146 : index
    %233 = vector.load %arg7[%c0_196, %c146_197] : memref<8x531xbf16, #tpu.memory_space<vmem>>, vector<8x384xbf16>
    %cst_198 = arith.constant dense<0.000000e+00> : vector<8x384xf32>
    %234 = tpu.matmul %232, %233, %cst_198 {dimension_numbers = #tpu.dot_dimension_numbers<[1], [0], [0], [1], [0, 0, 1, 1], [], []>} : vector<8x8xbf16>, vector<8x384xbf16>, vector<8x384xf32> -> vector<8x384xf32>
    %235 = arith.addf %230, %234 : vector<8x384xf32>
    %c35 = arith.constant 35 : index
    %c0_199 = arith.constant 0 : index
    %c0_200 = arith.constant 0 : index
    %236 = vector.load %arg2[%c35, %c0_199, %c0_200] : memref<36x8x8xbf16, #tpu.memory_space<vmem>>, vector<1x8x8xbf16>
    %237 = vector.shape_cast %236 : vector<1x8x8xbf16> to vector<8x8xbf16>
    %c0_201 = arith.constant 0 : index
    %c147_202 = arith.constant 147 : index
    %238 = vector.load %arg7[%c0_201, %c147_202] : memref<8x531xbf16, #tpu.memory_space<vmem>>, vector<8x384xbf16>
    %cst_203 = arith.constant dense<0.000000e+00> : vector<8x384xf32>
    %239 = tpu.matmul %237, %238, %cst_203 {dimension_numbers = #tpu.dot_dimension_numbers<[1], [0], [0], [1], [0, 0, 1, 1], [], []>} : vector<8x8xbf16>, vector<8x384xbf16>, vector<8x384xf32> -> vector<8x384xf32>
    %240 = arith.addf %235, %239 : vector<8x384xf32>
    %c3_204 = arith.constant 3 : index
    %c0_205 = arith.constant 0 : index
    %c0_206 = arith.constant 0 : index
    %241 = vector.load %arg3[%c3_204, %c0_205, %c0_206] : memref<4x8x1xf32, #tpu.memory_space<vmem>>, vector<1x8x1xf32>
    %242 = vector.shape_cast %241 : vector<1x8x1xf32> to vector<8x1xf32>
    %243 = vector.broadcast %242 : vector<8x1xf32> to vector<8x384xf32>
    %244 = arith.addf %240, %243 : vector<8x384xf32>
    %cst_207 = arith.constant 0.000000e+00 : f32
    %245 = vector.broadcast %cst_207 : f32 to vector<8x384xf32>
    %246 = arith.maximumf %244, %245 : vector<8x384xf32>
    %cst_208 = arith.constant 0.000000e+00 : f32
    %247 = vector.shape_cast %28 : vector<1x384xi1> to vector<1x384xi1>
    %248 = vector.broadcast %247 : vector<1x384xi1> to vector<8x384xi1>
    %249 = vector.broadcast %cst_208 : f32 to vector<8x384xf32>
    %250 = arith.select %248, %246, %249 : vector<8x384xi1>, vector<8x384xf32>
    %251 = arith.truncf %250 : vector<8x384xf32> to vector<8x384xbf16>
    %c0_209 = arith.constant 0 : index
    %c128_210 = arith.constant 128 : index
    %252 = vector.load %arg7[%c0_209, %c128_210] : memref<8x531xbf16, #tpu.memory_space<vmem>>, vector<8x384xbf16>
    tpu.vector_store %arg7[%c0_209, %c128_210], %251 {strides = array<i32>} : memref<8x531xbf16, #tpu.memory_space<vmem>>, vector<8x384xbf16>,
    %c0_211 = arith.constant 0 : index
    %c0_212 = arith.constant 0 : index
    %c0_213 = arith.constant 0 : index
    %253 = vector.load %arg4[%c0_211, %c0_212, %c0_213] : memref<9x16x8xbf16, #tpu.memory_space<vmem>>, vector<1x16x8xbf16>
    %254 = vector.shape_cast %253 : vector<1x16x8xbf16> to vector<16x8xbf16>
    %c0_214 = arith.constant 0 : index
    %c109_215 = arith.constant 109 : index
    %255 = vector.load %arg7[%c0_214, %c109_215] : memref<8x531xbf16, #tpu.memory_space<vmem>>, vector<8x384xbf16>
    %cst_216 = arith.constant dense<0.000000e+00> : vector<16x384xf32>
    %256 = tpu.matmul %254, %255, %cst_216 {dimension_numbers = #tpu.dot_dimension_numbers<[1], [0], [0], [1], [0, 0, 1, 1], [], []>} : vector<16x8xbf16>, vector<8x384xbf16>, vector<16x384xf32> -> vector<16x384xf32>
    %c1_217 = arith.constant 1 : index
    %c0_218 = arith.constant 0 : index
    %c0_219 = arith.constant 0 : index
    %257 = vector.load %arg4[%c1_217, %c0_218, %c0_219] : memref<9x16x8xbf16, #tpu.memory_space<vmem>>, vector<1x16x8xbf16>
    %258 = vector.shape_cast %257 : vector<1x16x8xbf16> to vector<16x8xbf16>
    %c0_220 = arith.constant 0 : index
    %c110_221 = arith.constant 110 : index
    %259 = vector.load %arg7[%c0_220, %c110_221] : memref<8x531xbf16, #tpu.memory_space<vmem>>, vector<8x384xbf16>
    %cst_222 = arith.constant dense<0.000000e+00> : vector<16x384xf32>
    %260 = tpu.matmul %258, %259, %cst_222 {dimension_numbers = #tpu.dot_dimension_numbers<[1], [0], [0], [1], [0, 0, 1, 1], [], []>} : vector<16x8xbf16>, vector<8x384xbf16>, vector<16x384xf32> -> vector<16x384xf32>
    %261 = arith.addf %256, %260 : vector<16x384xf32>
    %c2_223 = arith.constant 2 : index
    %c0_224 = arith.constant 0 : index
    %c0_225 = arith.constant 0 : index
    %262 = vector.load %arg4[%c2_223, %c0_224, %c0_225] : memref<9x16x8xbf16, #tpu.memory_space<vmem>>, vector<1x16x8xbf16>
    %263 = vector.shape_cast %262 : vector<1x16x8xbf16> to vector<16x8xbf16>
    %c0_226 = arith.constant 0 : index
    %c111_227 = arith.constant 111 : index
    %264 = vector.load %arg7[%c0_226, %c111_227] : memref<8x531xbf16, #tpu.memory_space<vmem>>, vector<8x384xbf16>
    %cst_228 = arith.constant dense<0.000000e+00> : vector<16x384xf32>
    %265 = tpu.matmul %263, %264, %cst_228 {dimension_numbers = #tpu.dot_dimension_numbers<[1], [0], [0], [1], [0, 0, 1, 1], [], []>} : vector<16x8xbf16>, vector<8x384xbf16>, vector<16x384xf32> -> vector<16x384xf32>
    %266 = arith.addf %261, %265 : vector<16x384xf32>
    %c3_229 = arith.constant 3 : index
    %c0_230 = arith.constant 0 : index
    %c0_231 = arith.constant 0 : index
    %267 = vector.load %arg4[%c3_229, %c0_230, %c0_231] : memref<9x16x8xbf16, #tpu.memory_space<vmem>>, vector<1x16x8xbf16>
    %268 = vector.shape_cast %267 : vector<1x16x8xbf16> to vector<16x8xbf16>
    %c0_232 = arith.constant 0 : index
    %c127_233 = arith.constant 127 : index
    %269 = vector.load %arg7[%c0_232, %c127_233] : memref<8x531xbf16, #tpu.memory_space<vmem>>, vector<8x384xbf16>
    %cst_234 = arith.constant dense<0.000000e+00> : vector<16x384xf32>
    %270 = tpu.matmul %268, %269, %cst_234 {dimension_numbers = #tpu.dot_dimension_numbers<[1], [0], [0], [1], [0, 0, 1, 1], [], []>} : vector<16x8xbf16>, vector<8x384xbf16>, vector<16x384xf32> -> vector<16x384xf32>
    %271 = arith.addf %266, %270 : vector<16x384xf32>
    %c4_235 = arith.constant 4 : index
    %c0_236 = arith.constant 0 : index
    %c0_237 = arith.constant 0 : index
    %272 = vector.load %arg4[%c4_235, %c0_236, %c0_237] : memref<9x16x8xbf16, #tpu.memory_space<vmem>>, vector<1x16x8xbf16>
    %273 = vector.shape_cast %272 : vector<1x16x8xbf16> to vector<16x8xbf16>
    %c0_238 = arith.constant 0 : index
    %c128_239 = arith.constant 128 : index
    %274 = vector.load %arg7[%c0_238, %c128_239] : memref<8x531xbf16, #tpu.memory_space<vmem>>, vector<8x384xbf16>
    %cst_240 = arith.constant dense<0.000000e+00> : vector<16x384xf32>
    %275 = tpu.matmul %273, %274, %cst_240 {dimension_numbers = #tpu.dot_dimension_numbers<[1], [0], [0], [1], [0, 0, 1, 1], [], []>} : vector<16x8xbf16>, vector<8x384xbf16>, vector<16x384xf32> -> vector<16x384xf32>
    %276 = arith.addf %271, %275 : vector<16x384xf32>
    %c5_241 = arith.constant 5 : index
    %c0_242 = arith.constant 0 : index
    %c0_243 = arith.constant 0 : index
    %277 = vector.load %arg4[%c5_241, %c0_242, %c0_243] : memref<9x16x8xbf16, #tpu.memory_space<vmem>>, vector<1x16x8xbf16>
    %278 = vector.shape_cast %277 : vector<1x16x8xbf16> to vector<16x8xbf16>
    %c0_244 = arith.constant 0 : index
    %c129_245 = arith.constant 129 : index
    %279 = vector.load %arg7[%c0_244, %c129_245] : memref<8x531xbf16, #tpu.memory_space<vmem>>, vector<8x384xbf16>
    %cst_246 = arith.constant dense<0.000000e+00> : vector<16x384xf32>
    %280 = tpu.matmul %278, %279, %cst_246 {dimension_numbers = #tpu.dot_dimension_numbers<[1], [0], [0], [1], [0, 0, 1, 1], [], []>} : vector<16x8xbf16>, vector<8x384xbf16>, vector<16x384xf32> -> vector<16x384xf32>
    %281 = arith.addf %276, %280 : vector<16x384xf32>
    %c6_247 = arith.constant 6 : index
    %c0_248 = arith.constant 0 : index
    %c0_249 = arith.constant 0 : index
    %282 = vector.load %arg4[%c6_247, %c0_248, %c0_249] : memref<9x16x8xbf16, #tpu.memory_space<vmem>>, vector<1x16x8xbf16>
    %283 = vector.shape_cast %282 : vector<1x16x8xbf16> to vector<16x8xbf16>
    %c0_250 = arith.constant 0 : index
    %c145_251 = arith.constant 145 : index
    %284 = vector.load %arg7[%c0_250, %c145_251] : memref<8x531xbf16, #tpu.memory_space<vmem>>, vector<8x384xbf16>
    %cst_252 = arith.constant dense<0.000000e+00> : vector<16x384xf32>
    %285 = tpu.matmul %283, %284, %cst_252 {dimension_numbers = #tpu.dot_dimension_numbers<[1], [0], [0], [1], [0, 0, 1, 1], [], []>} : vector<16x8xbf16>, vector<8x384xbf16>, vector<16x384xf32> -> vector<16x384xf32>
    %286 = arith.addf %281, %285 : vector<16x384xf32>
    %c7_253 = arith.constant 7 : index
    %c0_254 = arith.constant 0 : index
    %c0_255 = arith.constant 0 : index
    %287 = vector.load %arg4[%c7_253, %c0_254, %c0_255] : memref<9x16x8xbf16, #tpu.memory_space<vmem>>, vector<1x16x8xbf16>
    %288 = vector.shape_cast %287 : vector<1x16x8xbf16> to vector<16x8xbf16>
    %c0_256 = arith.constant 0 : index
    %c146_257 = arith.constant 146 : index
    %289 = vector.load %arg7[%c0_256, %c146_257] : memref<8x531xbf16, #tpu.memory_space<vmem>>, vector<8x384xbf16>
    %cst_258 = arith.constant dense<0.000000e+00> : vector<16x384xf32>
    %290 = tpu.matmul %288, %289, %cst_258 {dimension_numbers = #tpu.dot_dimension_numbers<[1], [0], [0], [1], [0, 0, 1, 1], [], []>} : vector<16x8xbf16>, vector<8x384xbf16>, vector<16x384xf32> -> vector<16x384xf32>
    %291 = arith.addf %286, %290 : vector<16x384xf32>
    %c8_259 = arith.constant 8 : index
    %c0_260 = arith.constant 0 : index
    %c0_261 = arith.constant 0 : index
    %292 = vector.load %arg4[%c8_259, %c0_260, %c0_261] : memref<9x16x8xbf16, #tpu.memory_space<vmem>>, vector<1x16x8xbf16>
    %293 = vector.shape_cast %292 : vector<1x16x8xbf16> to vector<16x8xbf16>
    %c0_262 = arith.constant 0 : index
    %c147_263 = arith.constant 147 : index
    %294 = vector.load %arg7[%c0_262, %c147_263] : memref<8x531xbf16, #tpu.memory_space<vmem>>, vector<8x384xbf16>
    %cst_264 = arith.constant dense<0.000000e+00> : vector<16x384xf32>
    %295 = tpu.matmul %293, %294, %cst_264 {dimension_numbers = #tpu.dot_dimension_numbers<[1], [0], [0], [1], [0, 0, 1, 1], [], []>} : vector<16x8xbf16>, vector<8x384xbf16>, vector<16x384xf32> -> vector<16x384xf32>
    %296 = arith.addf %291, %295 : vector<16x384xf32>
    %c0_265 = arith.constant 0 : index
    %c0_266 = arith.constant 0 : index
    %297 = vector.load %arg5[%c0_265, %c0_266] : memref<16x1xf32, #tpu.memory_space<vmem>>, vector<16x1xf32>
    %298 = vector.broadcast %297 : vector<16x1xf32> to vector<16x384xf32>
    %299 = arith.addf %296, %298 : vector<16x384xf32>
    %c0_267 = arith.constant 0 : index
    %c0_268 = arith.constant 0 : index
    %c0_269 = arith.constant 0 : index
    %300 = vector.load %arg6[%c0_267, %c0_268, %c0_269] : memref<1x16x384xf32, #tpu.memory_space<vmem>>, vector<1x16x384xf32>
    %301 = vector.shape_cast %300 : vector<1x16x384xf32> to vector<16x384xf32>
    %302 = vector.shape_cast %299 : vector<16x384xf32> to vector<1x16x384xf32>
    tpu.vector_store %arg6[%c0_267, %c0_268, %c0_269], %302 {strides = array<i32>} : memref<1x16x384xf32, #tpu.memory_space<vmem>>, vector<1x16x384xf32>,
    return
  }
  func.func @transform_0(%arg0: i32) -> (i32, i32, i32) {
    %c0_i32 = arith.constant 0 : i32
    %c0_i32_0 = arith.constant 0 : i32
    %c0_i32_1 = arith.constant 0 : i32
    return %arg0, %c0_i32, %c0_i32_0 : i32, i32, i32
  }
  func.func @transform_1(%arg0: i32) -> (i32, i32, i32) {
    %c0_i32 = arith.constant 0 : i32
    %c0_i32_0 = arith.constant 0 : i32
    %c0_i32_1 = arith.constant 0 : i32
    %c0_i32_2 = arith.constant 0 : i32
    return %c0_i32, %c0_i32_0, %c0_i32_1 : i32, i32, i32
  }
  func.func @transform_2(%arg0: i32) -> (i32, i32, i32) {
    %c0_i32 = arith.constant 0 : i32
    %c0_i32_0 = arith.constant 0 : i32
    %c0_i32_1 = arith.constant 0 : i32
    %c0_i32_2 = arith.constant 0 : i32
    return %c0_i32, %c0_i32_0, %c0_i32_1 : i32, i32, i32
  }
  func.func @transform_3(%arg0: i32) -> (i32, i32, i32) {
    %c0_i32 = arith.constant 0 : i32
    %c0_i32_0 = arith.constant 0 : i32
    %c0_i32_1 = arith.constant 0 : i32
    %c0_i32_2 = arith.constant 0 : i32
    return %c0_i32, %c0_i32_0, %c0_i32_1 : i32, i32, i32
  }
  func.func @transform_4(%arg0: i32) -> (i32, i32) {
    %c0_i32 = arith.constant 0 : i32
    %c0_i32_0 = arith.constant 0 : i32
    %c0_i32_1 = arith.constant 0 : i32
    return %c0_i32, %c0_i32_0 : i32, i32
  }
  func.func @transform_5(%arg0: i32) -> (i32, i32, i32) {
    %c0_i32 = arith.constant 0 : i32
    %c0_i32_0 = arith.constant 0 : i32
    %c0_i32_1 = arith.constant 0 : i32
    return %arg0, %c0_i32, %c0_i32_0 : i32, i32, i32
  }
}

</mosaic_0001>

<bundles_post_ra>
// kernel: tpu_custom_call.1
= control target key start
LH: loop header
LB: loop body
LE: loop exit
PB: predicated region body
PF: predicated region fallthrough
CT: control target
= control target key end

     0   :  { %10 = vsyncpa [#allocation4], 0  ;;  %s7607_s0 = inlined_call_operand.vmem [shape: bf16[2,8,384], index: 0, kind: input, shape index: {}]   ;;  %s7608_s1 = inlined_call_operand.vmem [shape: bf16[36,8,8], index: 1, kind: input, shape index: {}]   ;;  %s7609_s2 = inlined_call_operand.vmem [shape: f32[4,8,1], index: 2, kind: input, shape index: {}]   ;;  %s7610_s3 = inlined_call_operand.vmem [shape: bf16[9,16,8], index: 3, kind: input, shape index: {}]   ;;  %s7611_s4 = inlined_call_operand.vmem [shape: f32[16,1], index: 4, kind: input, shape index: {}]   ;;  %s7612_s5 = inlined_call_operand.hbm [shape: f32[2,16,384], index: 5, kind: output, shape index: {}]  }
   0x1   :  { %12 = vsyncpa [#allocation4 + $0x1], 0  ;;  %s6515_s18 = smov 0   ;;  %s6517_s19 = smov 0  }
   0x2   :  { %s6519_s20 = smov 0   ;;  %s6521_s21 = smov 0  }
   0x3 LB: > { %s6536_s22 = sadd.s32 4294967295, %s6469_s21   ;;  %s5621_s23 = sadd.s32 4294967294, %s6469_s21   ;;  %s6469_s21 = sphi %s6521_s21, %s7680_s21   ;;  %s6465_s20 = sphi %s6519_s20, %s7679_s20   ;;  %s6461_s19 = sphi %s6517_s19, %s7678_s19   ;;  %s6457_s18 = sphi %s6515_s18, %s7677_s18  }
   0x4   : > { %s6540_s24 = sadd.s32 1, %s6469_s21   ;;  %s135_s25 = sadd.s32 1, %s6465_s20 }
   0x5   : > { %s132_s26 = ssub.s32 %s6469_s21, %s6540_s24  ;;  %p145_p0 = scmp.ne.s32.totalorder %s6465_s20, %s6461_s19 }
   0x6   : > { %p133_p1 = scmp.eq.s32.totalorder %s132_s26, 0  ;;  %p146_p2 = scmp.eq.s32.totalorder %s6536_s22, 1 }
   0x7   : > { %p151_p3 = scmp.ne.s32.totalorder %s6461_s19, %s6457_s18  ;;  %p152_p4 = scmp.eq.s32.totalorder %s5621_s23, 1 }
   0x8   : > { %s6551_s27 = scalar_select %p133_p1, %s6465_s20, %s135_s25  }
   0x9   : > { %p6553_p5 = por %p146_p2, %p145_p0  ;;  %p6557_p6 = por %p152_p4, %p151_p3 }
   0xa   : > { %p5624_p7 = scmp.ge.s32.totalorder %s6469_s21, 1  ;;  %p190_p8 = scmp.lt.s32.totalorder %s6469_s21, 3 }
   0xc   : > { %p191_p9 = pnand %p5624_p7, %p190_p8 }
   0xd   : > { %p218_p10 = scmp.lt.s32.totalorder (!%p191_p9), %s6536_s22, 1  ;;  %vm225_vm0 = vcmask (!%p191_p9), 150528   ;;  %v6471_v0 = vmov (!%p191_p9), 0   ;;  %v6472_v3 = vmov (!%p191_p9), 0.0   ;;  %vm6473_vm1 = vmmov (!%p191_p9), 0   ;;  %s6474_s10 = smov (!%p191_p9), 18  }
   0xe   : > { %194 = sbr.rel (%p191_p9) target bundleno = 2169 (0x879), region = 40  ;;  %224 = vst [vmem:[#allocation2] sm:$0xf] (!%p191_p9), %v6471_v0  ;;  %226 = vst.msk [vmem:[#allocation2 + $0x10] sm:$0xf] (!%p191_p9), %vm225_vm0, %v6471_v0  ;;  %365 = vmatprep.mubr.bf16.mxu0 (!%p191_p9), %v6471_v0  ;;  %6351 = vset.pattern.permute.xlu0 (!%p191_p9), %v6471_v0  ;;  %s6475_s11 = smov (!%p191_p9), 19  }
   0xf   : > { %6352 = vset.pattern.permute.xlu1 (!%p191_p9), %v6471_v0  ;;  %5988 = vmatprep.subr.bf16.mxu1 (!%p191_p9), %v6472_v3  ;;  %s6476_s12 = smov (!%p191_p9), 17   ;;  %s6477_s13 = smov (!%p191_p9), 1   ;;  %v1299_v15 = vld [vmem:[%s7609_s2] sm:$0xff] (!%p191_p9)  ;;  %vm315_vm2 = vcmask (!%p191_p9), 146432   ;;  %vm323_vm3 = vcmask (!%p191_p9), 1043456   ;;  %vm319_vm4 = vcmask (!%p191_p9), 64512  }
  0x10   : > { %5990 = vmatprep.mubr.msk.bf16.mxu1 (!%p191_p9), %vm6473_vm1, %v6472_v3  ;;  %s6478_s14 = smov (!%p191_p9), 127   ;;  %s6479_s15 = smov (!%p191_p9), 111   ;;  %v5626_v25 = vld [vmem:[%s7608_s1 + $0x4] sm:$0xf] (!%p191_p9)  ;;  %vm422_vm5 = vcmask (!%p191_p9), 154624   ;;  %vm529_vm6 = vcmask (!%p191_p9), 138240  }
  0x11   : > { %s6480_s16 = smov (!%p191_p9), 110   ;;  %s6481_s17 = smov (!%p191_p9), 109   ;;  %v292_v35 = vld [vmem:[%s7608_s1] sm:$0xf] (!%p191_p9)  ;;  %v5637_v45 = vld [vmem:[%s7608_s1 + $0x8] sm:$0xf] (!%p191_p9) }
  0x12   : > { %vm639_vm7 = vcmask (!%p191_p9), 7168   ;;  %v5641_v56 = vld [vmem:[%s7608_s1 + $0xc] sm:$0xf] (!%p191_p9)  ;;  %vm7616_vm8 = vcmask (!%p191_p9), 1039360   ;;  %vm7615_vm9 = vcmask (!%p191_p9), 908288   ;;  %vm7614_vm10 = vcmask (!%p191_p9), 900096  }
  0x13   : > { %vm7613_vm11 = vcmask (!%p191_p9), 891904   ;;  %s6298_s26 = smul.u32 (!%p191_p9), 768, %s6536_s22 }
  0x15   : > { %s219_s30 = scalar_select %p218_p10, %s6536_s22, 1 }
  0x16   : > { %s7562_s7 = scalar_lea.hbm %s7612_s5, %s6298_s26 }
  0x17   : > { %s6291_s6 = smul.u32 12, %s219_s30 }
  0x19   : > { %s222_s9 = scalar_lea.vmem %s7607_s0, %s6291_s6 }
  0x1a   : > { %v227_v1 = vld [vmem:[%s222_s9] sm:$0xff]  ;;  %v228_v2 = vld [vmem:[%s222_s9 + $0x8] sm:$0xf]  ;;  %s6482_s9 = smov [#allocation3]  }
  0x1b   : > { %229 = vst [vmem:[#allocation2 + $0x4] sm:$0xff] %v227_v1  ;;  %230 = vst [vmem:[#allocation2 + $0xc] sm:$0xf] %v228_v2  ;;  %v6592_v10 = vcombine.low %v227_v1, %v227_v1  ;;  %v6594_v11 = vcombine.high %v227_v1, %v227_v1 }
  0x1d   : > { %v755_v58 = vsel %vm323_vm3, %v6592_v10, 0 }
  0x22   : > { %v294_v4 = vld [vmem:[#allocation2 + $0x8] sm:$0xff]  ;;  %v293_v5 = vld [vmem:[#allocation2] sm:$0xff] }
  0x23   : > { %v5629_v6 = vcombine.low %v294_v4, %v294_v4  ;;  %v5627_v7 = vcombine.low %v293_v5, %v293_v5  ;;  %v5630_v8 = vcombine.high %v294_v4, %v294_v4  ;;  %v5628_v9 = vcombine.high %v293_v5, %v293_v5  ;;  %v850_v12 = vld [vmem:[#allocation2 + $0xc] sm:$0xff] }
  0x24   : > { %v5655_v13 = vcombine.low %v850_v12, %v850_v12  ;;  %v5656_v14 = vcombine.high %v850_v12, %v850_v12  ;;  %v6361_v51 = vld [vmem:[#allocation2 + $0xc] ss:$0 sps:$4 sm:$0xff]   ;;  %v5645_v4 = vld [vmem:[%s7608_s1 + $0x10] sm:$0xf] }
  0x25   : > { %311 = vrot.lane.b32.xlu1 %v5629_v6, %s6474_s10  ;;  %307 = vrot.lane.b32.xlu0 %v5627_v7, %s6474_s10  ;;  %v761_v59 = vsel %vm323_vm3, %v6361_v51, 0 }
  0x29   : > { %313 = vrot.lane.b32.xlu1 %v5630_v8, %s6474_s10  ;;  %309 = vrot.lane.b32.xlu0 %v5628_v9, %s6474_s10 }
  0x2d   : > { %416 = vrot.lane.b32.xlu1 %v5628_v9, %s6475_s11  ;;  %414 = vrot.lane.b32.xlu0 %v5627_v7, %s6475_s11 }
  0x31   : > { %420 = vrot.lane.b32.xlu1 %v5630_v8, %s6475_s11  ;;  %418 = vrot.lane.b32.xlu0 %v5629_v6, %s6475_s11 }
  0x35   : > { %523 = vrot.lane.b32.xlu1 %v5628_v9, %s6476_s12  ;;  %521 = vrot.lane.b32.xlu0 %v5627_v7, %s6476_s12 }
  0x39   : > { %527 = vrot.lane.b32.xlu1 %v5630_v8, %s6476_s12  ;;  %525 = vrot.lane.b32.xlu0 %v5629_v6, %s6476_s12 }
  0x3d   : > { %633 = vrot.lane.b32.xlu1 %v5628_v9, %s6477_s13  ;;  %631 = vrot.lane.b32.xlu0 %v5627_v7, %s6477_s13 }
  0x41   : > { %637 = vrot.lane.b32.xlu1 %v5630_v8, %s6477_s13  ;;  %635 = vrot.lane.b32.xlu0 %v5629_v6, %s6477_s13 }
  0x45   : > { %861 = vrot.lane.b32.xlu0 %v6592_v10, %s6478_s14  ;;  %863 = vrot.lane.b32.xlu1 %v6594_v11, %s6478_s14 }
  0x49   : > { %865 = vrot.lane.b32.xlu0 %v5655_v13, %s6478_s14  ;;  %867 = vrot.lane.b32.xlu1 %v5656_v14, %s6478_s14 }
  0x4d   : > { %971 = vrot.lane.b32.xlu0 %v6592_v10, %s6479_s15  ;;  %973 = vrot.lane.b32.xlu1 %v6594_v11, %s6479_s15 }
  0x51   : > { %975 = vrot.lane.b32.xlu0 %v5655_v13, %s6479_s15  ;;  %977 = vrot.lane.b32.xlu1 %v5656_v14, %s6479_s15 }
  0x55   : > { %1081 = vrot.lane.b32.xlu0 %v6592_v10, %s6480_s16  ;;  %1083 = vrot.lane.b32.xlu1 %v6594_v11, %s6480_s16 }
  0x59   : > { %1085 = vrot.lane.b32.xlu0 %v5655_v13, %s6480_s16  ;;  %1087 = vrot.lane.b32.xlu1 %v5656_v14, %s6480_s16 }
  0x5d   : > { %1191 = vrot.lane.b32.xlu0 %v6592_v10, %s6481_s17  ;;  %1193 = vrot.lane.b32.xlu1 %v6594_v11, %s6481_s17 }
  0x61   : > { %1195 = vrot.lane.b32.xlu0 %v5655_v13, %s6481_s17  ;;  %1197 = vrot.lane.b32.xlu1 %v5656_v14, %s6481_s17  ;;  %v5652_v14 = vld [vmem:[%s7608_s1 + $0x14] sm:$0xf] }
  0x65   : > { %1302 = vperm.xlu0 %6351, %v1299_v15  }
  0x97   : > { %v312_v16 = vpop.permute.xlu1 %311  ;;  %v308_v17 = vpop.permute.xlu0 %307 }
  0x9b   : > { %v314_v18 = vpop.permute.xlu1 %313  ;;  %v310_v19 = vpop.permute.xlu0 %309 }
  0x9c   : > { %v317_v20 = vsel %vm315_vm2, %v310_v19, %v312_v16  ;;  %v316_v21 = vsel %vm315_vm2, %v308_v17, %v310_v19  ;;  %v318_v22 = vsel %vm315_vm2, %v312_v16, %v314_v18 }
  0x9d   : > { %5631 = vmatprep.subr.msk.bf16.mxu0 %vm323_vm3, %v317_v20  ;;  %v325_v23 = vsel %vm323_vm3, %v316_v21, 0  ;;  %v331_v24 = vsel %vm323_vm3, %v318_v22, 0 }
  0x9e   : > { %334 = vmatpush1.bf16.msra.mxu0 %v325_v23  ;;  %5989 = vmatpush3.bf16.msra.mxu1 %v331_v24  ;;  %v5660_v24 = vld [vmem:[%s7608_s1 + $0x18] sm:$0xf] }
  0x9f   : > { %v417_v26 = vpop.permute.xlu1 %416  ;;  %v415_v27 = vpop.permute.xlu0 %414  ;;  %5994 = vmatprep.subr.bf16.mxu1 %v6472_v3 }
  0xa0   : > { %v423_v28 = vsel %vm422_vm5, %v415_v27, %v417_v26 }
  0xa1   : > { %5632 = vmatmul.mubr.msk.bf16.vlgmr.msra.gmra.mrb[0].mxu0 %vm319_vm4, %v5626_v25  ;;  %5991 = vmatmul.mubr.msk.bf16.vlgmr.msra.gmra.mrb[0].mxu1 %vm319_vm4, %v5626_v25  ;;  %v430_v33 = vsel %vm323_vm3, %v423_v28, 0 }
  0xa2   : > { %470 = vmatprep.mubr.bf16.mxu0 %v6471_v0  ;;  %5996 = vmatprep.mubr.msk.bf16.mxu1 %vm6473_vm1, %v6472_v3 }
  0xa3   : > { %v421_v29 = vpop.permute.xlu1 %420  ;;  %v419_v30 = vpop.permute.xlu0 %418 }
  0xa4   : > { %v425_v31 = vsel %vm422_vm5, %v419_v30, %v421_v29  ;;  %v424_v32 = vsel %vm422_vm5, %v417_v26, %v419_v30 }
  0xa5   : > { %5634 = vmatprep.subr.msk.bf16.mxu0 %vm323_vm3, %v424_v32  ;;  %v436_v34 = vsel %vm323_vm3, %v425_v31, 0 }
  0xa6   : > { %439 = vmatpush1.bf16.msra.mxu0 %v430_v33  ;;  %5995 = vmatpush3.bf16.msra.mxu1 %v436_v34  ;;  %v5664_v34 = vld [vmem:[%s7608_s1 + $0x1c] sm:$0xf] }
  0xa7   : > { %v524_v36 = vpop.permute.xlu1 %523  ;;  %v522_v37 = vpop.permute.xlu0 %521  ;;  %6000 = vmatprep.subr.bf16.mxu1 %v6472_v3 }
  0xa8   : > { %v530_v38 = vsel %vm529_vm6, %v522_v37, %v524_v36  ;;  %v5668_v37 = vld [vmem:[%s7608_s1 + $0x20] sm:$0xf] }
  0xa9   : > { %5635 = vmatmul.mubr.msk.bf16.vlgmr.msra.gmra.mrb[4].mxu0 %vm319_vm4, %v292_v35  ;;  %5997 = vmatmul.mubr.msk.bf16.vlgmr.msra.gmra.mrb[4].mxu1 %vm319_vm4, %v292_v35  ;;  %v537_v43 = vsel %vm323_vm3, %v530_v38, 0 }
  0xaa   : > { %577 = vmatprep.mubr.bf16.mxu0 %v6471_v0  ;;  %6002 = vmatprep.mubr.msk.bf16.mxu1 %vm6473_vm1, %v6472_v3 }
  0xab   : > { %v528_v39 = vpop.permute.xlu1 %527  ;;  %v526_v40 = vpop.permute.xlu0 %525 }
  0xac   : > { %v532_v41 = vsel %vm529_vm6, %v526_v40, %v528_v39  ;;  %v531_v42 = vsel %vm529_vm6, %v524_v36, %v526_v40 }
  0xad   : > { %5638 = vmatprep.subr.msk.bf16.mxu0 %vm323_vm3, %v531_v42  ;;  %v543_v44 = vsel %vm323_vm3, %v532_v41, 0 }
  0xae   : > { %546 = vmatpush1.bf16.msra.mxu0 %v537_v43  ;;  %6001 = vmatpush3.bf16.msra.mxu1 %v543_v44 }
  0xaf   : > { %v634_v46 = vpop.permute.xlu1 %633  ;;  %v632_v47 = vpop.permute.xlu0 %631  ;;  %6006 = vmatprep.subr.bf16.mxu1 %v6472_v3 }
  0xb0   : > { %v640_v48 = vsel %vm639_vm7, %v632_v47, %v634_v46 }
  0xb1   : > { %5639 = vmatmul.mubr.msk.bf16.vlgmr.msra.gmra.mrb[8].mxu0 %vm319_vm4, %v5637_v45  ;;  %6003 = vmatmul.mubr.msk.bf16.vlgmr.msra.gmra.mrb[8].mxu1 %vm319_vm4, %v5637_v45  ;;  %v647_v54 = vsel %vm323_vm3, %v640_v48, 0 }
  0xb2   : > { %687 = vmatprep.mubr.bf16.mxu0 %v6471_v0  ;;  %6008 = vmatprep.mubr.msk.bf16.mxu1 %vm6473_vm1, %v6472_v3 }
  0xb3   : > { %v638_v49 = vpop.permute.xlu1 %637  ;;  %v636_v50 = vpop.permute.xlu0 %635 }
  0xb4   : > { %v642_v52 = vsel %vm639_vm7, %v636_v50, %v638_v49  ;;  %v641_v53 = vsel %vm639_vm7, %v634_v46, %v636_v50 }
  0xb5   : > { %5642 = vmatprep.subr.msk.bf16.mxu0 %vm323_vm3, %v641_v53  ;;  %v653_v55 = vsel %vm323_vm3, %v642_v52, 0 }
  0xb6   : > { %656 = vmatpush1.bf16.msra.mxu0 %v647_v54  ;;  %6007 = vmatpush3.bf16.msra.mxu1 %v653_v55 }
  0xb7   : > { %v862_v57 = vpop.permute.xlu0 %861  ;;  %5649 = vmatprep.subr.msk.bf16.mxu0 %vm323_vm3, %v6594_v11  ;;  %6012 = vmatprep.subr.bf16.mxu1 %v6472_v3  ;;  %v864_v60 = vpop.permute.xlu1 %863 }
  0xb8   : > { %v870_v63 = vsel %vm7616_vm8, %v862_v57, %v864_v60 }
  0xb9   : > { %5643 = vmatmul.mubr.msk.bf16.vlgmr.msra.gmra.mrb[12].mxu0 %vm319_vm4, %v5641_v56  ;;  %6009 = vmatmul.mubr.msk.bf16.vlgmr.msra.gmra.mrb[12].mxu1 %vm319_vm4, %v5641_v56  ;;  %v877_v5 = vsel %vm323_vm3, %v870_v63, 0 }
  0xba   : > { %764 = vmatpush1.bf16.msra.mxu0 %v755_v58  ;;  %6013 = vmatpush3.bf16.msra.mxu1 %v761_v59 }
  0xbb   : > { %v866_v61 = vpop.permute.xlu0 %865  ;;  %795 = vmatprep.mubr.bf16.mxu0 %v6471_v0  ;;  %6014 = vmatprep.mubr.msk.bf16.mxu1 %vm6473_vm1, %v6472_v3  ;;  %v868_v62 = vpop.permute.xlu1 %867 }
  0xbc   : > { %v871_v1 = vsel %vm7616_vm8, %v864_v60, %v866_v61  ;;  %v872_v2 = vsel %vm7616_vm8, %v866_v61, %v868_v62  ;;  %6018 = vmatprep.subr.bf16.mxu1 %v6472_v3 }
  0xbd   : > { %5657 = vmatprep.subr.msk.bf16.mxu0 %vm323_vm3, %v871_v1  ;;  %v883_v6 = vsel %vm323_vm3, %v872_v2, 0 }
  0xbf   : > { %v972_v7 = vpop.permute.xlu0 %971  ;;  %v974_v8 = vpop.permute.xlu1 %973 }
  0xc0   : > { %v980_v11 = vsel %vm7615_vm9, %v972_v7, %v974_v8 }
  0xc1   : > { %5650 = vmatmul.mubr.msk.bf16.vlgmr.msra.gmra.mrb[16].mxu0 %vm319_vm4, %v5645_v4  ;;  %6015 = vmatmul.mubr.msk.bf16.vlgmr.msra.gmra.mrb[16].mxu1 %vm319_vm4, %v5645_v4  ;;  %v987_v15 = vsel %vm323_vm3, %v980_v11, 0 }
  0xc2   : > { %886 = vmatpush1.bf16.msra.mxu0 %v877_v5  ;;  %6019 = vmatpush3.bf16.msra.mxu1 %v883_v6 }
  0xc3   : > { %v976_v9 = vpop.permute.xlu0 %975  ;;  %917 = vmatprep.mubr.bf16.mxu0 %v6471_v0  ;;  %6020 = vmatprep.mubr.msk.bf16.mxu1 %vm6473_vm1, %v6472_v3  ;;  %v978_v10 = vpop.permute.xlu1 %977 }
  0xc4   : > { %v981_v12 = vsel %vm7615_vm9, %v974_v8, %v976_v9  ;;  %v982_v13 = vsel %vm7615_vm9, %v976_v9, %v978_v10  ;;  %6024 = vmatprep.subr.bf16.mxu1 %v6472_v3  ;;  %v231_v8 = vlaneseq }
  0xc5   : > { %5661 = vmatprep.subr.msk.bf16.mxu0 %vm323_vm3, %v981_v12  ;;  %v993_v16 = vsel %vm323_vm3, %v982_v13, 0 }
  0xc7   : > { %v1082_v17 = vpop.permute.xlu0 %1081  ;;  %v1084_v18 = vpop.permute.xlu1 %1083 }
  0xc8   : > { %v1090_v21 = vsel %vm7614_vm10, %v1082_v17, %v1084_v18 }
  0xc9   : > { %5658 = vmatmul.mubr.msk.bf16.vlgmr.msra.gmra.mrb[20].mxu0 %vm319_vm4, %v5652_v14  ;;  %6021 = vmatmul.mubr.msk.bf16.vlgmr.msra.gmra.mrb[20].mxu1 %vm319_vm4, %v5652_v14  ;;  %v1097_v25 = vsel %vm323_vm3, %v1090_v21, 0 }
  0xca   : > { %996 = vmatpush1.bf16.msra.mxu0 %v987_v15  ;;  %6025 = vmatpush3.bf16.msra.mxu1 %v993_v16 }
  0xcb   : > { %v1086_v19 = vpop.permute.xlu0 %1085  ;;  %1027 = vmatprep.mubr.bf16.mxu0 %v6471_v0  ;;  %6026 = vmatprep.mubr.msk.bf16.mxu1 %vm6473_vm1, %v6472_v3  ;;  %v1088_v20 = vpop.permute.xlu1 %1087 }
  0xcc   : > { %v1091_v22 = vsel %vm7614_vm10, %v1084_v18, %v1086_v19  ;;  %v1092_v23 = vsel %vm7614_vm10, %v1086_v19, %v1088_v20  ;;  %6030 = vmatprep.subr.bf16.mxu1 %v6472_v3  ;;  %v232_v18 = vand.u32 127, %v231_v8 }
  0xcd   : > { %5665 = vmatprep.subr.msk.bf16.mxu0 %vm323_vm3, %v1091_v22  ;;  %v1103_v26 = vsel %vm323_vm3, %v1092_v23, 0 }
  0xce   : > { %v6757_v21 = vadd.s32 256, %v232_v18 }
  0xcf   : > { %v1192_v27 = vpop.permute.xlu0 %1191  ;;  %v1194_v28 = vpop.permute.xlu1 %1193 }
  0xd0   : > { %v1200_v31 = vsel %vm7613_vm11, %v1192_v27, %v1194_v28 }
  0xd1   : > { %5662 = vmatmul.mubr.msk.bf16.vlgmr.msra.gmra.mrb[24].mxu0 %vm319_vm4, %v5660_v24  ;;  %6027 = vmatmul.mubr.msk.bf16.vlgmr.msra.gmra.mrb[24].mxu1 %vm319_vm4, %v5660_v24  ;;  %v1207_v35 = vsel %vm323_vm3, %v1200_v31, 0  ;;  %v233_v31 = vadd.s32 128, %v232_v18 }
  0xd2   : > { %1106 = vmatpush1.bf16.msra.mxu0 %v1097_v25  ;;  %6031 = vmatpush3.bf16.msra.mxu1 %v1103_v26 }
  0xd3   : > { %v1196_v29 = vpop.permute.xlu0 %1195  ;;  %1137 = vmatprep.mubr.bf16.mxu0 %v6471_v0  ;;  %6032 = vmatprep.mubr.msk.bf16.mxu1 %vm6473_vm1, %v6472_v3  ;;  %v1198_v30 = vpop.permute.xlu1 %1197 }
  0xd4   : > { %v1201_v32 = vsel %vm7613_vm11, %v1194_v28, %v1196_v29  ;;  %v1202_v33 = vsel %vm7613_vm11, %v1196_v29, %v1198_v30  ;;  %6036 = vmatprep.subr.bf16.mxu1 %v6472_v3 }
  0xd5   : > { %5669 = vmatprep.subr.msk.bf16.mxu0 %vm323_vm3, %v1201_v32  ;;  %v1213_v36 = vsel %vm323_vm3, %v1202_v33, 0  ;;  %v6760_v32 = vmul.u32.u64.low 3817748708, %v6757_v21  ;;  %v6761_v33 = vmul.u32.u64.high 3817748708, %v6757_v21, %v6760_v32 }
  0xd9   : > { %5666 = vmatmul.mubr.msk.bf16.vlgmr.msra.gmra.mrb[28].mxu0 %vm319_vm4, %v5664_v34  ;;  %6033 = vmatmul.mubr.msk.bf16.vlgmr.msra.gmra.mrb[28].mxu1 %vm319_vm4, %v5664_v34 }
  0xda   : > { %1216 = vmatpush1.bf16.msra.mxu0 %v1207_v35  ;;  %6037 = vmatpush3.bf16.msra.mxu1 %v1213_v36  ;;  %v6763_v34 = vmul.u32.u64.low 3817748708, %v232_v18  ;;  %v6764_v35 = vmul.u32.u64.high 3817748708, %v232_v18, %v6763_v34 }
  0xdb   : > { %1247 = vmatprep.mubr.bf16.mxu0 %v6471_v0  ;;  %6038 = vmatprep.mubr.msk.bf16.mxu1 %vm6473_vm1, %v6472_v3 }
  0xdc   : > { %6042 = vmatprep.subr.bf16.mxu1 %v6472_v3 }
  0xe1   : > { %5670 = vmatmul.mubr.msk.bf16.vlgmr.msra.gmra.mrb[32].mxu0 %vm319_vm4, %v5668_v37  ;;  %6039 = vmatmul.mubr.msk.bf16.vlgmr.msra.gmra.mrb[32].mxu1 %vm319_vm4, %v5668_v37 }
  0xe2   : > { %1406 = vmatprep.mubr.bf16.mxu0 %v6471_v0  ;;  %6044 = vmatprep.mubr.msk.bf16.mxu1 %vm6473_vm1, %v6472_v3 }
 0x174   : > { %v367_v38 = vpop.f32.mrb[0].mxu0  ;;  %v408_v39 = vpop.f32.mrb[0].mxu1 }
 0x175   : > { %v369_v40 = vpop.f32.mrb[1].mxu0  ;;  %v5992_v41 = vpop.f32.mrb[1].mxu1 }
 0x176   : > { %v371_v42 = vpop.f32.mrb[2].mxu0  ;;  %v411_v43 = vpop.f32.mrb[2].mxu1 }
 0x177   : > { %v372_v44 = vpop.f32.mrb[3].mxu0  ;;  %v5993_v45 = vpop.f32.mrb[3].mxu1 }
 0x17c   : > { %v472_v46 = vpop.f32.mrb[4].mxu0  ;;  %v513_v47 = vpop.f32.mrb[4].mxu1 }
 0x17d   : > { %v473_v48 = vadd.f32 %v472_v46, %v367_v38  ;;  %v514_v49 = vadd.f32 %v513_v47, %v408_v39  ;;  %v474_v50 = vpop.f32.mrb[5].mxu0  ;;  %v5998_v51 = vpop.f32.mrb[5].mxu1  ;;  %v6766_v38 = vmul.u32.u64.low 3817748708, %v233_v31  ;;  %v6767_v39 = vmul.u32.u64.high 3817748708, %v233_v31, %v6766_v38 }
 0x17e   : > { %v475_v52 = vadd.f32 %v474_v50, %v369_v40  ;;  %v476_v53 = vpop.f32.mrb[6].mxu0  ;;  %v516_v54 = vpop.f32.mrb[6].mxu1  ;;  %v241_v50 = vshrl.u32 %v6764_v35, 4 }
 0x17f   : > { %v477_v55 = vpop.f32.mrb[7].mxu0  ;;  %v5999_v56 = vpop.f32.mrb[7].mxu1  ;;  %v252_v53 = vshrl.u32 %v6767_v39, 4 }
 0x184   : > { %v579_v57 = vpop.f32.mrb[8].mxu0  ;;  %v620_v58 = vpop.f32.mrb[8].mxu1 }
 0x185   : > { %v626_v59 = vadd.f32 %v579_v57, %v473_v48  ;;  %v628_v60 = vadd.f32 %v620_v58, %v514_v49  ;;  %v581_v61 = vpop.f32.mrb[9].mxu0  ;;  %v6004_v62 = vpop.f32.mrb[9].mxu1  ;;  %v263_v49 = vshrl.u32 %v6761_v33, 4 }
 0x186   : > { %v627_v63 = vadd.f32 %v581_v61, %v475_v52  ;;  %v583_v1 = vpop.f32.mrb[10].mxu0  ;;  %v623_v2 = vpop.f32.mrb[10].mxu1 }
 0x187   : > { %v584_v4 = vpop.f32.mrb[11].mxu0  ;;  %v6005_v5 = vpop.f32.mrb[11].mxu1  ;;  %v264_v54 = vmul.u32 18, %v263_v49  ;;  %v242_v1 = vmul.u32 18, %v241_v50 }
 0x188   : > { %v253_v2 = vmul.u32 18, %v252_v53 }
 0x189   : > { %v265_v4 = vsub.s32 %v6757_v21, %v264_v54  ;;  %v243_v5 = vsub.s32 %v232_v18, %v242_v1  ;;  %v5721_v1 = vld [vmem:[%s7609_s2 + $0x8] sm:$0xff] }
 0x18a   : > { %v254_v8 = vsub.s32 %v233_v31, %v253_v2 }
 0x18b   : > { %vm270_vm12 = vcmp.ne.s32.totalorder %v265_v4, 0  ;;  %vm273_vm13 = vcmp.lt.s32.totalorder %v265_v4, 0  ;;  %vm268_vm14 = vcmp.ne.s32.totalorder %v243_v5, 0  ;;  %vm271_vm15 = vcmp.lt.s32.totalorder %v243_v5, 0 }
 0x18c   : > { %v689_v6 = vpop.f32.mrb[12].mxu0  ;;  %v730_v7 = vpop.f32.mrb[12].mxu1  ;;  %vm6773_vm0 = vmand %vm273_vm13, %vm270_vm12  ;;  %vm269_vm11 = vcmp.ne.s32.totalorder %v254_v8, 0  ;;  %vm272_vm10 = vcmp.lt.s32.totalorder %v254_v8, 0  ;;  %v277_v18 = vadd.s32 18, %v243_v5  ;;  %vm288_vm12 = vcmp.lt.s32.totalorder %v6757_v21, 288 }
 0x18d   : > { %v736_v9 = vadd.f32 %v689_v6, %v626_v59  ;;  %v738_v10 = vadd.f32 %v730_v7, %v628_v60  ;;  %v691_v11 = vpop.f32.mrb[13].mxu0  ;;  %v6010_v12 = vpop.f32.mrb[13].mxu1  ;;  %vm6777_vm9 = vmand %vm271_vm15, %vm268_vm14 }
 0x18e   : > { %v737_v13 = vadd.f32 %v691_v11, %v627_v63  ;;  %v693_v14 = vpop.f32.mrb[14].mxu0  ;;  %v733_v15 = vpop.f32.mrb[14].mxu1  ;;  %vm6783_vm8 = vmand %vm272_vm10, %vm269_vm11  ;;  %v280_v32 = vsel %vm6777_vm9, %v277_v18, %v243_v5  ;;  %v5674_v18 = vld [vmem:[%s7608_s1 + $0x24] sm:$0xf] }
 0x18f   : > { %v694_v16 = vpop.f32.mrb[15].mxu0  ;;  %v6011_v17 = vpop.f32.mrb[15].mxu1  ;;  %vm6792_vm10 = vcmp.lt.s32.totalorder %v280_v32, 16 }
 0x190   : > { %v279_v16 = vadd.s32 18, %v265_v4 }
 0x194   : > { %v797_v19 = vpop.f32.mrb[16].mxu0  ;;  %v838_v20 = vpop.f32.mrb[16].mxu1 }
 0x195   : > { %v844_v22 = vadd.f32 %v797_v19, %v736_v9  ;;  %v846_v23 = vadd.f32 %v838_v20, %v738_v10  ;;  %v799_v24 = vpop.f32.mrb[17].mxu0  ;;  %v6016_v25 = vpop.f32.mrb[17].mxu1 }
 0x196   : > { %v845_v26 = vadd.f32 %v799_v24, %v737_v13  ;;  %v801_v27 = vpop.f32.mrb[18].mxu0  ;;  %v841_v28 = vpop.f32.mrb[18].mxu1  ;;  %v282_v24 = vsel %vm6773_vm0, %v279_v16, %v265_v4  ;;  %vm7634_vm0 = vcmask 908288  }
 0x197   : > { %v802_v29 = vpop.f32.mrb[19].mxu0  ;;  %v6017_v30 = vpop.f32.mrb[19].mxu1  ;;  %vm285_vm13 = vcmp.lt.s32.totalorder %v282_v24, 16 }
 0x198   : > { %vm6798_vm11 = vmand %vm285_vm13, %vm288_vm12 }
 0x199   : > { %vm7635_vm12 = vmmov %vm7634_vm0 }
 0x19a   : > { %vm7636_vm13 = vmmov %vm7634_vm0 }
 0x19c   : > { %v919_v36 = vpop.f32.mrb[20].mxu0  ;;  %v960_v37 = vpop.f32.mrb[20].mxu1 }
 0x19d   : > { %v966_v40 = vadd.f32 %v919_v36, %v844_v22  ;;  %v968_v41 = vadd.f32 %v960_v37, %v846_v23  ;;  %v921_v42 = vpop.f32.mrb[21].mxu0  ;;  %v6022_v43 = vpop.f32.mrb[21].mxu1  ;;  %v278_v23 = vadd.s32 18, %v254_v8 }
 0x19e   : > { %v967_v44 = vadd.f32 %v921_v42, %v845_v26  ;;  %v923_v45 = vpop.f32.mrb[22].mxu0  ;;  %v963_v46 = vpop.f32.mrb[22].mxu1 }
 0x19f   : > { %v924_v47 = vpop.f32.mrb[23].mxu0  ;;  %v6023_v48 = vpop.f32.mrb[23].mxu1  ;;  %v281_v36 = vsel %vm6783_vm8, %v278_v23, %v254_v8  ;;  %vm7631_vm8 = vcmask 1039360  }
 0x1a0   : > { %v1303_v26 = vpop.permute.xlu0 %1302  ;;  %vm6802_vm9 = vcmp.lt.s32.totalorder %v281_v36, 16  ;;  %vm7632_vm14 = vmmov %vm7631_vm8 }
 0x1a1   : > { %vm7633_vm15 = vmmov %vm7631_vm8 }
 0x1a4   : > { %v1029_v51 = vpop.f32.mrb[24].mxu0  ;;  %v1070_v52 = vpop.f32.mrb[24].mxu1 }
 0x1a5   : > { %v1076_v55 = vadd.f32 %v1029_v51, %v966_v40  ;;  %v1078_v56 = vadd.f32 %v1070_v52, %v968_v41  ;;  %v1031_v57 = vpop.f32.mrb[25].mxu0  ;;  %v6028_v58 = vpop.f32.mrb[25].mxu1 }
 0x1a6   : > { %v1077_v59 = vadd.f32 %v1031_v57, %v967_v44  ;;  %v1033_v60 = vpop.f32.mrb[26].mxu0  ;;  %v1073_v61 = vpop.f32.mrb[26].mxu1 }
 0x1a7   : > { %v1034_v62 = vpop.f32.mrb[27].mxu0  ;;  %v6029_v63 = vpop.f32.mrb[27].mxu1 }
 0x1ac   : > { %v1139_v6 = vpop.f32.mrb[28].mxu0  ;;  %v1180_v7 = vpop.f32.mrb[28].mxu1 }
 0x1ad   : > { %v1186_v9 = vadd.f32 %v1139_v6, %v1076_v55  ;;  %v1188_v10 = vadd.f32 %v1180_v7, %v1078_v56  ;;  %v1141_v11 = vpop.f32.mrb[29].mxu0  ;;  %v6034_v12 = vpop.f32.mrb[29].mxu1 }
 0x1ae   : > { %v1187_v13 = vadd.f32 %v1141_v11, %v1077_v59  ;;  %v1143_v14 = vpop.f32.mrb[30].mxu0  ;;  %v1183_v15 = vpop.f32.mrb[30].mxu1 }
 0x1af   : > { %v1144_v17 = vpop.f32.mrb[31].mxu0  ;;  %v6035_v19 = vpop.f32.mrb[31].mxu1 }
 0x1b4   : > { %v1249_v27 = vpop.f32.mrb[32].mxu0  ;;  %v1290_v28 = vpop.f32.mrb[32].mxu1 }
 0x1b5   : > { %v1296_v29 = vadd.f32 %v1249_v27, %v1186_v9  ;;  %v1298_v30 = vadd.f32 %v1290_v28, %v1188_v10  ;;  %v1251_v31 = vpop.f32.mrb[33].mxu0  ;;  %v6040_v33 = vpop.f32.mrb[33].mxu1  ;;  %v5675_v10 = vld [vmem:[%s7608_s1 + $0x28] sm:$0xf] }
 0x1b6   : > { %v1297_v34 = vadd.f32 %v1251_v31, %v1187_v13  ;;  %v1253_v35 = vpop.f32.mrb[34].mxu0  ;;  %v1293_v37 = vpop.f32.mrb[34].mxu1  ;;  %v5686_v31 = vld [vmem:[%s7608_s1 + $0x2c] sm:$0xf] }
 0x1b7   : > { %v1305_v38 = vadd.f32 %v1303_v26, %v1296_v29  ;;  %v1307_v39 = vadd.f32 %v1303_v26, %v1298_v30  ;;  %v1254_v40 = vpop.f32.mrb[35].mxu0  ;;  %v6041_v41 = vpop.f32.mrb[35].mxu1 }
 0x1b8   : > { %v1306_v44 = vadd.f32 %v1303_v26, %v1297_v34  ;;  %v5690_v41 = vld [vmem:[%s7608_s1 + $0x30] sm:$0xf] }
 0x1b9   : > { %v1308_v46 = vmax.f32 %v1305_v38, 0.0  ;;  %v1310_v47 = vmax.f32 %v1307_v39, 0.0 }
 0x1ba   : > { %v1309_v48 = vmax.f32 %v1306_v44, 0.0 }
 0x1bb   : > { %v1317_v49 = vsel %vm6792_vm10, %v1308_v46, 0.0  ;;  %v1319_v50 = vsel %vm6798_vm11, %v1310_v47, 0.0 }
 0x1bc   : > { %v1318_v21 = vsel %vm6802_vm9, %v1309_v48, 0.0  ;;  %v5891_v51 = vpack.c.bf16 %v1319_v50, %v1319_v50  ;;  %v6828_v61 = vpack.c.bf16 %v1317_v49, %v1317_v49 }
 0x1bd   : > { %v5890_v52 = vpack.c.bf16 %v1318_v21, %v1317_v49  ;;  %v6833_v62 = vpack.c.bf16 %v1318_v21, %v1318_v21 }
 0x1be   : > { %1334 = vst [vmem:[#allocation2 + $0xc] sm:$0xf] %v5891_v51  ;;  %v1793_v49 = vsel %vm323_vm3, %v6828_v61, 0 }
 0x1bf   : > { %1333 = vst [vmem:[#allocation2 + $0x4] sm:$0xff] %v5890_v52 }
 0x1c5   : > { %v1888_v59 = vld [vmem:[#allocation2 + $0xc] sm:$0xff] }
 0x1c6   : > { %v1338_v53 = vld [vmem:[#allocation2 + $0x8] sm:$0xff]  ;;  %v1337_v54 = vld [vmem:[#allocation2] sm:$0xff]  ;;  %v5704_v60 = vcombine.low %v1888_v59, %v1888_v59  ;;  %v5705_v63 = vcombine.high %v1888_v59, %v1888_v59 }
 0x1c7   : > { %v5678_v55 = vcombine.low %v1338_v53, %v1338_v53  ;;  %v5676_v56 = vcombine.low %v1337_v54, %v1337_v54  ;;  %v5677_v57 = vcombine.high %v1337_v54, %v1337_v54  ;;  %v5679_v58 = vcombine.high %v1338_v53, %v1338_v53  ;;  %v6368_v50 = vld [vmem:[#allocation2 + $0xc] ss:$0 sps:$4 sm:$0xff]  }
 0x1c8   : > { %v1799_v53 = vsel %vm323_vm3, %v6368_v50, 0 }
 0x1c9   : > { %1355 = vrot.lane.b32.xlu0 %v5678_v55, %s6474_s10  ;;  %1351 = vrot.lane.b32.xlu1 %v5676_v56, %s6474_s10 }
 0x1cd   : > { %1455 = vrot.lane.b32.xlu0 %v5676_v56, %s6475_s11  ;;  %1353 = vrot.lane.b32.xlu1 %v5677_v57, %s6474_s10 }
 0x1d1   : > { %1459 = vrot.lane.b32.xlu0 %v5678_v55, %s6475_s11  ;;  %1357 = vrot.lane.b32.xlu1 %v5679_v58, %s6474_s10 }
 0x1d5   : > { %1561 = vrot.lane.b32.xlu0 %v5676_v56, %s6476_s12  ;;  %1457 = vrot.lane.b32.xlu1 %v5677_v57, %s6475_s11 }
 0x1d9   : > { %1565 = vrot.lane.b32.xlu0 %v5678_v55, %s6476_s12  ;;  %1461 = vrot.lane.b32.xlu1 %v5679_v58, %s6475_s11 }
 0x1dd   : > { %1670 = vrot.lane.b32.xlu0 %v5676_v56, %s6477_s13  ;;  %1563 = vrot.lane.b32.xlu1 %v5677_v57, %s6476_s12 }
 0x1e1   : > { %1674 = vrot.lane.b32.xlu0 %v5678_v55, %s6477_s13  ;;  %1567 = vrot.lane.b32.xlu1 %v5679_v58, %s6476_s12  ;;  %v5694_v55 = vld [vmem:[%s7608_s1 + $0x34] sm:$0xf] }
 0x1e5   : > { %1903 = vrot.lane.b32.xlu0 %v5704_v60, %s6478_s14  ;;  %1672 = vrot.lane.b32.xlu1 %v5677_v57, %s6477_s13 }
 0x1e9   : > { %1899 = vrot.lane.b32.xlu0 %v6828_v61, %s6478_s14  ;;  %1676 = vrot.lane.b32.xlu1 %v5679_v58, %s6477_s13 }
 0x1ed   : > { %2012 = vrot.lane.b32.xlu0 %v5704_v60, %s6479_s15  ;;  %1901 = vrot.lane.b32.xlu1 %v6833_v62, %s6478_s14 }
 0x1f1   : > { %2008 = vrot.lane.b32.xlu0 %v6828_v61, %s6479_s15  ;;  %1905 = vrot.lane.b32.xlu1 %v5705_v63, %s6478_s14 }
 0x1f5   : > { %2121 = vrot.lane.b32.xlu0 %v5704_v60, %s6480_s16  ;;  %2010 = vrot.lane.b32.xlu1 %v6833_v62, %s6479_s15 }
 0x1f9   : > { %2117 = vrot.lane.b32.xlu0 %v6828_v61, %s6480_s16  ;;  %2014 = vrot.lane.b32.xlu1 %v5705_v63, %s6479_s15 }
 0x1fd   : > { %2226 = vrot.lane.b32.xlu0 %v6828_v61, %s6481_s17  ;;  %2119 = vrot.lane.b32.xlu1 %v6833_v62, %s6480_s16 }
 0x201   : > { %2230 = vrot.lane.b32.xlu0 %v5704_v60, %s6481_s17  ;;  %2123 = vrot.lane.b32.xlu1 %v5705_v63, %s6480_s16 }
 0x205   : > { %2337 = vperm.xlu0 %6351, %v5721_v1   ;;  %2228 = vrot.lane.b32.xlu1 %v6833_v62, %s6481_s17 }
 0x209   : > { %2232 = vrot.lane.b32.xlu1 %v5705_v63, %s6481_s17 }
 0x23b   : > { %v1356_v2 = vpop.permute.xlu0 %1355  ;;  %v1352_v4 = vpop.permute.xlu1 %1351 }
 0x23f   : > { %v1456_v5 = vpop.permute.xlu0 %1455  ;;  %v1354_v6 = vpop.permute.xlu1 %1353 }
 0x240   : > { %v1359_v7 = vsel %vm315_vm2, %v1352_v4, %v1354_v6  ;;  %v1360_v8 = vsel %vm315_vm2, %v1354_v6, %v1356_v2 }
 0x241   : > { %5680 = vmatprep.subr.msk.bf16.mxu0 %vm323_vm3, %v1360_v8  ;;  %v1366_v9 = vsel %vm323_vm3, %v1359_v7, 0 }
 0x242   : > { %1375 = vmatpush1.bf16.msra.mxu0 %v1366_v9 }
 0x243   : > { %v1460_v11 = vpop.permute.xlu0 %1459  ;;  %v1358_v12 = vpop.permute.xlu1 %1357 }
 0x244   : > { %v1361_v13 = vsel %vm315_vm2, %v1356_v2, %v1358_v12  ;;  %v5701_v2 = vld [vmem:[%s7608_s1 + $0x38] sm:$0xf] }
 0x245   : > { %v1372_v14 = vsel %vm323_vm3, %v1361_v13, 0  ;;  %5681 = vmatmul.mubr.msk.bf16.vlgmr.msra.gmra.mrb[36].mxu0 %vm319_vm4, %v5675_v10  ;;  %v5709_v13 = vld [vmem:[%s7608_s1 + $0x3c] sm:$0xf] }
 0x246   : > { %6043 = vmatpush3.bf16.msra.mxu1 %v1372_v14  ;;  %1510 = vmatprep.mubr.bf16.mxu0 %v6471_v0 }
 0x247   : > { %v1562_v15 = vpop.permute.xlu0 %1561  ;;  %v1458_v16 = vpop.permute.xlu1 %1457  ;;  %6048 = vmatprep.subr.bf16.mxu1 %v6472_v3 }
 0x248   : > { %v1463_v17 = vsel %vm422_vm5, %v1456_v5, %v1458_v16  ;;  %v1464_v19 = vsel %vm422_vm5, %v1458_v16, %v1460_v11 }
 0x249   : > { %6045 = vmatmul.mubr.msk.bf16.vlgmr.msra.gmra.mrb[36].mxu1 %vm319_vm4, %v5675_v10  ;;  %5683 = vmatprep.subr.msk.bf16.mxu0 %vm323_vm3, %v1464_v19  ;;  %v1470_v20 = vsel %vm323_vm3, %v1463_v17, 0 }
 0x24a   : > { %1479 = vmatpush1.bf16.msra.mxu0 %v1470_v20  ;;  %6050 = vmatprep.mubr.msk.bf16.mxu1 %vm6473_vm1, %v6472_v3 }
 0x24b   : > { %v1566_v22 = vpop.permute.xlu0 %1565  ;;  %v1462_v23 = vpop.permute.xlu1 %1461 }
 0x24c   : > { %v1465_v24 = vsel %vm422_vm5, %v1460_v11, %v1462_v23  ;;  %v5713_v23 = vld [vmem:[%s7608_s1 + $0x40] sm:$0xf] }
 0x24d   : > { %v1476_v25 = vsel %vm323_vm3, %v1465_v24, 0  ;;  %5684 = vmatmul.mubr.msk.bf16.vlgmr.msra.gmra.mrb[40].mxu0 %vm319_vm4, %v5674_v18 }
 0x24e   : > { %6049 = vmatpush3.bf16.msra.mxu1 %v1476_v25  ;;  %1616 = vmatprep.mubr.bf16.mxu0 %v6471_v0 }
 0x24f   : > { %v1671_v26 = vpop.permute.xlu0 %1670  ;;  %v1564_v27 = vpop.permute.xlu1 %1563  ;;  %6054 = vmatprep.subr.bf16.mxu1 %v6472_v3 }
 0x250   : > { %v1569_v28 = vsel %vm529_vm6, %v1562_v15, %v1564_v27  ;;  %v1570_v29 = vsel %vm529_vm6, %v1564_v27, %v1566_v22 }
 0x251   : > { %6051 = vmatmul.mubr.msk.bf16.vlgmr.msra.gmra.mrb[40].mxu1 %vm319_vm4, %v5674_v18  ;;  %5687 = vmatprep.subr.msk.bf16.mxu0 %vm323_vm3, %v1570_v29  ;;  %v1576_v30 = vsel %vm323_vm3, %v1569_v28, 0  ;;  %v5717_v28 = vld [vmem:[%s7608_s1 + $0x44] sm:$0xf] }
 0x252   : > { %1585 = vmatpush1.bf16.msra.mxu0 %v1576_v30  ;;  %6056 = vmatprep.mubr.msk.bf16.mxu1 %vm6473_vm1, %v6472_v3 }
 0x253   : > { %v1675_v32 = vpop.permute.xlu0 %1674  ;;  %v1568_v33 = vpop.permute.xlu1 %1567 }
 0x254   : > { %v1571_v34 = vsel %vm529_vm6, %v1566_v22, %v1568_v33 }
 0x255   : > { %v1582_v35 = vsel %vm323_vm3, %v1571_v34, 0  ;;  %5688 = vmatmul.mubr.msk.bf16.vlgmr.msra.gmra.mrb[44].mxu0 %vm319_vm4, %v5686_v31 }
 0x256   : > { %6055 = vmatpush3.bf16.msra.mxu1 %v1582_v35  ;;  %1725 = vmatprep.mubr.bf16.mxu0 %v6471_v0 }
 0x257   : > { %v1904_v36 = vpop.permute.xlu0 %1903  ;;  %v1673_v37 = vpop.permute.xlu1 %1672  ;;  %6060 = vmatprep.subr.bf16.mxu1 %v6472_v3 }
 0x258   : > { %v1678_v38 = vsel %vm639_vm7, %v1671_v26, %v1673_v37  ;;  %v1679_v39 = vsel %vm639_vm7, %v1673_v37, %v1675_v32 }
 0x259   : > { %6057 = vmatmul.mubr.msk.bf16.vlgmr.msra.gmra.mrb[44].mxu1 %vm319_vm4, %v5686_v31  ;;  %5691 = vmatprep.subr.msk.bf16.mxu0 %vm323_vm3, %v1679_v39  ;;  %v1685_v40 = vsel %vm323_vm3, %v1678_v38, 0 }
 0x25a   : > { %1694 = vmatpush1.bf16.msra.mxu0 %v1685_v40  ;;  %6062 = vmatprep.mubr.msk.bf16.mxu1 %vm6473_vm1, %v6472_v3 }
 0x25b   : > { %v1900_v44 = vpop.permute.xlu0 %1899  ;;  %5698 = vmatprep.subr.msk.bf16.mxu0 %vm323_vm3, %v6833_v62  ;;  %v1677_v46 = vpop.permute.xlu1 %1676 }
 0x25c   : > { %v1680_v47 = vsel %vm639_vm7, %v1675_v32, %v1677_v46 }
 0x25d   : > { %v1691_v48 = vsel %vm323_vm3, %v1680_v47, 0  ;;  %5692 = vmatmul.mubr.msk.bf16.vlgmr.msra.gmra.mrb[48].mxu0 %vm319_vm4, %v5690_v41 }
 0x25e   : > { %6061 = vmatpush3.bf16.msra.mxu1 %v1691_v48  ;;  %1802 = vmatpush1.bf16.msra.mxu0 %v1793_v49 }
 0x25f   : > { %v2013_v21 = vpop.permute.xlu0 %2012  ;;  %v1902_v51 = vpop.permute.xlu1 %1901  ;;  %6066 = vmatprep.subr.bf16.mxu1 %v6472_v3  ;;  %1833 = vmatprep.mubr.bf16.mxu0 %v6471_v0 }
 0x260   : > { %v1908_v52 = vsel %vm7631_vm8, %v1902_v51, %v1904_v36  ;;  %v1907_v54 = vsel %vm7632_vm14, %v1900_v44, %v1902_v51  ;;  %vm7637_vm8 = vcmask 900096  }
 0x261   : > { %6063 = vmatmul.mubr.msk.bf16.vlgmr.msra.gmra.mrb[48].mxu1 %vm319_vm4, %v5690_v41  ;;  %5706 = vmatprep.subr.msk.bf16.mxu0 %vm323_vm3, %v1908_v52  ;;  %v1914_v58 = vsel %vm323_vm3, %v1907_v54, 0  ;;  %vm7638_vm14 = vmmov %vm7637_vm8 }
 0x262   : > { %6067 = vmatpush3.bf16.msra.mxu1 %v1799_v53  ;;  %6068 = vmatprep.mubr.msk.bf16.mxu1 %vm6473_vm1, %v6472_v3 }
 0x263   : > { %v2009_v56 = vpop.permute.xlu0 %2008  ;;  %v1906_v57 = vpop.permute.xlu1 %1905  ;;  %6072 = vmatprep.subr.bf16.mxu1 %v6472_v3 }
 0x264   : > { %v1909_v59 = vsel %vm7633_vm15, %v1904_v36, %v1906_v57  ;;  %vm7639_vm15 = vmmov %vm7637_vm8 }
 0x265   : > { %5699 = vmatmul.mubr.msk.bf16.vlgmr.msra.gmra.mrb[52].mxu0 %vm319_vm4, %v5694_v55  ;;  %v1920_v63 = vsel %vm323_vm3, %v1909_v59, 0 }
 0x266   : > { %1923 = vmatpush1.bf16.msra.mxu0 %v1914_v58  ;;  %1954 = vmatprep.mubr.bf16.mxu0 %v6471_v0 }
 0x267   : > { %v2122_v60 = vpop.permute.xlu0 %2121  ;;  %v2011_v61 = vpop.permute.xlu1 %2010 }
 0x268   : > { %v2017_v62 = vsel %vm7634_vm0, %v2011_v61, %v2013_v21  ;;  %v2016_v1 = vsel %vm7635_vm12, %v2009_v56, %v2011_v61  ;;  %vm7640_vm0 = vcmask 891904  }
 0x269   : > { %6069 = vmatmul.mubr.msk.bf16.vlgmr.msra.gmra.mrb[52].mxu1 %vm319_vm4, %v5694_v55  ;;  %5710 = vmatprep.subr.msk.bf16.mxu0 %vm323_vm3, %v2017_v62  ;;  %v2023_v6 = vsel %vm323_vm3, %v2016_v1, 0  ;;  %vm7641_vm12 = vmmov %vm7640_vm0 }
 0x26a   : > { %6073 = vmatpush3.bf16.msra.mxu1 %v1920_v63  ;;  %6074 = vmatprep.mubr.msk.bf16.mxu1 %vm6473_vm1, %v6472_v3 }
 0x26b   : > { %v2118_v4 = vpop.permute.xlu0 %2117  ;;  %v2015_v5 = vpop.permute.xlu1 %2014  ;;  %6078 = vmatprep.subr.bf16.mxu1 %v6472_v3 }
 0x26c   : > { %v2018_v7 = vsel %vm7636_vm13, %v2013_v21, %v2015_v5  ;;  %vm7642_vm13 = vmmov %vm7640_vm0 }
 0x26d   : > { %5707 = vmatmul.mubr.msk.bf16.vlgmr.msra.gmra.mrb[56].mxu0 %vm319_vm4, %v5701_v2  ;;  %v2029_v10 = vsel %vm323_vm3, %v2018_v7, 0 }
 0x26e   : > { %2032 = vmatpush1.bf16.msra.mxu0 %v2023_v6  ;;  %2063 = vmatprep.mubr.bf16.mxu0 %v6471_v0 }
 0x26f   : > { %v2120_v8 = vpop.permute.xlu1 %2119  ;;  %v2227_v11 = vpop.permute.xlu0 %2226 }
 0x270   : > { %v2126_v9 = vsel %vm7637_vm8, %v2120_v8, %v2122_v60  ;;  %v2125_v12 = vsel %vm7638_vm14, %v2118_v4, %v2120_v8  ;;  %vm7643_vm8 = vcmask 1039360  }
 0x271   : > { %6075 = vmatmul.mubr.msk.bf16.vlgmr.msra.gmra.mrb[56].mxu1 %vm319_vm4, %v5701_v2  ;;  %5714 = vmatprep.subr.msk.bf16.mxu0 %vm323_vm3, %v2126_v9  ;;  %v2132_v15 = vsel %vm323_vm3, %v2125_v12, 0  ;;  %vm7644_vm14 = vmmov %vm7643_vm8 }
 0x272   : > { %6079 = vmatpush3.bf16.msra.mxu1 %v2029_v10  ;;  %6080 = vmatprep.mubr.msk.bf16.mxu1 %vm6473_vm1, %v6472_v3 }
 0x273   : > { %v2124_v14 = vpop.permute.xlu1 %2123  ;;  %6084 = vmatprep.subr.bf16.mxu1 %v6472_v3  ;;  %v2231_v17 = vpop.permute.xlu0 %2230 }
 0x274   : > { %v2127_v16 = vsel %vm7639_vm15, %v2122_v60, %v2124_v14  ;;  %vm7645_vm15 = vmmov %vm7643_vm8 }
 0x275   : > { %5711 = vmatmul.mubr.msk.bf16.vlgmr.msra.gmra.mrb[60].mxu0 %vm319_vm4, %v5709_v13  ;;  %v2138_v18 = vsel %vm323_vm3, %v2127_v16, 0 }
 0x276   : > { %2141 = vmatpush1.bf16.msra.mxu0 %v2132_v15  ;;  %2172 = vmatprep.mubr.bf16.mxu0 %v6471_v0 }
 0x277   : > { %v2229_v19 = vpop.permute.xlu1 %2228 }
 0x278   : > { %v2235_v20 = vsel %vm7640_vm0, %v2229_v19, %v2231_v17  ;;  %v2234_v22 = vsel %vm7641_vm12, %v2227_v11, %v2229_v19  ;;  %vm7646_vm0 = vcmask 908288  }
 0x279   : > { %6081 = vmatmul.mubr.msk.bf16.vlgmr.msra.gmra.mrb[60].mxu1 %vm319_vm4, %v5709_v13  ;;  %5718 = vmatprep.subr.msk.bf16.mxu0 %vm323_vm3, %v2235_v20  ;;  %v2241_v25 = vsel %vm323_vm3, %v2234_v22, 0  ;;  %vm7647_vm12 = vmmov %vm7646_vm0 }
 0x27a   : > { %6085 = vmatpush3.bf16.msra.mxu1 %v2138_v18  ;;  %6086 = vmatprep.mubr.msk.bf16.mxu1 %vm6473_vm1, %v6472_v3 }
 0x27b   : > { %v2233_v24 = vpop.permute.xlu1 %2232  ;;  %6090 = vmatprep.subr.bf16.mxu1 %v6472_v3 }
 0x27c   : > { %v2236_v26 = vsel %vm7642_vm13, %v2231_v17, %v2233_v24  ;;  %vm7648_vm13 = vmmov %vm7646_vm0 }
 0x27d   : > { %5715 = vmatmul.mubr.msk.bf16.vlgmr.msra.gmra.mrb[64].mxu0 %vm319_vm4, %v5713_v23  ;;  %v2247_v27 = vsel %vm323_vm3, %v2236_v26, 0 }
 0x27e   : > { %2250 = vmatpush1.bf16.msra.mxu0 %v2241_v25  ;;  %2281 = vmatprep.mubr.bf16.mxu0 %v6471_v0 }
 0x281   : > { %6087 = vmatmul.mubr.msk.bf16.vlgmr.msra.gmra.mrb[64].mxu1 %vm319_vm4, %v5713_v23 }
 0x282   : > { %6091 = vmatpush3.bf16.msra.mxu1 %v2247_v27  ;;  %6092 = vmatprep.mubr.msk.bf16.mxu1 %vm6473_vm1, %v6472_v3 }
 0x283   : > { %6096 = vmatprep.subr.bf16.mxu1 %v6472_v3 }
 0x285   : > { %5719 = vmatmul.mubr.msk.bf16.vlgmr.msra.gmra.mrb[68].mxu0 %vm319_vm4, %v5717_v28 }
 0x286   : > { %2435 = vmatprep.mubr.bf16.mxu0 %v6471_v0 }
 0x289   : > { %6093 = vmatmul.mubr.msk.bf16.vlgmr.msra.gmra.mrb[68].mxu1 %vm319_vm4, %v5717_v28 }
 0x28a   : > { %6098 = vmatprep.mubr.msk.bf16.mxu1 %vm6473_vm1, %v6472_v3 }
 0x318   : > { %v1408_v29 = vpop.f32.mrb[36].mxu0 }
 0x319   : > { %v1410_v30 = vpop.f32.mrb[37].mxu0 }
 0x31a   : > { %v1412_v31 = vpop.f32.mrb[38].mxu0 }
 0x31b   : > { %v1413_v32 = vpop.f32.mrb[39].mxu0 }
 0x31c   : > { %v1449_v33 = vpop.f32.mrb[36].mxu1 }
 0x31d   : > { %v6046_v34 = vpop.f32.mrb[37].mxu1 }
 0x31e   : > { %v1452_v35 = vpop.f32.mrb[38].mxu1 }
 0x31f   : > { %v6047_v36 = vpop.f32.mrb[39].mxu1 }
 0x320   : > { %v1512_v37 = vpop.f32.mrb[40].mxu0 }
 0x321   : > { %v1513_v38 = vadd.f32 %v1512_v37, %v1408_v29  ;;  %v1514_v39 = vpop.f32.mrb[41].mxu0 }
 0x322   : > { %v1515_v40 = vadd.f32 %v1514_v39, %v1410_v30  ;;  %v1516_v41 = vpop.f32.mrb[42].mxu0 }
 0x323   : > { %v1517_v44 = vpop.f32.mrb[43].mxu0 }
 0x324   : > { %v1553_v46 = vpop.f32.mrb[40].mxu1 }
 0x325   : > { %v1554_v47 = vadd.f32 %v1553_v46, %v1449_v33  ;;  %v6052_v48 = vpop.f32.mrb[41].mxu1 }
 0x326   : > { %v1556_v49 = vpop.f32.mrb[42].mxu1 }
 0x327   : > { %v6053_v50 = vpop.f32.mrb[43].mxu1 }
 0x328   : > { %v1618_v21 = vpop.f32.mrb[44].mxu0 }
 0x329   : > { %v1665_v51 = vadd.f32 %v1618_v21, %v1513_v38  ;;  %v1620_v52 = vpop.f32.mrb[45].mxu0 }
 0x32a   : > { %v1666_v53 = vadd.f32 %v1620_v52, %v1515_v40  ;;  %v1622_v54 = vpop.f32.mrb[46].mxu0 }
 0x32b   : > { %v1623_v55 = vpop.f32.mrb[47].mxu0 }
 0x32c   : > { %v1659_v56 = vpop.f32.mrb[44].mxu1 }
 0x32d   : > { %v1667_v57 = vadd.f32 %v1659_v56, %v1554_v47  ;;  %v6058_v58 = vpop.f32.mrb[45].mxu1 }
 0x32e   : > { %v1662_v59 = vpop.f32.mrb[46].mxu1 }
 0x32f   : > { %v6059_v60 = vpop.f32.mrb[47].mxu1 }
 0x330   : > { %v1727_v61 = vpop.f32.mrb[48].mxu0  ;;  %v2338_v60 = vpop.permute.xlu0 %2337 }
 0x331   : > { %v1774_v62 = vadd.f32 %v1727_v61, %v1665_v51  ;;  %v1729_v63 = vpop.f32.mrb[49].mxu0 }
 0x332   : > { %v1775_v1 = vadd.f32 %v1729_v63, %v1666_v53  ;;  %v1731_v2 = vpop.f32.mrb[50].mxu0 }
 0x333   : > { %v1732_v4 = vpop.f32.mrb[51].mxu0 }
 0x334   : > { %v1768_v5 = vpop.f32.mrb[48].mxu1 }
 0x335   : > { %v1776_v6 = vadd.f32 %v1768_v5, %v1667_v57  ;;  %v6064_v7 = vpop.f32.mrb[49].mxu1 }
 0x336   : > { %v1771_v8 = vpop.f32.mrb[50].mxu1 }
 0x337   : > { %v6065_v9 = vpop.f32.mrb[51].mxu1 }
 0x338   : > { %v1835_v10 = vpop.f32.mrb[52].mxu0 }
 0x339   : > { %v1882_v11 = vadd.f32 %v1835_v10, %v1774_v62  ;;  %v1837_v12 = vpop.f32.mrb[53].mxu0 }
 0x33a   : > { %v1883_v13 = vadd.f32 %v1837_v12, %v1775_v1  ;;  %v1839_v14 = vpop.f32.mrb[54].mxu0 }
 0x33b   : > { %v1840_v15 = vpop.f32.mrb[55].mxu0 }
 0x33c   : > { %v1876_v16 = vpop.f32.mrb[52].mxu1 }
 0x33d   : > { %v1884_v17 = vadd.f32 %v1876_v16, %v1776_v6  ;;  %v6070_v19 = vpop.f32.mrb[53].mxu1 }
 0x33e   : > { %v1879_v20 = vpop.f32.mrb[54].mxu1 }
 0x33f   : > { %v6071_v18 = vpop.f32.mrb[55].mxu1 }
 0x340   : > { %v1956_v22 = vpop.f32.mrb[56].mxu0 }
 0x341   : > { %v2003_v23 = vadd.f32 %v1956_v22, %v1882_v11  ;;  %v1958_v24 = vpop.f32.mrb[57].mxu0 }
 0x342   : > { %v2004_v25 = vadd.f32 %v1958_v24, %v1883_v13  ;;  %v1960_v26 = vpop.f32.mrb[58].mxu0 }
 0x343   : > { %v1961_v27 = vpop.f32.mrb[59].mxu0 }
 0x344   : > { %v1997_v28 = vpop.f32.mrb[56].mxu1 }
 0x345   : > { %v2005_v29 = vadd.f32 %v1997_v28, %v1884_v17  ;;  %v6076_v30 = vpop.f32.mrb[57].mxu1 }
 0x346   : > { %v2000_v31 = vpop.f32.mrb[58].mxu1  ;;  %v5771_v30 = vld [vmem:[%s7609_s2 + $0x10] sm:$0xff] }
 0x347   : > { %v6077_v32 = vpop.f32.mrb[59].mxu1 }
 0x348   : > { %v2065_v33 = vpop.f32.mrb[60].mxu0 }
 0x349   : > { %v2112_v34 = vadd.f32 %v2065_v33, %v2003_v23  ;;  %v2067_v35 = vpop.f32.mrb[61].mxu0 }
 0x34a   : > { %v2113_v36 = vadd.f32 %v2067_v35, %v2004_v25  ;;  %v2069_v37 = vpop.f32.mrb[62].mxu0 }
 0x34b   : > { %v2070_v38 = vpop.f32.mrb[63].mxu0 }
 0x34c   : > { %v2106_v39 = vpop.f32.mrb[60].mxu1 }
 0x34d   : > { %v2114_v40 = vadd.f32 %v2106_v39, %v2005_v29  ;;  %v6082_v41 = vpop.f32.mrb[61].mxu1 }
 0x34e   : > { %v2109_v44 = vpop.f32.mrb[62].mxu1 }
 0x34f   : > { %v6083_v46 = vpop.f32.mrb[63].mxu1 }
 0x350   : > { %v2174_v47 = vpop.f32.mrb[64].mxu0 }
 0x351   : > { %v2221_v48 = vadd.f32 %v2174_v47, %v2112_v34  ;;  %v2176_v49 = vpop.f32.mrb[65].mxu0 }
 0x352   : > { %v2222_v50 = vadd.f32 %v2176_v49, %v2113_v36  ;;  %v2178_v21 = vpop.f32.mrb[66].mxu0 }
 0x353   : > { %v2179_v51 = vpop.f32.mrb[67].mxu0 }
 0x354   : > { %v2215_v52 = vpop.f32.mrb[64].mxu1 }
 0x355   : > { %v2223_v53 = vadd.f32 %v2215_v52, %v2114_v40  ;;  %v6088_v54 = vpop.f32.mrb[65].mxu1  ;;  %v5725_v40 = vld [vmem:[%s7608_s1 + $0x4c] sm:$0xf]  ;;  %v5724_v52 = vld [vmem:[%s7608_s1 + $0x48] sm:$0xf] }
 0x356   : > { %v2218_v55 = vpop.f32.mrb[66].mxu1 }
 0x357   : > { %v6089_v56 = vpop.f32.mrb[67].mxu1 }
 0x358   : > { %v2283_v57 = vpop.f32.mrb[68].mxu0 }
 0x359   : > { %v2330_v58 = vadd.f32 %v2283_v57, %v2221_v48  ;;  %v2285_v59 = vpop.f32.mrb[69].mxu0 }
 0x35a   : > { %v2331_v61 = vadd.f32 %v2285_v59, %v2222_v50  ;;  %v2287_v62 = vpop.f32.mrb[70].mxu0 }
 0x35b   : > { %v2340_v63 = vadd.f32 %v2338_v60, %v2330_v58  ;;  %v2288_v1 = vpop.f32.mrb[71].mxu0  ;;  %v5736_v62 = vld [vmem:[%s7608_s1 + $0x50] sm:$0xf] }
 0x35c   : > { %v2341_v2 = vadd.f32 %v2338_v60, %v2331_v61  ;;  %v2324_v4 = vpop.f32.mrb[68].mxu1 }
 0x35d   : > { %v2343_v5 = vmax.f32 %v2340_v63, 0.0  ;;  %v2332_v6 = vadd.f32 %v2324_v4, %v2223_v53  ;;  %v6094_v7 = vpop.f32.mrb[69].mxu1 }
 0x35e   : > { %v2344_v8 = vmax.f32 %v2341_v2, 0.0  ;;  %v2327_v9 = vpop.f32.mrb[70].mxu1 }
 0x35f   : > { %v2346_v10 = vsel %vm6792_vm10, %v2343_v5, 0.0  ;;  %v2342_v11 = vadd.f32 %v2338_v60, %v2332_v6  ;;  %v6095_v12 = vpop.f32.mrb[71].mxu1 }
 0x360   : > { %v2347_v13 = vsel %vm6802_vm9, %v2344_v8, 0.0  ;;  %v7020_v29 = vpack.c.bf16 %v2346_v10, %v2346_v10 }
 0x361   : > { %v5892_v14 = vpack.c.bf16 %v2347_v13, %v2346_v10  ;;  %v2345_v15 = vmax.f32 %v2342_v11, 0.0  ;;  %v7015_v26 = vpack.c.bf16 %v2347_v13, %v2347_v13  ;;  %v5740_v11 = vld [vmem:[%s7608_s1 + $0x54] sm:$0xf] }
 0x363   : > { %2362 = vst [vmem:[#allocation2 + $0x4] sm:$0xff] %v5892_v14  ;;  %v2348_v16 = vsel %vm6798_vm11, %v2345_v15, 0.0  ;;  %v2822_v14 = vsel %vm323_vm3, %v7020_v29, 0 }
 0x364   : > { %v5893_v17 = vpack.c.bf16 %v2348_v16, %v2348_v16 }
 0x366   : > { %2363 = vst [vmem:[#allocation2 + $0xc] sm:$0xf] %v5893_v17 }
 0x36a   : > { %v2366_v19 = vld [vmem:[#allocation2] sm:$0xff] }
 0x36b   : > { %v5727_v20 = vcombine.high %v2366_v19, %v2366_v19  ;;  %v5726_v18 = vcombine.low %v2366_v19, %v2366_v19 }
 0x36d   : > { %2382 = vrot.lane.b32.xlu0 %v5727_v20, %s6474_s10  ;;  %2380 = vrot.lane.b32.xlu1 %v5726_v18, %s6474_s10  ;;  %v2367_v22 = vld [vmem:[#allocation2 + $0x8] sm:$0xff] }
 0x36e   : > { %v5729_v23 = vcombine.high %v2367_v22, %v2367_v22  ;;  %v5728_v24 = vcombine.low %v2367_v22, %v2367_v22  ;;  %v2917_v25 = vld [vmem:[#allocation2 + $0xc] sm:$0xff]  ;;  %v5744_v22 = vld [vmem:[%s7608_s1 + $0x58] sm:$0xf] }
 0x36f   : > { %v5754_v27 = vcombine.low %v2917_v25, %v2917_v25  ;;  %v5755_v28 = vcombine.high %v2917_v25, %v2917_v25  ;;  %v6375_v10 = vld [vmem:[#allocation2 + $0xc] ss:$0 sps:$4 sm:$0xff]  }
 0x370   : > { %v2828_v15 = vsel %vm323_vm3, %v6375_v10, 0 }
 0x371   : > { %2386 = vrot.lane.b32.xlu0 %v5729_v23, %s6474_s10  ;;  %2384 = vrot.lane.b32.xlu1 %v5728_v24, %s6474_s10 }
 0x375   : > { %2486 = vrot.lane.b32.xlu0 %v5727_v20, %s6475_s11  ;;  %2484 = vrot.lane.b32.xlu1 %v5726_v18, %s6475_s11 }
 0x379   : > { %2490 = vrot.lane.b32.xlu0 %v5729_v23, %s6475_s11  ;;  %2488 = vrot.lane.b32.xlu1 %v5728_v24, %s6475_s11 }
 0x37d   : > { %2592 = vrot.lane.b32.xlu0 %v5727_v20, %s6476_s12  ;;  %2590 = vrot.lane.b32.xlu1 %v5726_v18, %s6476_s12 }
 0x381   : > { %2596 = vrot.lane.b32.xlu0 %v5729_v23, %s6476_s12  ;;  %2594 = vrot.lane.b32.xlu1 %v5728_v24, %s6476_s12 }
 0x385   : > { %2701 = vrot.lane.b32.xlu0 %v5727_v20, %s6477_s13  ;;  %2699 = vrot.lane.b32.xlu1 %v5726_v18, %s6477_s13 }
 0x389   : > { %2705 = vrot.lane.b32.xlu0 %v5729_v23, %s6477_s13  ;;  %2703 = vrot.lane.b32.xlu1 %v5728_v24, %s6477_s13 }
 0x38d   : > { %2930 = vrot.lane.b32.xlu0 %v7015_v26, %s6478_s14  ;;  %2932 = vrot.lane.b32.xlu1 %v5754_v27, %s6478_s14 }
 0x391   : > { %2934 = vrot.lane.b32.xlu0 %v5755_v28, %s6478_s14  ;;  %2928 = vrot.lane.b32.xlu1 %v7020_v29, %s6478_s14 }
 0x395   : > { %3039 = vrot.lane.b32.xlu0 %v7015_v26, %s6479_s15  ;;  %3041 = vrot.lane.b32.xlu1 %v5754_v27, %s6479_s15 }
 0x399   : > { %3043 = vrot.lane.b32.xlu0 %v5755_v28, %s6479_s15  ;;  %3037 = vrot.lane.b32.xlu1 %v7020_v29, %s6479_s15 }
 0x39d   : > { %3148 = vrot.lane.b32.xlu0 %v7015_v26, %s6480_s16  ;;  %3150 = vrot.lane.b32.xlu1 %v5754_v27, %s6480_s16 }
 0x3a1   : > { %3152 = vrot.lane.b32.xlu0 %v5755_v28, %s6480_s16  ;;  %3146 = vrot.lane.b32.xlu1 %v7020_v29, %s6480_s16 }
 0x3a5   : > { %3257 = vrot.lane.b32.xlu0 %v7015_v26, %s6481_s17  ;;  %3255 = vrot.lane.b32.xlu1 %v7020_v29, %s6481_s17 }
 0x3a9   : > { %3261 = vrot.lane.b32.xlu0 %v5755_v28, %s6481_s17  ;;  %3259 = vrot.lane.b32.xlu1 %v5754_v27, %s6481_s17 }
 0x3ad   : > { %3366 = vperm.xlu1 %6352, %v5771_v30  }
 0x3df   : > { %v2383_v31 = vpop.permute.xlu0 %2382  ;;  %v2381_v32 = vpop.permute.xlu1 %2380 }
 0x3e0   : > { %v2388_v33 = vsel %vm315_vm2, %v2381_v32, %v2383_v31  ;;  %v5751_v32 = vld [vmem:[%s7608_s1 + $0x5c] sm:$0xf] }
 0x3e1   : > { %v2395_v38 = vsel %vm323_vm3, %v2388_v33, 0 }
 0x3e3   : > { %v2387_v34 = vpop.permute.xlu0 %2386  ;;  %v2385_v35 = vpop.permute.xlu1 %2384 }
 0x3e4   : > { %v2389_v36 = vsel %vm315_vm2, %v2383_v31, %v2385_v35  ;;  %v2390_v37 = vsel %vm315_vm2, %v2385_v35, %v2387_v34 }
 0x3e5   : > { %v2401_v39 = vsel %vm323_vm3, %v2390_v37, 0  ;;  %5730 = vmatprep.subr.msk.bf16.mxu0 %vm323_vm3, %v2389_v36 }
 0x3e6   : > { %2404 = vmatpush1.bf16.msra.mxu0 %v2395_v38  ;;  %6097 = vmatpush3.bf16.msra.mxu1 %v2401_v39 }
 0x3e7   : > { %v2487_v41 = vpop.permute.xlu0 %2486  ;;  %v2485_v44 = vpop.permute.xlu1 %2484  ;;  %6102 = vmatprep.subr.bf16.mxu1 %v6472_v3 }
 0x3e8   : > { %v2492_v46 = vsel %vm422_vm5, %v2485_v44, %v2487_v41  ;;  %v5759_v44 = vld [vmem:[%s7608_s1 + $0x60] sm:$0xf] }
 0x3e9   : > { %5731 = vmatmul.mubr.msk.bf16.vlgmr.msra.gmra.mrb[72].mxu0 %vm319_vm4, %v5725_v40  ;;  %6099 = vmatmul.mubr.msk.bf16.vlgmr.msra.gmra.mrb[72].mxu1 %vm319_vm4, %v5725_v40  ;;  %v2499_v21 = vsel %vm323_vm3, %v2492_v46, 0 }
 0x3ea   : > { %2539 = vmatprep.mubr.bf16.mxu0 %v6471_v0  ;;  %6104 = vmatprep.mubr.msk.bf16.mxu1 %vm6473_vm1, %v6472_v3 }
 0x3eb   : > { %v2491_v47 = vpop.permute.xlu0 %2490  ;;  %v2489_v48 = vpop.permute.xlu1 %2488 }
 0x3ec   : > { %v2493_v49 = vsel %vm422_vm5, %v2487_v41, %v2489_v48  ;;  %v2494_v50 = vsel %vm422_vm5, %v2489_v48, %v2491_v47 }
 0x3ed   : > { %v2505_v51 = vsel %vm323_vm3, %v2494_v50, 0  ;;  %5733 = vmatprep.subr.msk.bf16.mxu0 %vm323_vm3, %v2493_v49 }
 0x3ee   : > { %2508 = vmatpush1.bf16.msra.mxu0 %v2499_v21  ;;  %6103 = vmatpush3.bf16.msra.mxu1 %v2505_v51 }
 0x3ef   : > { %v2593_v53 = vpop.permute.xlu0 %2592  ;;  %v2591_v54 = vpop.permute.xlu1 %2590  ;;  %6108 = vmatprep.subr.bf16.mxu1 %v6472_v3 }
 0x3f0   : > { %v2598_v55 = vsel %vm529_vm6, %v2591_v54, %v2593_v53  ;;  %v5763_v54 = vld [vmem:[%s7608_s1 + $0x64] sm:$0xf] }
 0x3f1   : > { %5734 = vmatmul.mubr.msk.bf16.vlgmr.msra.gmra.mrb[76].mxu0 %vm319_vm4, %v5724_v52  ;;  %6105 = vmatmul.mubr.msk.bf16.vlgmr.msra.gmra.mrb[76].mxu1 %vm319_vm4, %v5724_v52  ;;  %v2605_v60 = vsel %vm323_vm3, %v2598_v55, 0 }
 0x3f2   : > { %2645 = vmatprep.mubr.bf16.mxu0 %v6471_v0  ;;  %6110 = vmatprep.mubr.msk.bf16.mxu1 %vm6473_vm1, %v6472_v3 }
 0x3f3   : > { %v2597_v56 = vpop.permute.xlu0 %2596  ;;  %v2595_v57 = vpop.permute.xlu1 %2594 }
 0x3f4   : > { %v2599_v58 = vsel %vm529_vm6, %v2593_v53, %v2595_v57  ;;  %v2600_v59 = vsel %vm529_vm6, %v2595_v57, %v2597_v56  ;;  %v5767_v57 = vld [vmem:[%s7608_s1 + $0x68] sm:$0xf] }
 0x3f5   : > { %v2611_v61 = vsel %vm323_vm3, %v2600_v59, 0  ;;  %5737 = vmatprep.subr.msk.bf16.mxu0 %vm323_vm3, %v2599_v58 }
 0x3f6   : > { %2614 = vmatpush1.bf16.msra.mxu0 %v2605_v60  ;;  %6109 = vmatpush3.bf16.msra.mxu1 %v2611_v61 }
 0x3f7   : > { %v2702_v63 = vpop.permute.xlu0 %2701  ;;  %v2700_v1 = vpop.permute.xlu1 %2699  ;;  %6114 = vmatprep.subr.bf16.mxu1 %v6472_v3 }
 0x3f8   : > { %v2707_v2 = vsel %vm639_vm7, %v2700_v1, %v2702_v63 }
 0x3f9   : > { %5738 = vmatmul.mubr.msk.bf16.vlgmr.msra.gmra.mrb[80].mxu0 %vm319_vm4, %v5736_v62  ;;  %6111 = vmatmul.mubr.msk.bf16.vlgmr.msra.gmra.mrb[80].mxu1 %vm319_vm4, %v5736_v62  ;;  %v2714_v8 = vsel %vm323_vm3, %v2707_v2, 0 }
 0x3fa   : > { %2754 = vmatprep.mubr.bf16.mxu0 %v6471_v0  ;;  %6116 = vmatprep.mubr.msk.bf16.mxu1 %vm6473_vm1, %v6472_v3 }
 0x3fb   : > { %v2706_v4 = vpop.permute.xlu0 %2705  ;;  %v2704_v5 = vpop.permute.xlu1 %2703 }
 0x3fc   : > { %v2708_v6 = vsel %vm639_vm7, %v2702_v63, %v2704_v5  ;;  %v2709_v7 = vsel %vm639_vm7, %v2704_v5, %v2706_v4 }
 0x3fd   : > { %v2720_v9 = vsel %vm323_vm3, %v2709_v7, 0  ;;  %5741 = vmatprep.subr.msk.bf16.mxu0 %vm323_vm3, %v2708_v6 }
 0x3fe   : > { %2723 = vmatpush1.bf16.msra.mxu0 %v2714_v8  ;;  %6115 = vmatpush3.bf16.msra.mxu1 %v2720_v9 }
 0x3ff   : > { %v2931_v12 = vpop.permute.xlu0 %2930  ;;  %5748 = vmatprep.subr.msk.bf16.mxu0 %vm323_vm3, %v7015_v26  ;;  %v2933_v13 = vpop.permute.xlu1 %2932  ;;  %6120 = vmatprep.subr.bf16.mxu1 %v6472_v3 }
 0x400   : > { %v2937_v16 = vsel %vm7643_vm8, %v2931_v12, %v2933_v13  ;;  %vm7649_vm8 = vcmask 900096  }
 0x401   : > { %5742 = vmatmul.mubr.msk.bf16.vlgmr.msra.gmra.mrb[84].mxu0 %vm319_vm4, %v5740_v11  ;;  %6117 = vmatmul.mubr.msk.bf16.vlgmr.msra.gmra.mrb[84].mxu1 %vm319_vm4, %v5740_v11 }
 0x402   : > { %2831 = vmatpush1.bf16.msra.mxu0 %v2822_v14  ;;  %6121 = vmatpush3.bf16.msra.mxu1 %v2828_v15 }
 0x403   : > { %v2935_v17 = vpop.permute.xlu0 %2934  ;;  %5756 = vmatprep.subr.msk.bf16.mxu0 %vm323_vm3, %v2937_v16  ;;  %v2929_v19 = vpop.permute.xlu1 %2928  ;;  %2862 = vmatprep.mubr.bf16.mxu0 %v6471_v0 }
 0x404   : > { %6122 = vmatprep.mubr.msk.bf16.mxu1 %vm6473_vm1, %v6472_v3  ;;  %6126 = vmatprep.subr.bf16.mxu1 %v6472_v3  ;;  %v2938_v20 = vsel %vm7644_vm14, %v2933_v13, %v2935_v17  ;;  %v2936_v18 = vsel %vm7645_vm15, %v2929_v19, %v2931_v12  ;;  %vm7650_vm14 = vmmov %vm7649_vm8 }
 0x405   : > { %v2949_v26 = vsel %vm323_vm3, %v2938_v20, 0  ;;  %v2943_v27 = vsel %vm323_vm3, %v2936_v18, 0  ;;  %vm7651_vm15 = vmmov %vm7649_vm8 }
 0x407   : > { %v3040_v23 = vpop.permute.xlu0 %3039  ;;  %v3042_v24 = vpop.permute.xlu1 %3041 }
 0x408   : > { %v3046_v25 = vsel %vm7646_vm0, %v3040_v23, %v3042_v24  ;;  %vm7652_vm0 = vcmask 891904  }
 0x409   : > { %5749 = vmatmul.mubr.msk.bf16.vlgmr.msra.gmra.mrb[88].mxu0 %vm319_vm4, %v5744_v22  ;;  %6123 = vmatmul.mubr.msk.bf16.vlgmr.msra.gmra.mrb[88].mxu1 %vm319_vm4, %v5744_v22 }
 0x40a   : > { %2952 = vmatpush1.bf16.msra.mxu0 %v2943_v27  ;;  %6127 = vmatpush3.bf16.msra.mxu1 %v2949_v26 }
 0x40b   : > { %5760 = vmatprep.subr.msk.bf16.mxu0 %vm323_vm3, %v3046_v25  ;;  %v3044_v28 = vpop.permute.xlu0 %3043  ;;  %v3038_v29 = vpop.permute.xlu1 %3037  ;;  %2983 = vmatprep.mubr.bf16.mxu0 %v6471_v0 }
 0x40c   : > { %6128 = vmatprep.mubr.msk.bf16.mxu1 %vm6473_vm1, %v6472_v3  ;;  %6132 = vmatprep.subr.bf16.mxu1 %v6472_v3  ;;  %v3047_v30 = vsel %vm7647_vm12, %v3042_v24, %v3044_v28  ;;  %v3045_v31 = vsel %vm7648_vm13, %v3038_v29, %v3040_v23  ;;  %vm7653_vm12 = vmmov %vm7652_vm0 }
 0x40d   : > { %v3058_v36 = vsel %vm323_vm3, %v3047_v30, 0  ;;  %v3052_v37 = vsel %vm323_vm3, %v3045_v31, 0  ;;  %vm7654_vm13 = vmmov %vm7652_vm0 }
 0x40f   : > { %v3149_v33 = vpop.permute.xlu0 %3148  ;;  %v3151_v34 = vpop.permute.xlu1 %3150 }
 0x410   : > { %v3155_v35 = vsel %vm7649_vm8, %v3149_v33, %v3151_v34  ;;  %vm7655_vm8 = vcmask 1039360  }
 0x411   : > { %5757 = vmatmul.mubr.msk.bf16.vlgmr.msra.gmra.mrb[92].mxu0 %vm319_vm4, %v5751_v32  ;;  %6129 = vmatmul.mubr.msk.bf16.vlgmr.msra.gmra.mrb[92].mxu1 %vm319_vm4, %v5751_v32 }
 0x412   : > { %3061 = vmatpush1.bf16.msra.mxu0 %v3052_v37  ;;  %6133 = vmatpush3.bf16.msra.mxu1 %v3058_v36 }
 0x413   : > { %5764 = vmatprep.subr.msk.bf16.mxu0 %vm323_vm3, %v3155_v35  ;;  %v3153_v38 = vpop.permute.xlu0 %3152  ;;  %v3147_v39 = vpop.permute.xlu1 %3146  ;;  %3092 = vmatprep.mubr.bf16.mxu0 %v6471_v0 }
 0x414   : > { %6134 = vmatprep.mubr.msk.bf16.mxu1 %vm6473_vm1, %v6472_v3  ;;  %6138 = vmatprep.subr.bf16.mxu1 %v6472_v3  ;;  %v3156_v40 = vsel %vm7650_vm14, %v3151_v34, %v3153_v38  ;;  %v3154_v41 = vsel %vm7651_vm15, %v3147_v39, %v3149_v33  ;;  %vm7656_vm14 = vmmov %vm7655_vm8 }
 0x415   : > { %v3167_v48 = vsel %vm323_vm3, %v3156_v40, 0  ;;  %v3161_v49 = vsel %vm323_vm3, %v3154_v41, 0  ;;  %vm7657_vm15 = vmmov %vm7655_vm8 }
 0x417   : > { %v3258_v46 = vpop.permute.xlu0 %3257  ;;  %v3256_v47 = vpop.permute.xlu1 %3255 }
 0x418   : > { %v3263_v52 = vsel %vm7653_vm12, %v3256_v47, %v3258_v46 }
 0x419   : > { %5761 = vmatmul.mubr.msk.bf16.vlgmr.msra.gmra.mrb[96].mxu0 %vm319_vm4, %v5759_v44  ;;  %6135 = vmatmul.mubr.msk.bf16.vlgmr.msra.gmra.mrb[96].mxu1 %vm319_vm4, %v5759_v44  ;;  %v3270_v55 = vsel %vm323_vm3, %v3263_v52, 0 }
 0x41a   : > { %3170 = vmatpush1.bf16.msra.mxu0 %v3161_v49  ;;  %6139 = vmatpush3.bf16.msra.mxu1 %v3167_v48 }
 0x41b   : > { %v3262_v50 = vpop.permute.xlu0 %3261  ;;  %v3260_v21 = vpop.permute.xlu1 %3259  ;;  %3201 = vmatprep.mubr.bf16.mxu0 %v6471_v0  ;;  %6140 = vmatprep.mubr.msk.bf16.mxu1 %vm6473_vm1, %v6472_v3 }
 0x41c   : > { %v3264_v51 = vsel %vm7652_vm0, %v3258_v46, %v3260_v21  ;;  %6144 = vmatprep.subr.bf16.mxu1 %v6472_v3  ;;  %v3265_v53 = vsel %vm7654_vm13, %v3260_v21, %v3262_v50  ;;  %vm7658_vm0 = vcmask 908288  }
 0x41d   : > { %5768 = vmatprep.subr.msk.bf16.mxu0 %vm323_vm3, %v3264_v51  ;;  %v3276_v56 = vsel %vm323_vm3, %v3265_v53, 0  ;;  %vm7659_vm12 = vmmov %vm7658_vm0 }
 0x41e   : > { %vm7660_vm13 = vmmov %vm7658_vm0 }
 0x421   : > { %5765 = vmatmul.mubr.msk.bf16.vlgmr.msra.gmra.mrb[100].mxu0 %vm319_vm4, %v5763_v54  ;;  %6141 = vmatmul.mubr.msk.bf16.vlgmr.msra.gmra.mrb[100].mxu1 %vm319_vm4, %v5763_v54 }
 0x422   : > { %3279 = vmatpush1.bf16.msra.mxu0 %v3270_v55  ;;  %6145 = vmatpush3.bf16.msra.mxu1 %v3276_v56 }
 0x423   : > { %3310 = vmatprep.mubr.bf16.mxu0 %v6471_v0  ;;  %6146 = vmatprep.mubr.msk.bf16.mxu1 %vm6473_vm1, %v6472_v3 }
 0x424   : > { %6150 = vmatprep.subr.bf16.mxu1 %v6472_v3 }
 0x429   : > { %5769 = vmatmul.mubr.msk.bf16.vlgmr.msra.gmra.mrb[104].mxu0 %vm319_vm4, %v5767_v57  ;;  %6147 = vmatmul.mubr.msk.bf16.vlgmr.msra.gmra.mrb[104].mxu1 %vm319_vm4, %v5767_v57 }
 0x42a   : > { %3464 = vmatprep.mubr.bf16.mxu0 %v6471_v0  ;;  %6152 = vmatprep.mubr.msk.bf16.mxu1 %vm6473_vm1, %v6472_v3 }
 0x4bc   : > { %v2437_v58 = vpop.f32.mrb[72].mxu0  ;;  %v2478_v59 = vpop.f32.mrb[72].mxu1 }
 0x4bd   : > { %v2439_v60 = vpop.f32.mrb[73].mxu0  ;;  %v6100_v61 = vpop.f32.mrb[73].mxu1 }
 0x4be   : > { %v2441_v62 = vpop.f32.mrb[74].mxu0  ;;  %v2481_v63 = vpop.f32.mrb[74].mxu1 }
 0x4bf   : > { %v2442_v1 = vpop.f32.mrb[75].mxu0  ;;  %v6101_v2 = vpop.f32.mrb[75].mxu1 }
 0x4c4   : > { %v2541_v4 = vpop.f32.mrb[76].mxu0  ;;  %v2582_v5 = vpop.f32.mrb[76].mxu1 }
 0x4c5   : > { %v2542_v6 = vadd.f32 %v2541_v4, %v2437_v58  ;;  %v2583_v7 = vadd.f32 %v2582_v5, %v2478_v59  ;;  %v2543_v8 = vpop.f32.mrb[77].mxu0  ;;  %v6106_v9 = vpop.f32.mrb[77].mxu1 }
 0x4c6   : > { %v2544_v10 = vadd.f32 %v2543_v8, %v2439_v60  ;;  %v2545_v11 = vpop.f32.mrb[78].mxu0  ;;  %v2585_v12 = vpop.f32.mrb[78].mxu1 }
 0x4c7   : > { %v2546_v13 = vpop.f32.mrb[79].mxu0  ;;  %v6107_v14 = vpop.f32.mrb[79].mxu1 }
 0x4cc   : > { %v2647_v15 = vpop.f32.mrb[80].mxu0  ;;  %v2688_v16 = vpop.f32.mrb[80].mxu1 }
 0x4cd   : > { %v2694_v17 = vadd.f32 %v2647_v15, %v2542_v6  ;;  %v2696_v19 = vadd.f32 %v2688_v16, %v2583_v7  ;;  %v2649_v20 = vpop.f32.mrb[81].mxu0  ;;  %v6112_v18 = vpop.f32.mrb[81].mxu1 }
 0x4ce   : > { %v2695_v22 = vadd.f32 %v2649_v20, %v2544_v10  ;;  %v2651_v23 = vpop.f32.mrb[82].mxu0  ;;  %v2691_v24 = vpop.f32.mrb[82].mxu1 }
 0x4cf   : > { %v2652_v25 = vpop.f32.mrb[83].mxu0  ;;  %v6113_v26 = vpop.f32.mrb[83].mxu1 }
 0x4d0   : > { %v3367_v23 = vpop.permute.xlu1 %3366 }
 0x4d4   : > { %v2756_v27 = vpop.f32.mrb[84].mxu0  ;;  %v2797_v28 = vpop.f32.mrb[84].mxu1 }
 0x4d5   : > { %v2803_v29 = vadd.f32 %v2756_v27, %v2694_v17  ;;  %v2805_v30 = vadd.f32 %v2797_v28, %v2696_v19  ;;  %v2758_v31 = vpop.f32.mrb[85].mxu0  ;;  %v6118_v32 = vpop.f32.mrb[85].mxu1 }
 0x4d6   : > { %v2804_v33 = vadd.f32 %v2758_v31, %v2695_v22  ;;  %v2760_v34 = vpop.f32.mrb[86].mxu0  ;;  %v2800_v35 = vpop.f32.mrb[86].mxu1 }
 0x4d7   : > { %v2761_v36 = vpop.f32.mrb[87].mxu0  ;;  %v6119_v37 = vpop.f32.mrb[87].mxu1 }
 0x4dc   : > { %v2864_v38 = vpop.f32.mrb[88].mxu0  ;;  %v2905_v39 = vpop.f32.mrb[88].mxu1 }
 0x4dd   : > { %v2911_v40 = vadd.f32 %v2864_v38, %v2803_v29  ;;  %v2913_v41 = vadd.f32 %v2905_v39, %v2805_v30  ;;  %v2866_v44 = vpop.f32.mrb[89].mxu0  ;;  %v6124_v46 = vpop.f32.mrb[89].mxu1 }
 0x4de   : > { %v2912_v47 = vadd.f32 %v2866_v44, %v2804_v33  ;;  %v2868_v48 = vpop.f32.mrb[90].mxu0  ;;  %v2908_v49 = vpop.f32.mrb[90].mxu1 }
 0x4df   : > { %v2869_v50 = vpop.f32.mrb[91].mxu0  ;;  %v6125_v21 = vpop.f32.mrb[91].mxu1 }
 0x4e4   : > { %v2985_v51 = vpop.f32.mrb[92].mxu0  ;;  %v3026_v52 = vpop.f32.mrb[92].mxu1 }
 0x4e5   : > { %v3032_v53 = vadd.f32 %v2985_v51, %v2911_v40  ;;  %v3034_v54 = vadd.f32 %v3026_v52, %v2913_v41  ;;  %v2987_v55 = vpop.f32.mrb[93].mxu0  ;;  %v6130_v56 = vpop.f32.mrb[93].mxu1 }
 0x4e6   : > { %v3033_v57 = vadd.f32 %v2987_v55, %v2912_v47  ;;  %v2989_v58 = vpop.f32.mrb[94].mxu0  ;;  %v3029_v59 = vpop.f32.mrb[94].mxu1 }
 0x4e7   : > { %v2990_v60 = vpop.f32.mrb[95].mxu0  ;;  %v6131_v61 = vpop.f32.mrb[95].mxu1  ;;  %v5821_v59 = vld [vmem:[%s7609_s2 + $0x18] sm:$0xff] }
 0x4ec   : > { %v3094_v62 = vpop.f32.mrb[96].mxu0  ;;  %v3135_v63 = vpop.f32.mrb[96].mxu1 }
 0x4ed   : > { %v3141_v1 = vadd.f32 %v3094_v62, %v3032_v53  ;;  %v3143_v2 = vadd.f32 %v3135_v63, %v3034_v54  ;;  %v3096_v4 = vpop.f32.mrb[97].mxu0  ;;  %v6136_v5 = vpop.f32.mrb[97].mxu1 }
 0x4ee   : > { %v3142_v6 = vadd.f32 %v3096_v4, %v3033_v57  ;;  %v3098_v7 = vpop.f32.mrb[98].mxu0  ;;  %v3138_v8 = vpop.f32.mrb[98].mxu1 }
 0x4ef   : > { %v3099_v9 = vpop.f32.mrb[99].mxu0  ;;  %v6137_v10 = vpop.f32.mrb[99].mxu1  ;;  %v5775_v7 = vld [vmem:[%s7608_s1 + $0x70] sm:$0xf] }
 0x4f4   : > { %v3203_v11 = vpop.f32.mrb[100].mxu0  ;;  %v3244_v12 = vpop.f32.mrb[100].mxu1 }
 0x4f5   : > { %v3250_v13 = vadd.f32 %v3203_v11, %v3141_v1  ;;  %v3252_v14 = vadd.f32 %v3244_v12, %v3143_v2  ;;  %v3205_v15 = vpop.f32.mrb[101].mxu0  ;;  %v6142_v16 = vpop.f32.mrb[101].mxu1 }
 0x4f6   : > { %v3251_v17 = vadd.f32 %v3205_v15, %v3142_v6  ;;  %v3207_v19 = vpop.f32.mrb[102].mxu0  ;;  %v3247_v20 = vpop.f32.mrb[102].mxu1 }
 0x4f7   : > { %v3208_v18 = vpop.f32.mrb[103].mxu0  ;;  %v6143_v22 = vpop.f32.mrb[103].mxu1 }
 0x4fc   : > { %v3312_v24 = vpop.f32.mrb[104].mxu0  ;;  %v3353_v25 = vpop.f32.mrb[104].mxu1 }
 0x4fd   : > { %v3359_v26 = vadd.f32 %v3312_v24, %v3250_v13  ;;  %v3361_v27 = vadd.f32 %v3353_v25, %v3252_v14  ;;  %v3314_v28 = vpop.f32.mrb[105].mxu0  ;;  %v6148_v29 = vpop.f32.mrb[105].mxu1 }
 0x4fe   : > { %v3360_v30 = vadd.f32 %v3314_v28, %v3251_v17  ;;  %v3316_v31 = vpop.f32.mrb[106].mxu0  ;;  %v3356_v32 = vpop.f32.mrb[106].mxu1  ;;  %v5774_v17 = vld [vmem:[%s7608_s1 + $0x6c] sm:$0xf]  ;;  %v5786_v28 = vld [vmem:[%s7608_s1 + $0x74] sm:$0xf] }
 0x4ff   : > { %v3369_v33 = vadd.f32 %v3367_v23, %v3359_v26  ;;  %v3371_v34 = vadd.f32 %v3367_v23, %v3361_v27  ;;  %v3317_v35 = vpop.f32.mrb[107].mxu0  ;;  %v6149_v36 = vpop.f32.mrb[107].mxu1 }
 0x500   : > { %v3370_v37 = vadd.f32 %v3367_v23, %v3360_v30 }
 0x501   : > { %v3372_v38 = vmax.f32 %v3369_v33, 0.0  ;;  %v3374_v39 = vmax.f32 %v3371_v34, 0.0 }
 0x502   : > { %v3373_v40 = vmax.f32 %v3370_v37, 0.0 }
 0x503   : > { %v3375_v41 = vsel %vm6792_vm10, %v3372_v38, 0.0  ;;  %v3377_v44 = vsel %vm6798_vm11, %v3374_v39, 0.0  ;;  %v5790_v39 = vld [vmem:[%s7608_s1 + $0x78] sm:$0xf] }
 0x504   : > { %v3376_v46 = vsel %vm6802_vm9, %v3373_v40, 0.0  ;;  %v5895_v47 = vpack.c.bf16 %v3377_v44, %v3377_v44  ;;  %v7207_v58 = vpack.c.bf16 %v3375_v41, %v3375_v41 }
 0x505   : > { %v5894_v48 = vpack.c.bf16 %v3376_v46, %v3375_v41  ;;  %v7202_v55 = vpack.c.bf16 %v3376_v46, %v3376_v46 }
 0x506   : > { %3392 = vst [vmem:[#allocation2 + $0xc] sm:$0xf] %v5895_v47  ;;  %v3851_v44 = vsel %vm323_vm3, %v7207_v58, 0 }
 0x507   : > { %3391 = vst [vmem:[#allocation2 + $0x4] sm:$0xff] %v5894_v48 }
 0x50d   : > { %v3946_v54 = vld [vmem:[#allocation2 + $0xc] sm:$0xff] }
 0x50e   : > { %v3395_v49 = vld [vmem:[#allocation2] sm:$0xff]  ;;  %v3396_v51 = vld [vmem:[#allocation2 + $0x8] sm:$0xff]  ;;  %v5804_v56 = vcombine.low %v3946_v54, %v3946_v54  ;;  %v5805_v57 = vcombine.high %v3946_v54, %v3946_v54 }
 0x50f   : > { %v5777_v50 = vcombine.high %v3395_v49, %v3395_v49  ;;  %v5776_v21 = vcombine.low %v3395_v49, %v3395_v49  ;;  %v5779_v52 = vcombine.high %v3396_v51, %v3396_v51  ;;  %v5778_v53 = vcombine.low %v3396_v51, %v3396_v51  ;;  %v6382_v38 = vld [vmem:[#allocation2 + $0xc] ss:$0 sps:$4 sm:$0xff]   ;;  %v5794_v51 = vld [vmem:[%s7608_s1 + $0x7c] sm:$0xf] }
 0x510   : > { %v3857_v46 = vsel %vm323_vm3, %v6382_v38, 0 }
 0x511   : > { %3411 = vrot.lane.b32.xlu1 %v5777_v50, %s6474_s10  ;;  %3409 = vrot.lane.b32.xlu0 %v5776_v21, %s6474_s10 }
 0x515   : > { %3415 = vrot.lane.b32.xlu1 %v5779_v52, %s6474_s10  ;;  %3413 = vrot.lane.b32.xlu0 %v5778_v53, %s6474_s10 }
 0x519   : > { %3515 = vrot.lane.b32.xlu1 %v5777_v50, %s6475_s11  ;;  %3513 = vrot.lane.b32.xlu0 %v5776_v21, %s6475_s11 }
 0x51d   : > { %3519 = vrot.lane.b32.xlu1 %v5779_v52, %s6475_s11  ;;  %3517 = vrot.lane.b32.xlu0 %v5778_v53, %s6475_s11 }
 0x521   : > { %3621 = vrot.lane.b32.xlu1 %v5777_v50, %s6476_s12  ;;  %3619 = vrot.lane.b32.xlu0 %v5776_v21, %s6476_s12 }
 0x525   : > { %3625 = vrot.lane.b32.xlu1 %v5779_v52, %s6476_s12  ;;  %3623 = vrot.lane.b32.xlu0 %v5778_v53, %s6476_s12 }
 0x529   : > { %3730 = vrot.lane.b32.xlu1 %v5777_v50, %s6477_s13  ;;  %3728 = vrot.lane.b32.xlu0 %v5776_v21, %s6477_s13 }
 0x52d   : > { %3734 = vrot.lane.b32.xlu1 %v5779_v52, %s6477_s13  ;;  %3732 = vrot.lane.b32.xlu0 %v5778_v53, %s6477_s13 }
 0x531   : > { %3959 = vrot.lane.b32.xlu1 %v7202_v55, %s6478_s14  ;;  %3961 = vrot.lane.b32.xlu0 %v5804_v56, %s6478_s14 }
 0x535   : > { %3963 = vrot.lane.b32.xlu1 %v5805_v57, %s6478_s14  ;;  %3957 = vrot.lane.b32.xlu0 %v7207_v58, %s6478_s14 }
 0x539   : > { %4068 = vrot.lane.b32.xlu1 %v7202_v55, %s6479_s15  ;;  %4070 = vrot.lane.b32.xlu0 %v5804_v56, %s6479_s15 }
 0x53d   : > { %4072 = vrot.lane.b32.xlu1 %v5805_v57, %s6479_s15  ;;  %4066 = vrot.lane.b32.xlu0 %v7207_v58, %s6479_s15 }
 0x541   : > { %4177 = vrot.lane.b32.xlu1 %v7202_v55, %s6480_s16  ;;  %4179 = vrot.lane.b32.xlu0 %v5804_v56, %s6480_s16 }
 0x545   : > { %4181 = vrot.lane.b32.xlu1 %v5805_v57, %s6480_s16  ;;  %4175 = vrot.lane.b32.xlu0 %v7207_v58, %s6480_s16 }
 0x549   : > { %4286 = vrot.lane.b32.xlu1 %v7202_v55, %s6481_s17  ;;  %4284 = vrot.lane.b32.xlu0 %v7207_v58, %s6481_s17 }
 0x54d   : > { %4290 = vrot.lane.b32.xlu1 %v5805_v57, %s6481_s17  ;;  %4288 = vrot.lane.b32.xlu0 %v5804_v56, %s6481_s17 }
 0x551   : > { %4395 = vperm.xlu0 %6351, %v5821_v59  }
 0x583   : > { %v3412_v60 = vpop.permute.xlu1 %3411  ;;  %v3410_v61 = vpop.permute.xlu0 %3409 }
 0x584   : > { %v3417_v62 = vsel %vm315_vm2, %v3410_v61, %v3412_v60  ;;  %v5801_v61 = vld [vmem:[%s7608_s1 + $0x80] sm:$0xf] }
 0x585   : > { %v3424_v5 = vsel %vm323_vm3, %v3417_v62, 0 }
 0x587   : > { %v3416_v63 = vpop.permute.xlu1 %3415  ;;  %v3414_v1 = vpop.permute.xlu0 %3413 }
 0x588   : > { %v3418_v2 = vsel %vm315_vm2, %v3412_v60, %v3414_v1  ;;  %v3419_v4 = vsel %vm315_vm2, %v3414_v1, %v3416_v63 }
 0x589   : > { %v3430_v6 = vsel %vm323_vm3, %v3419_v4, 0  ;;  %5780 = vmatprep.subr.msk.bf16.mxu0 %vm323_vm3, %v3418_v2 }
 0x58a   : > { %3433 = vmatpush1.bf16.msra.mxu0 %v3424_v5  ;;  %6151 = vmatpush3.bf16.msra.mxu1 %v3430_v6 }
 0x58b   : > { %v3516_v8 = vpop.permute.xlu1 %3515  ;;  %v3514_v9 = vpop.permute.xlu0 %3513  ;;  %6156 = vmatprep.subr.bf16.mxu1 %v6472_v3 }
 0x58c   : > { %v3521_v10 = vsel %vm422_vm5, %v3514_v9, %v3516_v8  ;;  %v5809_v9 = vld [vmem:[%s7608_s1 + $0x84] sm:$0xf] }
 0x58d   : > { %5781 = vmatmul.mubr.msk.bf16.vlgmr.msra.gmra.mrb[108].mxu0 %vm319_vm4, %v5775_v7  ;;  %6153 = vmatmul.mubr.msk.bf16.vlgmr.msra.gmra.mrb[108].mxu1 %vm319_vm4, %v5775_v7  ;;  %v3528_v15 = vsel %vm323_vm3, %v3521_v10, 0 }
 0x58e   : > { %3568 = vmatprep.mubr.bf16.mxu0 %v6471_v0  ;;  %6158 = vmatprep.mubr.msk.bf16.mxu1 %vm6473_vm1, %v6472_v3 }
 0x58f   : > { %v3520_v11 = vpop.permute.xlu1 %3519  ;;  %v3518_v12 = vpop.permute.xlu0 %3517 }
 0x590   : > { %v3522_v13 = vsel %vm422_vm5, %v3516_v8, %v3518_v12  ;;  %v3523_v14 = vsel %vm422_vm5, %v3518_v12, %v3520_v11 }
 0x591   : > { %v3534_v16 = vsel %vm323_vm3, %v3523_v14, 0  ;;  %5783 = vmatprep.subr.msk.bf16.mxu0 %vm323_vm3, %v3522_v13 }
 0x592   : > { %3537 = vmatpush1.bf16.msra.mxu0 %v3528_v15  ;;  %6157 = vmatpush3.bf16.msra.mxu1 %v3534_v16 }
 0x593   : > { %v3622_v19 = vpop.permute.xlu1 %3621  ;;  %v3620_v20 = vpop.permute.xlu0 %3619  ;;  %6162 = vmatprep.subr.bf16.mxu1 %v6472_v3 }
 0x594   : > { %v3627_v18 = vsel %vm529_vm6, %v3620_v20, %v3622_v19  ;;  %v5813_v20 = vld [vmem:[%s7608_s1 + $0x88] sm:$0xf] }
 0x595   : > { %5784 = vmatmul.mubr.msk.bf16.vlgmr.msra.gmra.mrb[112].mxu0 %vm319_vm4, %v5774_v17  ;;  %6159 = vmatmul.mubr.msk.bf16.vlgmr.msra.gmra.mrb[112].mxu1 %vm319_vm4, %v5774_v17  ;;  %v3634_v26 = vsel %vm323_vm3, %v3627_v18, 0 }
 0x596   : > { %3674 = vmatprep.mubr.bf16.mxu0 %v6471_v0  ;;  %6164 = vmatprep.mubr.msk.bf16.mxu1 %vm6473_vm1, %v6472_v3 }
 0x597   : > { %v3626_v22 = vpop.permute.xlu1 %3625  ;;  %v3624_v23 = vpop.permute.xlu0 %3623 }
 0x598   : > { %v3628_v24 = vsel %vm529_vm6, %v3622_v19, %v3624_v23  ;;  %v3629_v25 = vsel %vm529_vm6, %v3624_v23, %v3626_v22  ;;  %v5817_v23 = vld [vmem:[%s7608_s1 + $0x8c] sm:$0xf] }
 0x599   : > { %v3640_v27 = vsel %vm323_vm3, %v3629_v25, 0  ;;  %5787 = vmatprep.subr.msk.bf16.mxu0 %vm323_vm3, %v3628_v24 }
 0x59a   : > { %3643 = vmatpush1.bf16.msra.mxu0 %v3634_v26  ;;  %6163 = vmatpush3.bf16.msra.mxu1 %v3640_v27 }
 0x59b   : > { %v3731_v29 = vpop.permute.xlu1 %3730  ;;  %v3729_v30 = vpop.permute.xlu0 %3728  ;;  %6168 = vmatprep.subr.bf16.mxu1 %v6472_v3 }
 0x59c   : > { %v3736_v31 = vsel %vm639_vm7, %v3729_v30, %v3731_v29 }
 0x59d   : > { %5788 = vmatmul.mubr.msk.bf16.vlgmr.msra.gmra.mrb[116].mxu0 %vm319_vm4, %v5786_v28  ;;  %6165 = vmatmul.mubr.msk.bf16.vlgmr.msra.gmra.mrb[116].mxu1 %vm319_vm4, %v5786_v28  ;;  %v3743_v36 = vsel %vm323_vm3, %v3736_v31, 0 }
 0x59e   : > { %3783 = vmatprep.mubr.bf16.mxu0 %v6471_v0  ;;  %6170 = vmatprep.mubr.msk.bf16.mxu1 %vm6473_vm1, %v6472_v3 }
 0x59f   : > { %v3735_v32 = vpop.permute.xlu1 %3734  ;;  %v3733_v33 = vpop.permute.xlu0 %3732 }
 0x5a0   : > { %v3737_v34 = vsel %vm639_vm7, %v3731_v29, %v3733_v33  ;;  %v3738_v35 = vsel %vm639_vm7, %v3733_v33, %v3735_v32 }
 0x5a1   : > { %v3749_v37 = vsel %vm323_vm3, %v3738_v35, 0  ;;  %5791 = vmatprep.subr.msk.bf16.mxu0 %vm323_vm3, %v3737_v34 }
 0x5a2   : > { %3752 = vmatpush1.bf16.msra.mxu0 %v3743_v36  ;;  %6169 = vmatpush3.bf16.msra.mxu1 %v3749_v37 }
 0x5a3   : > { %v3960_v40 = vpop.permute.xlu1 %3959  ;;  %5798 = vmatprep.subr.msk.bf16.mxu0 %vm323_vm3, %v7202_v55  ;;  %v3962_v41 = vpop.permute.xlu0 %3961  ;;  %6174 = vmatprep.subr.bf16.mxu1 %v6472_v3 }
 0x5a4   : > { %v3966_v47 = vsel %vm7655_vm8, %v3960_v40, %v3962_v41  ;;  %vm7661_vm8 = vcmask 900096  }
 0x5a5   : > { %5792 = vmatmul.mubr.msk.bf16.vlgmr.msra.gmra.mrb[120].mxu0 %vm319_vm4, %v5790_v39  ;;  %6171 = vmatmul.mubr.msk.bf16.vlgmr.msra.gmra.mrb[120].mxu1 %vm319_vm4, %v5790_v39 }
 0x5a6   : > { %3860 = vmatpush1.bf16.msra.mxu0 %v3851_v44  ;;  %6175 = vmatpush3.bf16.msra.mxu1 %v3857_v46 }
 0x5a7   : > { %v3964_v48 = vpop.permute.xlu1 %3963  ;;  %5806 = vmatprep.subr.msk.bf16.mxu0 %vm323_vm3, %v3966_v47  ;;  %v3958_v49 = vpop.permute.xlu0 %3957  ;;  %3891 = vmatprep.mubr.bf16.mxu0 %v6471_v0 }
 0x5a8   : > { %6176 = vmatprep.mubr.msk.bf16.mxu1 %vm6473_vm1, %v6472_v3  ;;  %6180 = vmatprep.subr.bf16.mxu1 %v6472_v3  ;;  %v3967_v50 = vsel %vm7656_vm14, %v3962_v41, %v3964_v48  ;;  %v3965_v21 = vsel %vm7657_vm15, %v3958_v49, %v3960_v40  ;;  %vm7662_vm14 = vmmov %vm7661_vm8 }
 0x5a9   : > { %v3978_v55 = vsel %vm323_vm3, %v3967_v50, 0  ;;  %v3972_v56 = vsel %vm323_vm3, %v3965_v21, 0  ;;  %vm7663_vm15 = vmmov %vm7661_vm8 }
 0x5ab   : > { %v4069_v52 = vpop.permute.xlu1 %4068  ;;  %v4071_v53 = vpop.permute.xlu0 %4070 }
 0x5ac   : > { %v4075_v54 = vsel %vm7658_vm0, %v4069_v52, %v4071_v53  ;;  %vm7664_vm0 = vcmask 891904  }
 0x5ad   : > { %5799 = vmatmul.mubr.msk.bf16.vlgmr.msra.gmra.mrb[124].mxu0 %vm319_vm4, %v5794_v51  ;;  %6177 = vmatmul.mubr.msk.bf16.vlgmr.msra.gmra.mrb[124].mxu1 %vm319_vm4, %v5794_v51 }
 0x5ae   : > { %3981 = vmatpush1.bf16.msra.mxu0 %v3972_v56  ;;  %6181 = vmatpush3.bf16.msra.mxu1 %v3978_v55 }
 0x5af   : > { %5810 = vmatprep.subr.msk.bf16.mxu0 %vm323_vm3, %v4075_v54  ;;  %v4073_v57 = vpop.permute.xlu1 %4072  ;;  %v4067_v58 = vpop.permute.xlu0 %4066  ;;  %4012 = vmatprep.mubr.bf16.mxu0 %v6471_v0 }
 0x5b0   : > { %6182 = vmatprep.mubr.msk.bf16.mxu1 %vm6473_vm1, %v6472_v3  ;;  %6186 = vmatprep.subr.bf16.mxu1 %v6472_v3  ;;  %v4076_v59 = vsel %vm7659_vm12, %v4071_v53, %v4073_v57  ;;  %v4074_v60 = vsel %vm7660_vm13, %v4067_v58, %v4069_v52  ;;  %vm7665_vm12 = vmmov %vm7664_vm0 }
 0x5b1   : > { %v4087_v2 = vsel %vm323_vm3, %v4076_v59, 0  ;;  %v4081_v4 = vsel %vm323_vm3, %v4074_v60, 0  ;;  %vm7666_vm13 = vmmov %vm7664_vm0 }
 0x5b3   : > { %v4178_v62 = vpop.permute.xlu1 %4177  ;;  %v4180_v63 = vpop.permute.xlu0 %4179 }
 0x5b4   : > { %v4184_v1 = vsel %vm7661_vm8, %v4178_v62, %v4180_v63 }
 0x5b5   : > { %5807 = vmatmul.mubr.msk.bf16.vlgmr.msra.gmra.mrb[128].mxu0 %vm319_vm4, %v5801_v61  ;;  %6183 = vmatmul.mubr.msk.bf16.vlgmr.msra.gmra.mrb[128].mxu1 %vm319_vm4, %v5801_v61 }
 0x5b6   : > { %4090 = vmatpush1.bf16.msra.mxu0 %v4081_v4  ;;  %6187 = vmatpush3.bf16.msra.mxu1 %v4087_v2 }
 0x5b7   : > { %5814 = vmatprep.subr.msk.bf16.mxu0 %vm323_vm3, %v4184_v1  ;;  %v4182_v5 = vpop.permute.xlu1 %4181  ;;  %v4176_v6 = vpop.permute.xlu0 %4175  ;;  %4121 = vmatprep.mubr.bf16.mxu0 %v6471_v0 }
 0x5b8   : > { %6188 = vmatprep.mubr.msk.bf16.mxu1 %vm6473_vm1, %v6472_v3  ;;  %6192 = vmatprep.subr.bf16.mxu1 %v6472_v3  ;;  %v4185_v7 = vsel %vm7662_vm14, %v4180_v63, %v4182_v5  ;;  %v4183_v8 = vsel %vm7663_vm15, %v4176_v6, %v4178_v62  ;;  %vm7674_vm14 = vmmov %vm7664_vm0 }
 0x5b9   : > { %v4196_v12 = vsel %vm323_vm3, %v4185_v7, 0  ;;  %v4190_v13 = vsel %vm323_vm3, %v4183_v8, 0  ;;  %vm7675_vm15 = vmmov %vm7661_vm8 }
 0x5bb   : > { %v4287_v10 = vpop.permute.xlu1 %4286  ;;  %v4285_v11 = vpop.permute.xlu0 %4284 }
 0x5bc   : > { %v4292_v17 = vsel %vm7665_vm12, %v4285_v11, %v4287_v10 }
 0x5bd   : > { %5811 = vmatmul.mubr.msk.bf16.vlgmr.msra.gmra.mrb[132].mxu0 %vm319_vm4, %v5809_v9  ;;  %6189 = vmatmul.mubr.msk.bf16.vlgmr.msra.gmra.mrb[132].mxu1 %vm319_vm4, %v5809_v9  ;;  %v4299_v18 = vsel %vm323_vm3, %v4292_v17, 0 }
 0x5be   : > { %4199 = vmatpush1.bf16.msra.mxu0 %v4190_v13  ;;  %6193 = vmatpush3.bf16.msra.mxu1 %v4196_v12 }
 0x5bf   : > { %v4291_v14 = vpop.permute.xlu1 %4290  ;;  %v4289_v15 = vpop.permute.xlu0 %4288  ;;  %4230 = vmatprep.mubr.bf16.mxu0 %v6471_v0  ;;  %6194 = vmatprep.mubr.msk.bf16.mxu1 %vm6473_vm1, %v6472_v3 }
 0x5c0   : > { %v4293_v16 = vsel %vm7664_vm0, %v4287_v10, %v4289_v15  ;;  %6198 = vmatprep.subr.bf16.mxu1 %v6472_v3  ;;  %v4294_v19 = vsel %vm7666_vm13, %v4289_v15, %v4291_v14 }
 0x5c1   : > { %5818 = vmatprep.subr.msk.bf16.mxu0 %vm323_vm3, %v4293_v16  ;;  %v4305_v22 = vsel %vm323_vm3, %v4294_v19, 0 }
 0x5c5   : > { %5815 = vmatmul.mubr.msk.bf16.vlgmr.msra.gmra.mrb[136].mxu0 %vm319_vm4, %v5813_v20  ;;  %6195 = vmatmul.mubr.msk.bf16.vlgmr.msra.gmra.mrb[136].mxu1 %vm319_vm4, %v5813_v20 }
 0x5c6   : > { %4308 = vmatpush1.bf16.msra.mxu0 %v4299_v18  ;;  %6199 = vmatpush3.bf16.msra.mxu1 %v4305_v22 }
 0x5c7   : > { %4339 = vmatprep.mubr.bf16.mxu0 %v6471_v0  ;;  %6200 = vmatprep.mubr.msk.bf16.mxu1 %vm6473_vm1, %v6472_v3 }
 0x5c8   : > { %6204 = vmatprep.subr.bf16.mxu1 %v6472_v3 }
 0x5cd   : > { %5819 = vmatmul.mubr.msk.bf16.vlgmr.msra.gmra.mrb[140].mxu0 %vm319_vm4, %v5817_v23  ;;  %6201 = vmatmul.mubr.msk.bf16.vlgmr.msra.gmra.mrb[140].mxu1 %vm319_vm4, %v5817_v23 }
 0x5ce   : > { %4499 = vmatprep.mubr.bf16.mxu0 %v6471_v0  ;;  %6206 = vmatprep.mubr.msk.bf16.mxu1 %vm6473_vm1, %v6472_v3 }
 0x660   : > { %v3466_v24 = vpop.f32.mrb[108].mxu0  ;;  %v3507_v25 = vpop.f32.mrb[108].mxu1 }
 0x661   : > { %v3468_v26 = vpop.f32.mrb[109].mxu0  ;;  %v6154_v27 = vpop.f32.mrb[109].mxu1 }
 0x662   : > { %v3470_v28 = vpop.f32.mrb[110].mxu0  ;;  %v3510_v29 = vpop.f32.mrb[110].mxu1 }
 0x663   : > { %v3471_v30 = vpop.f32.mrb[111].mxu0  ;;  %v6155_v31 = vpop.f32.mrb[111].mxu1 }
 0x668   : > { %v3570_v32 = vpop.f32.mrb[112].mxu0  ;;  %v3611_v33 = vpop.f32.mrb[112].mxu1 }
 0x669   : > { %v3571_v34 = vadd.f32 %v3570_v32, %v3466_v24  ;;  %v3612_v35 = vadd.f32 %v3611_v33, %v3507_v25  ;;  %v3572_v36 = vpop.f32.mrb[113].mxu0  ;;  %v6160_v37 = vpop.f32.mrb[113].mxu1 }
 0x66a   : > { %v3573_v38 = vadd.f32 %v3572_v36, %v3468_v26  ;;  %v3574_v39 = vpop.f32.mrb[114].mxu0  ;;  %v3614_v40 = vpop.f32.mrb[114].mxu1 }
 0x66b   : > { %v3575_v41 = vpop.f32.mrb[115].mxu0  ;;  %v6161_v44 = vpop.f32.mrb[115].mxu1 }
 0x670   : > { %v3676_v46 = vpop.f32.mrb[116].mxu0  ;;  %v3717_v47 = vpop.f32.mrb[116].mxu1 }
 0x671   : > { %v3723_v48 = vadd.f32 %v3676_v46, %v3571_v34  ;;  %v3725_v49 = vadd.f32 %v3717_v47, %v3612_v35  ;;  %v3678_v50 = vpop.f32.mrb[117].mxu0  ;;  %v6166_v21 = vpop.f32.mrb[117].mxu1 }
 0x672   : > { %v3724_v51 = vadd.f32 %v3678_v50, %v3573_v38  ;;  %v3680_v52 = vpop.f32.mrb[118].mxu0  ;;  %v3720_v53 = vpop.f32.mrb[118].mxu1 }
 0x673   : > { %v3681_v54 = vpop.f32.mrb[119].mxu0  ;;  %v6167_v55 = vpop.f32.mrb[119].mxu1 }
 0x674   : > { %v4396_v52 = vpop.permute.xlu0 %4395 }
 0x678   : > { %v3785_v56 = vpop.f32.mrb[120].mxu0  ;;  %v3826_v57 = vpop.f32.mrb[120].mxu1 }
 0x679   : > { %v3832_v58 = vadd.f32 %v3785_v56, %v3723_v48  ;;  %v3834_v59 = vadd.f32 %v3826_v57, %v3725_v49  ;;  %v3787_v60 = vpop.f32.mrb[121].mxu0  ;;  %v6172_v61 = vpop.f32.mrb[121].mxu1 }
 0x67a   : > { %v3833_v62 = vadd.f32 %v3787_v60, %v3724_v51  ;;  %v3789_v63 = vpop.f32.mrb[122].mxu0  ;;  %v3829_v1 = vpop.f32.mrb[122].mxu1 }
 0x67b   : > { %v3790_v2 = vpop.f32.mrb[123].mxu0  ;;  %v6173_v4 = vpop.f32.mrb[123].mxu1 }
 0x680   : > { %v3893_v5 = vpop.f32.mrb[124].mxu0  ;;  %v3934_v6 = vpop.f32.mrb[124].mxu1 }
 0x681   : > { %v3940_v7 = vadd.f32 %v3893_v5, %v3832_v58  ;;  %v3942_v8 = vadd.f32 %v3934_v6, %v3834_v59  ;;  %v3895_v9 = vpop.f32.mrb[125].mxu0  ;;  %v6178_v10 = vpop.f32.mrb[125].mxu1 }
 0x682   : > { %v3941_v11 = vadd.f32 %v3895_v9, %v3833_v62  ;;  %v3897_v12 = vpop.f32.mrb[126].mxu0  ;;  %v3937_v13 = vpop.f32.mrb[126].mxu1 }
 0x683   : > { %v3898_v14 = vpop.f32.mrb[127].mxu0  ;;  %v6179_v15 = vpop.f32.mrb[127].mxu1 }
 0x688   : > { %v4014_v16 = vpop.f32.mrb[128].mxu0  ;;  %v4055_v17 = vpop.f32.mrb[128].mxu1 }
 0x689   : > { %v4061_v19 = vadd.f32 %v4014_v16, %v3940_v7  ;;  %v4063_v20 = vadd.f32 %v4055_v17, %v3942_v8  ;;  %v4016_v18 = vpop.f32.mrb[129].mxu0  ;;  %v6184_v22 = vpop.f32.mrb[129].mxu1 }
 0x68a   : > { %v4062_v23 = vadd.f32 %v4016_v18, %v3941_v11  ;;  %v4018_v24 = vpop.f32.mrb[130].mxu0  ;;  %v4058_v25 = vpop.f32.mrb[130].mxu1  ;;  %v5522_v22 = vld [vmem:[%s7611_s4 + $0x8] sm:$0xff] }
 0x68b   : > { %v4019_v26 = vpop.f32.mrb[131].mxu0  ;;  %v6185_v27 = vpop.f32.mrb[131].mxu1 }
 0x690   : > { %v4123_v28 = vpop.f32.mrb[132].mxu0  ;;  %v4164_v29 = vpop.f32.mrb[132].mxu1 }
 0x691   : > { %v4170_v30 = vadd.f32 %v4123_v28, %v4061_v19  ;;  %v4172_v31 = vadd.f32 %v4164_v29, %v4063_v20  ;;  %v4125_v32 = vpop.f32.mrb[133].mxu0  ;;  %v6190_v33 = vpop.f32.mrb[133].mxu1 }
 0x692   : > { %v4171_v34 = vadd.f32 %v4125_v32, %v4062_v23  ;;  %v4127_v35 = vpop.f32.mrb[134].mxu0  ;;  %v4167_v36 = vpop.f32.mrb[134].mxu1  ;;  %v5521_v23 = vld [vmem:[%s7611_s4] sm:$0xff] }
 0x693   : > { %v4128_v37 = vpop.f32.mrb[135].mxu0  ;;  %v6191_v38 = vpop.f32.mrb[135].mxu1 }
 0x698   : > { %v4232_v39 = vpop.f32.mrb[136].mxu0  ;;  %v4273_v40 = vpop.f32.mrb[136].mxu1 }
 0x699   : > { %v4279_v41 = vadd.f32 %v4232_v39, %v4170_v30  ;;  %v4281_v44 = vadd.f32 %v4273_v40, %v4172_v31  ;;  %v4234_v46 = vpop.f32.mrb[137].mxu0  ;;  %v6196_v47 = vpop.f32.mrb[137].mxu1  ;;  %v6389_v31 = vld [vmem:[%s7610_s3 + $0x8] sm:$0xff]  }
 0x69a   : > { %v4280_v48 = vadd.f32 %v4234_v46, %v4171_v34  ;;  %v4236_v49 = vpop.f32.mrb[138].mxu0  ;;  %v4276_v50 = vpop.f32.mrb[138].mxu1  ;;  %v6390_v47 = vld [vmem:[%s7610_s3] sm:$0xff]  }
 0x69b   : > { %v4237_v21 = vpop.f32.mrb[139].mxu0  ;;  %v6197_v51 = vpop.f32.mrb[139].mxu1 }
 0x6a0   : > { %v4341_v53 = vpop.f32.mrb[140].mxu0  ;;  %v4382_v54 = vpop.f32.mrb[140].mxu1 }
 0x6a1   : > { %v4388_v55 = vadd.f32 %v4341_v53, %v4279_v41  ;;  %v4390_v56 = vadd.f32 %v4382_v54, %v4281_v44  ;;  %v4343_v57 = vpop.f32.mrb[141].mxu0  ;;  %v6202_v58 = vpop.f32.mrb[141].mxu1 }
 0x6a2   : > { %v4389_v59 = vadd.f32 %v4343_v57, %v4280_v48  ;;  %v4345_v60 = vpop.f32.mrb[142].mxu0  ;;  %v4385_v61 = vpop.f32.mrb[142].mxu1 }
 0x6a3   : > { %v4398_v62 = vadd.f32 %v4396_v52, %v4388_v55  ;;  %v4400_v63 = vadd.f32 %v4396_v52, %v4390_v56  ;;  %v4346_v1 = vpop.f32.mrb[143].mxu0  ;;  %v6203_v2 = vpop.f32.mrb[143].mxu1  ;;  %v6391_v60 = vld [vmem:[%s7610_s3 + $0x10] sm:$0xff]  }
 0x6a4   : > { %v4399_v4 = vadd.f32 %v4396_v52, %v4389_v59 }
 0x6a5   : > { %v4401_v5 = vmax.f32 %v4398_v62, 0.0  ;;  %v4403_v6 = vmax.f32 %v4400_v63, 0.0 }
 0x6a6   : > { %v4402_v7 = vmax.f32 %v4399_v4, 0.0 }
 0x6a7   : > { %v4404_v8 = vsel %vm6792_vm10, %v4401_v5, 0.0  ;;  %v4406_v9 = vsel %vm6798_vm11, %v4403_v6, 0.0 }
 0x6a8   : > { %v5897_v10 = vpack.c.bf16 %v4406_v9, %v4406_v9  ;;  %v4405_v11 = vsel %vm6802_vm9, %v4402_v7, 0.0  ;;  %v7391_v17 = vpack.c.bf16 %v4404_v8, %v4404_v8  ;;  %v6392_v7 = vld [vmem:[%s7610_s3 + $0x18] sm:$0xff]   ;;  %vm7673_vm9 = vmmov %vm7661_vm8 }
 0x6a9   : > { %v5896_v12 = vpack.c.bf16 %v4405_v11, %v4404_v8  ;;  %v7389_v45 = vpack.c.bf16 %v4405_v11, %v4405_v11 }
 0x6aa   : > { %4421 = vst [vmem:[#allocation2 + $0xc] sm:$0xf] %v5897_v10  ;;  %v4927_v11 = vsel %vm323_vm3, %v7391_v17, 0 }
 0x6ab   : > { %4420 = vst [vmem:[#allocation2 + $0x4] sm:$0xff] %v5896_v12 }
 0x6b1   : > { %v5029_v19 = vld [vmem:[#allocation2 + $0xc] sm:$0xff] }
 0x6b2   : > { %v4424_v13 = vld [vmem:[#allocation2] sm:$0xff]  ;;  %v4425_v16 = vld [vmem:[#allocation2 + $0x8] sm:$0xff]  ;;  %v5865_v20 = vcombine.high %v5029_v19, %v5029_v19  ;;  %v5864_v18 = vcombine.low %v5029_v19, %v5029_v19 }
 0x6b3   : > { %v5828_v14 = vcombine.high %v4424_v13, %v4424_v13  ;;  %v5827_v15 = vcombine.low %v4424_v13, %v4424_v13  ;;  %v5829_v42 = vcombine.low %v4425_v16, %v4425_v16  ;;  %v5830_v43 = vcombine.high %v4425_v16, %v4425_v16  ;;  %v6393_v8 = vld [vmem:[#allocation2 + $0xc] ss:$0 sps:$4 sm:$0xff]  }
 0x6b4   : > { %v4933_v12 = vsel %vm323_vm3, %v6393_v8, 0 }
 0x6b5   : > { %4446 = vrot.lane.b32.xlu0 %v5828_v14, %s6474_s10  ;;  %4444 = vrot.lane.b32.xlu1 %v5827_v15, %s6474_s10 }
 0x6b9   : > { %4556 = vrot.lane.b32.xlu0 %v5827_v15, %s6475_s11  ;;  %4448 = vrot.lane.b32.xlu1 %v5829_v42, %s6474_s10 }
 0x6bd   : > { %4560 = vrot.lane.b32.xlu0 %v5829_v42, %s6475_s11  ;;  %4558 = vrot.lane.b32.xlu1 %v5828_v14, %s6475_s11 }
 0x6c1   : > { %4673 = vrot.lane.b32.xlu0 %v5828_v14, %s6476_s12  ;;  %4671 = vrot.lane.b32.xlu1 %v5827_v15, %s6476_s12 }
 0x6c5   : > { %4450 = vrot.lane.b32.xlu0 %v5830_v43, %s6474_s10  ;;  %4675 = vrot.lane.b32.xlu1 %v5829_v42, %s6476_s12  ;;  %s6411_s10 = sshll.u32 %s6482_s9, 4  ;;  %s6412_s10 = int_to_ptr.vmem [resolvable:$false] %s6411_s10 }
 0x6c9   : > { %4794 = vrot.lane.b32.xlu0 %v5828_v14, %s6477_s13  ;;  %4792 = vrot.lane.b32.xlu1 %v5827_v15, %s6477_s13  ;;  %v6394_v14 = vld [vmem:[%s7610_s3 + $0x20] sm:$0xff]  }
 0x6cd   : > { %4562 = vrot.lane.b32.xlu0 %v5830_v43, %s6475_s11  ;;  %4796 = vrot.lane.b32.xlu1 %v5829_v42, %s6477_s13  ;;  %s6413_s11 = scalar_lea.vmem %s6412_s10, 1536 }
 0x6d1   : > { %4798 = vrot.lane.b32.xlu0 %v5830_v43, %s6477_s13  ;;  %4677 = vrot.lane.b32.xlu1 %v5830_v43, %s6476_s12 }
 0x6d5   : > { %5047 = vrot.lane.b32.xlu0 %v7389_v45, %s6478_s14  ;;  %5045 = vrot.lane.b32.xlu1 %v7391_v17, %s6478_s14 }
 0x6d9   : > { %5051 = vrot.lane.b32.xlu0 %v5865_v20, %s6478_s14  ;;  %5049 = vrot.lane.b32.xlu1 %v5864_v18, %s6478_s14 }
 0x6dd   : > { %5168 = vrot.lane.b32.xlu0 %v7389_v45, %s6479_s15  ;;  %5166 = vrot.lane.b32.xlu1 %v7391_v17, %s6479_s15 }
 0x6e1   : > { %5172 = vrot.lane.b32.xlu0 %v5865_v20, %s6479_s15  ;;  %5170 = vrot.lane.b32.xlu1 %v5864_v18, %s6479_s15 }
 0x6e5   : > { %5289 = vrot.lane.b32.xlu0 %v7389_v45, %s6480_s16  ;;  %5287 = vrot.lane.b32.xlu1 %v7391_v17, %s6480_s16 }
 0x6e9   : > { %5293 = vrot.lane.b32.xlu0 %v5865_v20, %s6480_s16  ;;  %5291 = vrot.lane.b32.xlu1 %v5864_v18, %s6480_s16  ;;  %s215_s16 = sand.u32 1, %s6461_s19  }
 0x6ea   : > { %s7566_s22 = scalar_lea.sflag [#allocation4], %s215_s16 }
 0x6ed   : > { %5414 = vrot.lane.b32.xlu0 %v5865_v20, %s6481_s17  ;;  %5412 = vrot.lane.b32.xlu1 %v5864_v18, %s6481_s17  ;;  %v6395_v18 = vld [vmem:[%s7610_s3 + $0x28] sm:$0xff]  }
 0x6f1   : > { %5410 = vrot.lane.b32.xlu0 %v7389_v45, %s6481_s17  ;;  %5408 = vrot.lane.b32.xlu1 %v7391_v17, %s6481_s17  ;;  %s6290_s17 = smul.u32 48, %s215_s16 }
 0x6f3   : > { %s217_s23 = scalar_lea.vmem [#allocation3], %s6290_s17 }
 0x6f4   : > { %s5559_s25 = sshll.u32 %s217_s23, 4  ;;  %s7557_s25 = int_to_ptr.vmem [resolvable:$true] %s5559_s25 }
 0x6f5   : > { %5530 = vperm.xlu0 %6351, %v5522_v22   ;;  %5525 = vperm.xlu1 %6352, %v5521_v23   ;;  %s6407_s8 = scalar_lea.vmem %s7557_s25, 768  ;;  %p6414_p0 = scmp.lt.s32.totalorder %s7557_s25, %s6412_s10 }
 0x6f6   : > { %p6408_p11 = scmp.ne.s32.totalorder %s7557_s25, %s6407_s8  ;;  %p6415_p1 = scmp.lt.s32.totalorder %s6413_s11, %s6407_s8 }
 0x6f8   : > { %p6409_p12 = pnand %p6408_p11, %p6553_p5  ;;  %p6416_p2 = por %p6415_p1, %p6414_p0 }
 0x6fa   : > { %p6410_p13 = pneg %p6409_p12 }
 0x6fc   : > { %p6417_p3 = pnand %p6416_p2, %p6410_p13 }
 0x727   : > { %v4447_v24 = vpop.permute.xlu0 %4446  ;;  %v4445_v25 = vpop.permute.xlu1 %4444 }
 0x728   : > { %v4452_v26 = vsel %vm315_vm2, %v4445_v25, %v4447_v24 }
 0x729   : > { %v4459_v30 = vsel %vm323_vm3, %v4452_v26, 0 }
 0x72b   : > { %v4557_v27 = vpop.permute.xlu0 %4556  ;;  %v4449_v28 = vpop.permute.xlu1 %4448 }
 0x72c   : > { %v4453_v29 = vsel %vm315_vm2, %v4447_v24, %v4449_v28 }
 0x72d   : > { %5831 = vmatprep.subr.msk.bf16.mxu0 %vm323_vm3, %v4453_v29 }
 0x72e   : > { %4468 = vmatpush1.bf16.msra.mxu0 %v4459_v30 }
 0x72f   : > { %v4561_v32 = vpop.permute.xlu0 %4560  ;;  %v4559_v33 = vpop.permute.xlu1 %4558 }
 0x730   : > { %v4564_v34 = vsel %vm422_vm5, %v4557_v27, %v4559_v33  ;;  %v4565_v35 = vsel %vm422_vm5, %v4559_v33, %v4561_v32  ;;  %v6396_v27 = vld [vmem:[%s7610_s3 + $0x30] sm:$0xff]  }
 0x731   : > { %v4571_v36 = vsel %vm323_vm3, %v4564_v34, 0  ;;  %5832 = vmatmul.mubr.msk.bf16.vlgmr.msra.gmra.mrb[144].mxu0 %vm319_vm4, %v6389_v31  ;;  %5835 = vmatprep.subr.msk.bf16.mxu0 %vm323_vm3, %v4565_v35  ;;  %v6397_v35 = vld [vmem:[%s7610_s3 + $0x38] sm:$0xff]  }
 0x732   : > { %4580 = vmatpush1.bf16.msra.mxu0 %v4571_v36  ;;  %4611 = vmatprep.mubr.bf16.mxu0 %v6471_v0 }
 0x733   : > { %v4674_v37 = vpop.permute.xlu0 %4673  ;;  %v4672_v38 = vpop.permute.xlu1 %4671 }
 0x734   : > { %v4679_v48 = vsel %vm529_vm6, %v4672_v38, %v4674_v37 }
 0x735   : > { %v4686_v21 = vsel %vm323_vm3, %v4679_v48, 0 }
 0x737   : > { %v4451_v39 = vpop.permute.xlu0 %4450  ;;  %v4676_v40 = vpop.permute.xlu1 %4675 }
 0x738   : > { %v4454_v41 = vsel %vm315_vm2, %v4449_v28, %v4451_v39  ;;  %v4680_v44 = vsel %vm529_vm6, %v4674_v37, %v4676_v40  ;;  %vm7667_vm2 = vcmask 1039360  }
 0x739   : > { %v4465_v46 = vsel %vm323_vm3, %v4454_v41, 0  ;;  %5841 = vmatprep.subr.msk.bf16.mxu0 %vm323_vm3, %v4680_v44  ;;  %v6398_v41 = vld [vmem:[%s7610_s3 + $0x40] sm:$0xff]  }
 0x73a   : > { %6205 = vmatpush3.bf16.msra.mxu1 %v4465_v46 }
 0x73b   : > { %v4795_v49 = vpop.permute.xlu0 %4794  ;;  %v4793_v50 = vpop.permute.xlu1 %4792  ;;  %6210 = vmatprep.subr.bf16.mxu1 %v6472_v3 }
 0x73c   : > { %v4800_v61 = vsel %vm639_vm7, %v4793_v50, %v4795_v49 }
 0x73d   : > { %6207 = vmatmul.mubr.msk.bf16.vlgmr.msra.gmra.mrb[144].mxu1 %vm319_vm4, %v6389_v31  ;;  %5836 = vmatmul.mubr.msk.bf16.vlgmr.msra.gmra.mrb[144].mxu0 %vm319_vm4, %v6390_v47  ;;  %v4807_v62 = vsel %vm323_vm3, %v4800_v61, 0 }
 0x73e   : > { %4695 = vmatpush1.bf16.msra.mxu0 %v4686_v21  ;;  %6212 = vmatprep.mubr.msk.bf16.mxu1 %vm6473_vm1, %v6472_v3 }
 0x73f   : > { %v4563_v51 = vpop.permute.xlu0 %4562  ;;  %v4797_v52 = vpop.permute.xlu1 %4796  ;;  %4726 = vmatprep.mubr.bf16.mxu0 %v6471_v0 }
 0x740   : > { %v4566_v53 = vsel %vm422_vm5, %v4561_v32, %v4563_v51  ;;  %v4801_v54 = vsel %vm639_vm7, %v4795_v49, %v4797_v52  ;;  %vm7668_vm5 = vmmov %vm7667_vm2 }
 0x741   : > { %v4577_v55 = vsel %vm323_vm3, %v4566_v53, 0  ;;  %5847 = vmatprep.subr.msk.bf16.mxu0 %vm323_vm3, %v4801_v54 }
 0x742   : > { %6211 = vmatpush3.bf16.msra.mxu1 %v4577_v55 }
 0x743   : > { %v4799_v56 = vpop.permute.xlu0 %4798  ;;  %v4678_v57 = vpop.permute.xlu1 %4677  ;;  %6216 = vmatprep.subr.bf16.mxu1 %v6472_v3 }
 0x744   : > { %v4681_v58 = vsel %vm529_vm6, %v4676_v40, %v4678_v57  ;;  %v4802_v2 = vsel %vm639_vm7, %v4797_v52, %v4799_v56  ;;  %vm7669_vm6 = vmmov %vm7667_vm2  ;;  %vm7670_vm7 = vcmask 908288  }
 0x745   : > { %v4692_v59 = vsel %vm323_vm3, %v4681_v58, 0  ;;  %6213 = vmatmul.mubr.msk.bf16.vlgmr.msra.gmra.mrb[148].mxu1 %vm319_vm4, %v6390_v47  ;;  %v4813_v4 = vsel %vm323_vm3, %v4802_v2, 0  ;;  %vm7671_vm10 = vmmov %vm7670_vm7 }
 0x746   : > { %6217 = vmatpush3.bf16.msra.mxu1 %v4692_v59  ;;  %6218 = vmatprep.mubr.msk.bf16.mxu1 %vm6473_vm1, %v6472_v3  ;;  %vm7672_vm11 = vmmov %vm7670_vm7 }
 0x747   : > { %6222 = vmatprep.subr.bf16.mxu1 %v6472_v3  ;;  %v5048_v63 = vpop.permute.xlu0 %5047  ;;  %v5046_v1 = vpop.permute.xlu1 %5045 }
 0x749   : > { %5842 = vmatmul.mubr.msk.bf16.vlgmr.msra.gmra.mrb[144].mxu0 %vm319_vm4, %v6391_v60 }
 0x74a   : > { %4816 = vmatpush1.bf16.msra.mxu0 %v4807_v62  ;;  %4847 = vmatprep.mubr.bf16.mxu0 %v6471_v0 }
 0x74b   : > { %5856 = vmatprep.subr.msk.bf16.mxu0 %vm323_vm3, %v7389_v45  ;;  %v5052_v5 = vpop.permute.xlu0 %5051  ;;  %v5050_v6 = vpop.permute.xlu1 %5049  ;;  %v5053_v45 = vsel %vm7669_vm6, %v5046_v1, %v5048_v63 }
 0x74c   : > { %v5054_v13 = vsel %vm7667_vm2, %v5048_v63, %v5050_v6  ;;  %v5055_v15 = vsel %vm7668_vm5, %v5050_v6, %v5052_v5  ;;  %v5060_v17 = vsel %vm323_vm3, %v5053_v45, 0 }
 0x74d   : > { %6219 = vmatmul.mubr.msk.bf16.vlgmr.msra.gmra.mrb[152].mxu1 %vm319_vm4, %v6391_v60  ;;  %v5066_v43 = vsel %vm323_vm3, %v5055_v15, 0 }
 0x74e   : > { %6223 = vmatpush3.bf16.msra.mxu1 %v4813_v4  ;;  %6224 = vmatprep.mubr.msk.bf16.mxu1 %vm6473_vm1, %v6472_v3 }
 0x74f   : > { %6228 = vmatprep.subr.bf16.mxu1 %v6472_v3  ;;  %v5169_v9 = vpop.permute.xlu0 %5168  ;;  %v5167_v10 = vpop.permute.xlu1 %5166 }
 0x750   : > { %v5174_v28 = vsel %vm7672_vm11, %v5167_v10, %v5169_v9 }
 0x751   : > { %v5181_v30 = vsel %vm323_vm3, %v5174_v28, 0 }
 0x753   : > { %v5173_v16 = vpop.permute.xlu0 %5172  ;;  %v5171_v42 = vpop.permute.xlu1 %5170 }
 0x754   : > { %v5175_v22 = vsel %vm7670_vm7, %v5169_v9, %v5171_v42  ;;  %v5176_v23 = vsel %vm7671_vm10, %v5171_v42, %v5173_v16 }
 0x755   : > { %5848 = vmatmul.mubr.msk.bf16.vlgmr.msra.gmra.mrb[144].mxu0 %vm319_vm4, %v6392_v7  ;;  %6225 = vmatmul.mubr.msk.bf16.vlgmr.msra.gmra.mrb[156].mxu1 %vm319_vm4, %v6392_v7  ;;  %v5187_v24 = vsel %vm323_vm3, %v5176_v23, 0 }
 0x756   : > { %4936 = vmatpush1.bf16.msra.mxu0 %v4927_v11  ;;  %6229 = vmatpush3.bf16.msra.mxu1 %v4933_v12 }
 0x757   : > { %5866 = vmatprep.subr.msk.bf16.mxu0 %vm323_vm3, %v5054_v13  ;;  %6230 = vmatprep.mubr.msk.bf16.mxu1 %vm6473_vm1, %v6472_v3  ;;  %v5290_v19 = vpop.permute.xlu0 %5289  ;;  %v5288_v20 = vpop.permute.xlu1 %5287 }
 0x758   : > { %6234 = vmatprep.subr.bf16.mxu1 %v6472_v3  ;;  %4967 = vmatprep.mubr.bf16.mxu0 %v6471_v0  ;;  %v5295_v38 = vsel %vm7675_vm15, %v5288_v20, %v5290_v19 }
 0x759   : > { %v5302_v40 = vsel %vm323_vm3, %v5295_v38, 0 }
 0x75b   : > { %v5294_v25 = vpop.permute.xlu0 %5293  ;;  %v5292_v26 = vpop.permute.xlu1 %5291 }
 0x75c   : > { %v5297_v29 = vsel %vm7673_vm9, %v5292_v26, %v5294_v25  ;;  %v5296_v32 = vsel %vm7661_vm8, %v5290_v19, %v5292_v26 }
 0x75d   : > { %6231 = vmatmul.mubr.msk.bf16.vlgmr.msra.gmra.mrb[160].mxu1 %vm319_vm4, %v6394_v14  ;;  %v5308_v31 = vsel %vm323_vm3, %v5297_v29, 0 }
 0x75e   : > { %6235 = vmatpush3.bf16.msra.mxu1 %v5066_v43  ;;  %6236 = vmatprep.mubr.msk.bf16.mxu1 %vm6473_vm1, %v6472_v3 }
 0x75f   : > { %6240 = vmatprep.subr.bf16.mxu1 %v6472_v3  ;;  %v5415_v33 = vpop.permute.xlu0 %5414  ;;  %v5413_v34 = vpop.permute.xlu1 %5412 }
 0x760   : > { %v5418_v36 = vsel %vm7674_vm14, %v5413_v34, %v5415_v33 }
 0x761   : > { %5857 = vmatmul.mubr.msk.bf16.vlgmr.msra.gmra.mrb[144].mxu0 %vm319_vm4, %v6394_v14  ;;  %v5429_v37 = vsel %vm323_vm3, %v5418_v36, 0 }
 0x762   : > { %5069 = vmatpush1.bf16.msra.mxu0 %v5060_v17  ;;  %5100 = vmatprep.mubr.bf16.mxu0 %v6471_v0 }
 0x763   : > { %5872 = vmatprep.subr.msk.bf16.mxu0 %vm323_vm3, %v5175_v22  ;;  %v5411_v39 = vpop.permute.xlu0 %5410  ;;  %v5409_v46 = vpop.permute.xlu1 %5408 }
 0x764   : > { %v5417_v44 = vsel %vm7664_vm0, %v5411_v39, %v5413_v34 }
 0x765   : > { %6237 = vmatmul.mubr.msk.bf16.vlgmr.msra.gmra.mrb[164].mxu1 %vm319_vm4, %v6395_v18 }
 0x766   : > { %6241 = vmatpush3.bf16.msra.mxu1 %v5187_v24  ;;  %6242 = vmatprep.mubr.msk.bf16.mxu1 %vm6473_vm1, %v6472_v3 }
 0x767   : > { %6246 = vmatprep.subr.bf16.mxu1 %v6472_v3 }
 0x76d   : > { %5867 = vmatmul.mubr.msk.bf16.vlgmr.msra.gmra.mrb[144].mxu0 %vm319_vm4, %v6395_v18  ;;  %6243 = vmatmul.mubr.msk.bf16.vlgmr.msra.gmra.mrb[168].mxu1 %vm319_vm4, %v6396_v27 }
 0x76e   : > { %5190 = vmatpush1.bf16.msra.mxu0 %v5181_v30  ;;  %6247 = vmatpush3.bf16.msra.mxu1 %v5308_v31 }
 0x76f   : > { %5878 = vmatprep.subr.msk.bf16.mxu0 %vm323_vm3, %v5296_v32  ;;  %6248 = vmatprep.mubr.msk.bf16.mxu1 %vm6473_vm1, %v6472_v3 }
 0x770   : > { %6252 = vmatprep.subr.bf16.mxu1 %v6472_v3  ;;  %5221 = vmatprep.mubr.bf16.mxu0 %v6471_v0 }
 0x774   : > { %v5526_v31 = vpop.permute.xlu1 %5525  ;;  %v5531_v36 = vpop.permute.xlu0 %5530 }
 0x775   : > { %6249 = vmatmul.mubr.msk.bf16.vlgmr.msra.gmra.mrb[172].mxu1 %vm319_vm4, %v6397_v35 }
 0x776   : > { %6253 = vmatpush3.bf16.msra.mxu1 %v5429_v37  ;;  %6254 = vmatprep.mubr.msk.bf16.mxu1 %vm6473_vm1, %v6472_v3  ;;  %vm7676_vm1 = vmmov %vm7664_vm0 }
 0x777   : > { %v5416_v3 = vsel %vm7676_vm1, %v5409_v46, %v5411_v39 }
 0x778   : > { %v5423_v47 = vsel %vm323_vm3, %v5416_v3, 0 }
 0x779   : > { %5873 = vmatmul.mubr.msk.bf16.vlgmr.msra.gmra.mrb[144].mxu0 %vm319_vm4, %v6396_v27 }
 0x77a   : > { %5311 = vmatpush1.bf16.msra.mxu0 %v5302_v40  ;;  %5342 = vmatprep.mubr.bf16.mxu0 %v6471_v0 }
 0x77b   : > { %5884 = vmatprep.subr.msk.bf16.mxu0 %vm323_vm3, %v5417_v44 }
 0x77d   : > { %6255 = vmatmul.mubr.msk.bf16.vlgmr.msra.gmra.mrb[176].mxu1 %vm319_vm4, %v6398_v41 }
 0x785   : > { %5879 = vmatmul.mubr.msk.bf16.vlgmr.msra.gmra.mrb[144].mxu0 %vm319_vm4, %v6397_v35 }
 0x786   : > { %5432 = vmatpush1.bf16.msra.mxu0 %v5423_v47  ;;  %5463 = vmatprep.mubr.bf16.mxu0 %v6471_v0 }
 0x791   : > { %5885 = vmatmul.mubr.msk.bf16.vlgmr.msra.gmra.mrb[144].mxu0 %vm319_vm4, %v6398_v41 }
 0x810   : > { %v4544_v48 = vpop.f32.mrb[144].mxu1 }
 0x811   : > { %v6208_v49 = vpop.f32.mrb[145].mxu1 }
 0x812   : > { %v4547_v50 = vpop.f32.mrb[146].mxu1 }
 0x813   : > { %v6209_v21 = vpop.f32.mrb[147].mxu1 }
 0x818   : > { %v4656_v51 = vpop.f32.mrb[148].mxu1 }
 0x819   : > { %v4657_v52 = vadd.f32 %v4656_v51, %v4544_v48  ;;  %v6214_v53 = vpop.f32.mrb[149].mxu1 }
 0x81a   : > { %v4659_v54 = vpop.f32.mrb[150].mxu1 }
 0x81b   : > { %v4660_v55 = vadd.f32 %v4659_v54, %v4547_v50  ;;  %v6215_v56 = vpop.f32.mrb[151].mxu1 }
 0x820   : > { %v4771_v57 = vpop.f32.mrb[152].mxu1 }
 0x821   : > { %v4780_v58 = vadd.f32 %v4771_v57, %v4657_v52  ;;  %v6220_v59 = vpop.f32.mrb[153].mxu1 }
 0x822   : > { %v4774_v60 = vpop.f32.mrb[154].mxu1 }
 0x823   : > { %v4783_v61 = vadd.f32 %v4774_v60, %v4660_v55  ;;  %v6221_v62 = vpop.f32.mrb[155].mxu1 }
 0x828   : > { %v4892_v63 = vpop.f32.mrb[156].mxu1 }
 0x829   : > { %v4901_v0 = vadd.f32 %v4892_v63, %v4780_v58  ;;  %v6226_v1 = vpop.f32.mrb[157].mxu1 }
 0x82a   : > { %v4895_v2 = vpop.f32.mrb[158].mxu1 }
 0x82b   : > { %v4904_v4 = vadd.f32 %v4895_v2, %v4783_v61  ;;  %v6227_v5 = vpop.f32.mrb[159].mxu1 }
 0x830   : > { %v5012_v6 = vpop.f32.mrb[160].mxu1 }
 0x831   : > { %v5021_v7 = vadd.f32 %v5012_v6, %v4901_v0  ;;  %v6232_v8 = vpop.f32.mrb[161].mxu1 }
 0x832   : > { %v5015_v9 = vpop.f32.mrb[162].mxu1 }
 0x833   : > { %v5024_v10 = vadd.f32 %v5015_v9, %v4904_v4  ;;  %v6233_v11 = vpop.f32.mrb[163].mxu1 }
 0x838   : > { %v5145_v12 = vpop.f32.mrb[164].mxu1 }
 0x839   : > { %v5154_v13 = vadd.f32 %v5145_v12, %v5021_v7  ;;  %v6238_v14 = vpop.f32.mrb[165].mxu1 }
 0x83a   : > { %v5148_v15 = vpop.f32.mrb[166].mxu1 }
 0x83b   : > { %v5157_v16 = vadd.f32 %v5148_v15, %v5024_v10  ;;  %v6239_v42 = vpop.f32.mrb[167].mxu1 }
 0x840   : > { %v5266_v43 = vpop.f32.mrb[168].mxu1 }
 0x841   : > { %v5275_v45 = vadd.f32 %v5266_v43, %v5154_v13  ;;  %v6244_v17 = vpop.f32.mrb[169].mxu1 }
 0x842   : > { %v5269_v19 = vpop.f32.mrb[170].mxu1 }
 0x843   : > { %v5278_v20 = vadd.f32 %v5269_v19, %v5157_v16  ;;  %v6245_v18 = vpop.f32.mrb[171].mxu1 }
 0x848   : > { %v5387_v22 = vpop.f32.mrb[172].mxu1 }
 0x849   : > { %v5396_v23 = vadd.f32 %v5387_v22, %v5275_v45  ;;  %v6250_v24 = vpop.f32.mrb[173].mxu1 }
 0x84a   : > { %v5390_v25 = vpop.f32.mrb[174].mxu1 }
 0x84b   : > { %v5399_v26 = vadd.f32 %v5390_v25, %v5278_v20  ;;  %v6251_v27 = vpop.f32.mrb[175].mxu1 }
 0x850   : > { %v5508_v28 = vpop.f32.mrb[176].mxu1 }
 0x851   : > { %v5517_v29 = vadd.f32 %v5508_v28, %v5396_v23  ;;  %v6256_v30 = vpop.f32.mrb[177].mxu1 }
 0x852   : > { %v5511_v32 = vpop.f32.mrb[178].mxu1 }
 0x853   : > { %v5535_v33 = vadd.f32 %v5526_v31, %v5517_v29  ;;  %v5520_v34 = vadd.f32 %v5511_v32, %v5399_v26  ;;  %v6257_v35 = vpop.f32.mrb[179].mxu1 }
 0x855   : > { %5541 = vst [vmem:[%s217_s23 + $0x10] sm:$0xff] %v5535_v33  ;;  %v5538_v37 = vadd.f32 %v5531_v36, %v5520_v34 }
 0x857   : > { %5544 = vst [vmem:[%s217_s23 + $0x28] sm:$0xff] %v5538_v37 }
 0x864   : > { %v5465_v38 = vpop.f32.mrb[144].mxu0 }
 0x865   : > { %v5533_v39 = vadd.f32 %v5526_v31, %v5465_v38  ;;  %v5467_v40 = vpop.f32.mrb[145].mxu0 }
 0x866   : > { %v5534_v41 = vadd.f32 %v5526_v31, %v5467_v40  ;;  %v5469_v44 = vpop.f32.mrb[146].mxu0 }
 0x867   : > { %5539 = vst [vmem:[%s217_s23] sm:$0xff] %v5533_v39  ;;  %v5536_v46 = vadd.f32 %v5531_v36, %v5469_v44  ;;  %v5471_v3 = vpop.f32.mrb[147].mxu0 }
 0x868   : > { %5540 = vst [vmem:[%s217_s23 + $0x8] sm:$0xff] %v5534_v41  ;;  %v5537_v47 = vadd.f32 %v5531_v36, %v5471_v3 }
 0x869   : > { %5542 = vst [vmem:[%s217_s23 + $0x18] sm:$0xff] %v5536_v46 }
 0x86a   : > { %5543 = vst [vmem:[%s217_s23 + $0x20] sm:$0xff] %v5537_v47 }
 0x86b   : > { %6420 = shalt.err (!%p6417_p3)
}
 0x86c   : > { %s6421_s12 = scalar_lea.hbm %s7562_s7, 768  ;;  %s6425_s15 = scalar_lea.hbm %s7612_s5, 1536 }
 0x86d   : > { %p6422_p4 = scmp.ne.s32.totalorder %s7562_s7, %s6421_s12  ;;  %p6426_p9 = scmp.lt.u32.totalorder %s7562_s7, %s7612_s5 }
 0x86e   : > { %p6427_p10 = scmp.lt.u32.totalorder %s6425_s15, %s6421_s12  ;;  %p6429_p12 = scmp.lt.u32.totalorder %s6421_s12, %s7562_s7 }
 0x86f   : > { %p6423_p7 = pnand %p6422_p4, %p6553_p5 }
 0x870   : > { %p6428_p11 = por %p6427_p10, %p6426_p9 }
 0x871   : > { %p6424_p8 = pneg %p6423_p7 }
 0x872   : > { %p6430_p13 = por %p6429_p12, %p6428_p11 }
 0x874   : > { %p6431_p0 = pnand %p6430_p13, %p6424_p8 }
 0x876   : > { %6434 = shalt.err (!%p6431_p0)
}
 0x877   : > { %s6483_s23 = smov 384   ;;  %s6484_s26 = smov 24  }
 0x878   : > { %6299 = dma.vmem_to_hbm [thread:$0]  (%p6553_p5), %s7557_s25, 768, %s7562_s7, %s7566_s22, %s6483_s23, %s6483_s23, %s6484_s26  }
 0x879 PF: > { %p6305_p1 = scmp.ge.s32.totalorder %s6469_s21, 2  ;;  %s5574_s30 = sand.u32 1, %s6457_s18  }
 0x87a   : > { %s5575_s6 = scalar_lea.sflag [#allocation4], %s5574_s30 }
 0x87b   : > { %p6302_p2 = pnand %p6305_p1, %p6557_p6 }
 0x87d   : > { %6452 = dma.done.wait (!%p6302_p2), %s5575_s6, 768  }
 0x87e   : > { %6454 = vsyncadd (!%p6302_p2), %s5575_s6, 4294966528  ;;  %p15_p3 = scmp.ge.s32.totalorder %s6540_s24, 4   ;;  %s7677_s18 = smov %s6461_s19 }
 0x87f   : > { %s7678_s19 = smov %s6465_s20  ;;  %s7679_s20 = smov %s6551_s27 }
 0x880   : > { %s7680_s21 = smov %s6540_s24  ;;  %17 = sbr.rel (!%p15_p3) target bundleno = 3 (0x3), region = 121 }
 0x887   :  { %5580 = vsyncpa [#allocation4], 1 }
 0x888   :  { %5582 = vsyncpa [#allocation4 + $0x1], 1 }

</bundles_post_ra>
